<compile_context>
chip_gen: v7x
topology: tpu7x:2x2x1
jax: 0.10.0
libtpu: 0.0.40
codegen_flags: <defaults>
</compile_context>

<pallas_src>
import numpy as np
import jax
import jax.numpy as jnp
from jax.experimental import pallas as pl
from jax.experimental.pallas import tpu as pltpu

NEG_SLOPE = 0.2                      # GATv2Conv default negative_slope
MASK_VAL = -1e30
A_CONST = 0.5 * (1.0 + NEG_SLOPE)    # leaky_relu(z) = A*z + B*|z|
B_CONST = 0.5 * (1.0 - NEG_SLOPE)


def _round_up(n, m):
    return ((n + m - 1) // m) * m


def gat_kernel(bids_ref, cnts_ref,                          # scalar-prefetch (SMEM)
               xr_ref, sr_ref, xl_ref, xlt_ref, sl_ref, adj_ref,
               batt_ref, gb_ref, w2_ref, b2_ref,            # SMEM scalar params
               out_ref,
               m_s, l_s, acc_s):
    del bids_ref                                            # used only by index_maps
    i = pl.program_id(0)
    jb = pl.program_id(1)
    n_channels = acc_s.shape[1]

    # --- per i-block init of the online-softmax state -------------------------
    @pl.when(jb == 0)
    def _init():
        m_s[...] = jnp.full_like(m_s, MASK_VAL)
        l_s[...] = jnp.zeros_like(l_s)
        acc_s[...] = jnp.zeros_like(acc_s)

    # Only the first counts[i] j-steps map to distinct non-empty source blocks;
    # padded repeats of the last valid block are skipped entirely.
    @pl.when(jb < cnts_ref[i])
    def _body():
        xr = xr_ref[...]           # [TI, C]  target projection
        xlt = xlt_ref[...]         # [C, TJ]  source projection (lane-dense rows)

        # scores[i,j] = sum_c att[c] * lrelu(xr[i,c] + xl[j,c])
        #            = A*(att.xr_i + att.xl_j) + sum_c (B*att[c]) * |xr[i,c]+xl[j,c]|
        # rank-1 seed (pre-scaled by A on the host):
        scores = sr_ref[...] + sl_ref[...]                  # [TI,1]+[1,TJ] -> [TI,TJ]
        for ch in range(n_channels):                        # static, C = F // 2
            e = xr[:, ch:ch + 1] + xlt[ch:ch + 1, :]        # [TI, TJ]
            scores = scores + batt_ref[0, ch] * jnp.abs(e)

        mask = adj_ref[...] != 0                            # int8 compare, no widening
        scores = jnp.where(mask, scores, jnp.float32(MASK_VAL))

        # --- online softmax with deferred normalization -----------------------
        m_prev = m_s[...]
        m_new = jnp.maximum(m_prev, jnp.max(scores, axis=-1, keepdims=True))
        corr = jnp.exp(m_prev - m_new)
        p = jnp.exp(scores - m_new)
        p = jnp.where(mask, p, 0.0)     # robust even if a row is fully masked here
        l_s[...] = corr * l_s[...] + jnp.sum(p, axis=-1, keepdims=True)
        acc_s[...] = corr * acc_s[...] + jnp.dot(
            p, xl_ref[...], preferred_element_type=jnp.float32)
        m_s[...] = m_new

    # --- finalize: normalize, +bias, ReLU, Linear(C,1), Sigmoid, lane-dense ---
    @pl.when(jb == pl.num_programs(1) - 1)
    def _finalize():
        ti = acc_s.shape[0]
        h = acc_s[...] / l_s[...]                           # exact normalization
        h_t = h.T                                           # [C, TI]
        logit = jnp.zeros((1, ti), jnp.float32)
        for ch in range(n_channels):
            row = jnp.maximum(h_t[ch:ch + 1, :] + gb_ref[0, ch], 0.0)  # bias + ReLU
            logit = logit + w2_ref[0, ch] * row             # Linear(C, 1)
        out_ref[...] = jax.nn.sigmoid(logit + b2_ref[0, 0])  # (1, TI) lane-dense


def gat_classifier_forward(x, adj, params, *, block_n=256,
                           vmem_limit_bytes=32 * 1024 * 1024):
    n, f = x.shape
    c = params["w_l"].shape[1]

    block_n = _round_up(max(block_n, 128), 128)
    block_n = min(block_n, _round_up(n, 128))      # don't tile wider than the graph
    n_pad = _round_up(n, block_n)
    nb = n_pad // block_n

    # --- pad nodes; padded rows get a self-loop so every softmax row is valid -
    x_p = jnp.zeros((n_pad, f), jnp.float32).at[:n, :].set(x.astype(jnp.float32))
    adj_p = jnp.zeros((n_pad, n_pad), jnp.int8).at[:n, :n].set(adj.astype(jnp.int8))
    if n_pad > n:
        pr = jnp.arange(n, n_pad)
        adj_p = adj_p.at[pr, pr].set(1)

    # --- host-side block occupancy tables (scalar prefetch) -------------------
    adj_np = np.asarray(adj_p)
    occ = adj_np.reshape(nb, block_n, nb, block_n).any(axis=(1, 3))   # [nb, nb]
    counts_np = occ.sum(axis=1).astype(np.int32)      # >= 1 thanks to self-loops
    assert int(counts_np.min()) >= 1
    max_nnz = int(counts_np.max())
    bids_np = np.zeros((nb, max_nnz), np.int32)
    for ib in range(nb):
        ids = np.nonzero(occ[ib])[0].astype(np.int32)
        bids_np[ib, :ids.size] = ids
        if ids.size < max_nnz:
            bids_np[ib, ids.size:] = ids[-1]           # pad with a valid block id
    bids = jnp.asarray(bids_np.reshape(-1))            # flat 1D SMEM table
    counts = jnp.asarray(counts_np)

    # --- hoisted projections + rank-1 attention scalars (plain JAX) -----------
    xl = (x_p @ params["w_l"] + params["b_l"]).astype(jnp.float32)   # [N_pad, C]
    xr = (x_p @ params["w_r"] + params["b_r"]).astype(jnp.float32)   # [N_pad, C]
    xl_t = xl.T                                                      # [C, N_pad]
    att = params["att"]                                              # (1, C)
    sr = (A_CONST * (xr @ att.T)).astype(jnp.float32)                # [N_pad, 1]
    sl = (A_CONST * (xl @ att.T)).T.astype(jnp.float32)              # [1, N_pad]
    batt = (B_CONST * att).astype(jnp.float32)                       # (1, C) SMEM
    w2 = params["w_lin"].T.astype(jnp.float32)                       # (1, C) SMEM

    smem = pl.BlockSpec(memory_space=pltpu.MemorySpace.SMEM)

    out_row = pl.pallas_call(
        gat_kernel,
        out_shape=jax.ShapeDtypeStruct((1, n_pad), jnp.float32),
        grid_spec=pltpu.PrefetchScalarGridSpec(
            num_scalar_prefetch=2,
            grid=(nb, max_nnz),
            in_specs=[
                pl.BlockSpec((block_n, c), lambda i, jb, bids, cnts: (i, 0)),   # xr
                pl.BlockSpec((block_n, 1), lambda i, jb, bids, cnts: (i, 0)),   # sr
                pl.BlockSpec((block_n, c),
                             lambda i, jb, bids, cnts: (bids[i * max_nnz + jb], 0)),  # xl
                pl.BlockSpec((c, block_n),
                             lambda i, jb, bids, cnts: (0, bids[i * max_nnz + jb])),  # xl_t
                pl.BlockSpec((1, block_n),
                             lambda i, jb, bids, cnts: (0, bids[i * max_nnz + jb])),  # sl
                pl.BlockSpec((block_n, block_n),
                             lambda i, jb, bids, cnts: (i, bids[i * max_nnz + jb])),  # adj
                smem,   # batt = B * att
                smem,   # GATv2 output bias
                smem,   # final Linear weight (1, C)
                smem,   # final Linear bias (1, 1)
            ],
            out_specs=pl.BlockSpec((1, block_n), lambda i, jb, bids, cnts: (0, i)),
            scratch_shapes=[
                pltpu.VMEM((block_n, 1), jnp.float32),   # running max
                pltpu.VMEM((block_n, 1), jnp.float32),   # running denom
                pltpu.VMEM((block_n, c), jnp.float32),   # running p @ xl
            ]),
        compiler_params=pltpu.CompilerParams(
            dimension_semantics=("parallel", "arbitrary"),
            vmem_limit_bytes=vmem_limit_bytes),
    )(bids, counts,
      xr, sr, xl, xl_t, sl, adj_p,
      batt, params["gat_bias"], w2, params["b_lin"])

    return out_row[0, :n].reshape(n, 1)


def build_adjacency(edge_index, n_nodes):
    """adj[i, j] = 1 iff edge j -> i; diagonal forced to 1 (self loops). int8."""
    src, dst = edge_index[0], edge_index[1]
    adj = jnp.zeros((n_nodes, n_nodes), jnp.int8)
    adj = adj.at[dst, src].set(1)
    diag = jnp.arange(n_nodes)
    adj = adj.at[diag, diag].set(1)
    return adj


def init_params(key, n_features):
    c = n_features // 2
    ks = jax.random.split(key, 4)
    glorot = lambda k, shape: (jax.random.normal(k, shape, jnp.float32)
                               * jnp.sqrt(2.0 / (shape[0] + shape[-1])))
    return {
        "w_l": glorot(ks[0], (n_features, c)),       # lin_l weight (source nodes)
        "b_l": jnp.zeros((1, c), jnp.float32),
        "w_r": glorot(ks[1], (n_features, c)),       # lin_r weight (target nodes)
        "b_r": jnp.zeros((1, c), jnp.float32),
        "att": glorot(ks[2], (1, c)),                # attention vector (heads=1)
        "gat_bias": jnp.zeros((1, c), jnp.float32),  # GATv2Conv output bias
        "w_lin": glorot(ks[3], (c, 1)),              # final Linear weight
        "b_lin": jnp.zeros((1, 1), jnp.float32),     # final Linear bias
    }


def reference_forward(x, adj, p):
    """Pure-JAX reference of the same math (for sanity checking)."""
    mask = adj > 0
    xl = x @ p["w_l"] + p["b_l"]
    xr = x @ p["w_r"] + p["b_r"]
    e = xl[None, :, :] + xr[:, None, :]
    e = jnp.where(e > 0, e, NEG_SLOPE * e)
    s = jnp.sum(e * p["att"][None, :, :], axis=-1)
    s = jnp.where(mask, s, MASK_VAL)
    a = jnp.exp(s - jnp.max(s, axis=-1, keepdims=True))
    a = jnp.where(mask, a, 0.0)
    a = a / jnp.sum(a, axis=-1, keepdims=True)
    h = jnp.maximum(a @ xl + p["gat_bias"], 0.0)
    return jax.nn.sigmoid(h @ p["w_lin"] + p["b_lin"])


if __name__ == "__main__":
    # Highest matmul precision so the plain-JAX reference and the hoisted
    # projections agree with the in-kernel f32 MXU dot to f32 accuracy.
    jax.config.update("jax_default_matmul_precision", "highest")

    key = jax.random.PRNGKey(0)
    N_FEATURES = 16                      # GATv2 out_channels = 8

    k_p, key = jax.random.split(key)
    params = init_params(k_p, N_FEATURES)

    cases = []
    key, k1 = jax.random.split(key)
    cases.append((16, jax.random.randint(k1, (2, 24), 0, 16, jnp.int32), 256))
    key, k2 = jax.random.split(key)
    cases.append((300, jax.random.randint(k2, (2, 1500), 0, 300, jnp.int32), 128))
    # Block-structured sparse graph (two clusters): many empty (i, j) tiles,
    # exercising the occupancy-based block skipping and padded-repeat guard.
    key, k3, k4 = jax.random.split(key, 3)
    e_a = jax.random.randint(k3, (2, 600), 0, 200, jnp.int32)
    e_b = jax.random.randint(k4, (2, 1200), 200, 600, jnp.int32)
    cases.append((600, jnp.concatenate([e_a, e_b], axis=1), 128))

    for n_nodes, edge_index, blk in cases:
        key, k_x = jax.random.split(key)
        x = jax.random.normal(k_x, (n_nodes, N_FEATURES), jnp.float32)
        adj = build_adjacency(edge_index, n_nodes)

        out = gat_classifier_forward(x, adj, params, block_n=blk)
        out = jax.block_until_ready(out)

        ref = reference_forward(x, adj, params)
        assert out.shape == (n_nodes, 1)
        err = float(jnp.max(jnp.abs(out - ref)))
        assert err < 1e-4, f"kernel deviates from JAX reference: {err}"

    print("KERNEL_OK")
</pallas_src>

<mosaic_0001>
module attributes {stable_mosaic.version = 11 : i64} {
  func.func @gat_kernel(%arg0: i32, %arg1: i32, %arg2: memref<1xi32, #tpu.memory_space<smem>>, %arg3: memref<1xi32, #tpu.memory_space<smem>>, %arg4: memref<128x8xf32, #tpu.memory_space<vmem>>, %arg5: memref<128x1xf32, #tpu.memory_space<vmem>>, %arg6: memref<128x8xf32, #tpu.memory_space<vmem>>, %arg7: memref<8x128xf32, #tpu.memory_space<vmem>>, %arg8: memref<1x128xf32, #tpu.memory_space<vmem>>, %arg9: memref<128x128xi8, #tpu.memory_space<vmem>>, %arg10: memref<1x8xf32, #tpu.memory_space<smem>>, %arg11: memref<1x8xf32, #tpu.memory_space<smem>>, %arg12: memref<1x8xf32, #tpu.memory_space<smem>>, %arg13: memref<1x1xf32, #tpu.memory_space<smem>>, %arg14: memref<1x128xf32, #tpu.memory_space<vmem>>, %arg15: memref<128x1xf32, #tpu.memory_space<vmem>>, %arg16: memref<128x1xf32, #tpu.memory_space<vmem>>, %arg17: memref<128x8xf32, #tpu.memory_space<vmem>>) attributes {dimension_semantics = [#tpu.dimension_semantics<parallel>, #tpu.dimension_semantics<arbitrary>], iteration_bounds = array<i64: 1, 1>, scalar_prefetch = 2 : i64, scratch_operands = 3 : i64, tpu.core_type = #tpu.core_type<tc>, window_params = [{transform_indices = @transform_0, window_bounds = array<i64: 128, 8>}, {transform_indices = @transform_1, window_bounds = array<i64: 128, 1>}, {transform_indices = @transform_2, window_bounds = array<i64: 128, 8>}, {transform_indices = @transform_3, window_bounds = array<i64: 8, 128>}, {transform_indices = @transform_4, window_bounds = array<i64: 1, 128>}, {transform_indices = @transform_5, window_bounds = array<i64: 128, 128>}, {transform_indices = @transform_6, window_bounds = array<i64: 1, 8>}, {transform_indices = @transform_7, window_bounds = array<i64: 1, 8>}, {transform_indices = @transform_8, window_bounds = array<i64: 1, 8>}, {transform_indices = @transform_9, window_bounds = array<i64: 1, 1>}, {transform_indices = @transform_10, window_bounds = array<i64: 1, 128>}]} {
    %c0_i32 = arith.constant 0 : i32
    %0 = arith.cmpi eq, %arg1, %c0_i32 : i32
    %1 = arith.extui %0 : i1 to i32
    %c0_i32_0 = arith.constant 0 : i32
    %2 = arith.cmpi ne, %1, %c0_i32_0 : i32
    scf.if %2 {
      %cst = arith.constant -1.000000e+30 : f32
      %11 = vector.broadcast %cst : f32 to vector<128x1xf32>
      %c0 = arith.constant 0 : index
      %c0_4 = arith.constant 0 : index
      %12 = vector.load %arg15[%c0, %c0_4] : memref<128x1xf32, #tpu.memory_space<vmem>>, vector<128x1xf32>
      tpu.vector_store %arg15[%c0, %c0_4], %11 {strides = array<i32>} : memref<128x1xf32, #tpu.memory_space<vmem>>, vector<128x1xf32>,
      %cst_5 = arith.constant 0.000000e+00 : f32
      %13 = vector.broadcast %cst_5 : f32 to vector<128x1xf32>
      %c0_6 = arith.constant 0 : index
      %c0_7 = arith.constant 0 : index
      %14 = vector.load %arg16[%c0_6, %c0_7] : memref<128x1xf32, #tpu.memory_space<vmem>>, vector<128x1xf32>
      tpu.vector_store %arg16[%c0_6, %c0_7], %13 {strides = array<i32>} : memref<128x1xf32, #tpu.memory_space<vmem>>, vector<128x1xf32>,
      %cst_8 = arith.constant 0.000000e+00 : f32
      %15 = vector.broadcast %cst_8 : f32 to vector<128x8xf32>
      %c0_9 = arith.constant 0 : index
      %c0_10 = arith.constant 0 : index
      %16 = vector.load %arg17[%c0_9, %c0_10] : memref<128x8xf32, #tpu.memory_space<vmem>>, vector<128x8xf32>
      tpu.vector_store %arg17[%c0_9, %c0_10], %15 {strides = array<i32>} : memref<128x8xf32, #tpu.memory_space<vmem>>, vector<128x8xf32>,
    } else {
    }
    %3 = arith.index_cast %arg0 : i32 to index
    %4 = memref.load %arg3[%3] : memref<1xi32, #tpu.memory_space<smem>>
    %5 = arith.cmpi slt, %arg1, %4 : i32
    %6 = arith.extui %5 : i1 to i32
    %c0_i32_1 = arith.constant 0 : i32
    %7 = arith.cmpi ne, %6, %c0_i32_1 : i32
    scf.if %7 {
      %c0 = arith.constant 0 : index
      %c0_4 = arith.constant 0 : index
      %11 = vector.load %arg4[%c0, %c0_4] : memref<128x8xf32, #tpu.memory_space<vmem>>, vector<128x8xf32>
      %c0_5 = arith.constant 0 : index
      %c0_6 = arith.constant 0 : index
      %12 = vector.load %arg7[%c0_5, %c0_6] : memref<8x128xf32, #tpu.memory_space<vmem>>, vector<8x128xf32>
      %c0_7 = arith.constant 0 : index
      %c0_8 = arith.constant 0 : index
      %13 = vector.load %arg5[%c0_7, %c0_8] : memref<128x1xf32, #tpu.memory_space<vmem>>, vector<128x1xf32>
      %c0_9 = arith.constant 0 : index
      %c0_10 = arith.constant 0 : index
      %14 = vector.load %arg8[%c0_9, %c0_10] : memref<1x128xf32, #tpu.memory_space<vmem>>, vector<1x128xf32>
      %15 = vector.broadcast %13 : vector<128x1xf32> to vector<128x128xf32>
      %16 = vector.broadcast %14 : vector<1x128xf32> to vector<128x128xf32>
      %17 = arith.addf %15, %16 : vector<128x128xf32>
      %18 = vector.extract_strided_slice %11 {offsets = [0, 0], sizes = [128, 1], strides = [1, 1]} : vector<128x8xf32> to vector<128x1xf32>
      %19 = vector.extract_strided_slice %12 {offsets = [0, 0], sizes = [1, 128], strides = [1, 1]} : vector<8x128xf32> to vector<1x128xf32>
      %20 = vector.broadcast %18 : vector<128x1xf32> to vector<128x128xf32>
      %21 = vector.broadcast %19 : vector<1x128xf32> to vector<128x128xf32>
      %22 = arith.addf %20, %21 : vector<128x128xf32>
      %c0_11 = arith.constant 0 : index
      %c0_12 = arith.constant 0 : index
      %23 = memref.load %arg10[%c0_11, %c0_12] : memref<1x8xf32, #tpu.memory_space<smem>>
      %24 = math.absf %22 : vector<128x128xf32>
      %25 = vector.broadcast %23 : f32 to vector<128x128xf32>
      %26 = arith.mulf %25, %24 : vector<128x128xf32>
      %27 = arith.addf %17, %26 : vector<128x128xf32>
      %28 = vector.extract_strided_slice %11 {offsets = [0, 1], sizes = [128, 1], strides = [1, 1]} : vector<128x8xf32> to vector<128x1xf32>
      %29 = vector.extract_strided_slice %12 {offsets = [1, 0], sizes = [1, 128], strides = [1, 1]} : vector<8x128xf32> to vector<1x128xf32>
      %30 = vector.broadcast %28 : vector<128x1xf32> to vector<128x128xf32>
      %31 = vector.broadcast %29 : vector<1x128xf32> to vector<128x128xf32>
      %32 = arith.addf %30, %31 : vector<128x128xf32>
      %c0_13 = arith.constant 0 : index
      %c1 = arith.constant 1 : index
      %33 = memref.load %arg10[%c0_13, %c1] : memref<1x8xf32, #tpu.memory_space<smem>>
      %34 = math.absf %32 : vector<128x128xf32>
      %35 = vector.broadcast %33 : f32 to vector<128x128xf32>
      %36 = arith.mulf %35, %34 : vector<128x128xf32>
      %37 = arith.addf %27, %36 : vector<128x128xf32>
      %38 = vector.extract_strided_slice %11 {offsets = [0, 2], sizes = [128, 1], strides = [1, 1]} : vector<128x8xf32> to vector<128x1xf32>
      %39 = vector.extract_strided_slice %12 {offsets = [2, 0], sizes = [1, 128], strides = [1, 1]} : vector<8x128xf32> to vector<1x128xf32>
      %40 = vector.broadcast %38 : vector<128x1xf32> to vector<128x128xf32>
      %41 = vector.broadcast %39 : vector<1x128xf32> to vector<128x128xf32>
      %42 = arith.addf %40, %41 : vector<128x128xf32>
      %c0_14 = arith.constant 0 : index
      %c2 = arith.constant 2 : index
      %43 = memref.load %arg10[%c0_14, %c2] : memref<1x8xf32, #tpu.memory_space<smem>>
      %44 = math.absf %42 : vector<128x128xf32>
      %45 = vector.broadcast %43 : f32 to vector<128x128xf32>
      %46 = arith.mulf %45, %44 : vector<128x128xf32>
      %47 = arith.addf %37, %46 : vector<128x128xf32>
      %48 = vector.extract_strided_slice %11 {offsets = [0, 3], sizes = [128, 1], strides = [1, 1]} : vector<128x8xf32> to vector<128x1xf32>
      %49 = vector.extract_strided_slice %12 {offsets = [3, 0], sizes = [1, 128], strides = [1, 1]} : vector<8x128xf32> to vector<1x128xf32>
      %50 = vector.broadcast %48 : vector<128x1xf32> to vector<128x128xf32>
      %51 = vector.broadcast %49 : vector<1x128xf32> to vector<128x128xf32>
      %52 = arith.addf %50, %51 : vector<128x128xf32>
      %c0_15 = arith.constant 0 : index
      %c3 = arith.constant 3 : index
      %53 = memref.load %arg10[%c0_15, %c3] : memref<1x8xf32, #tpu.memory_space<smem>>
      %54 = math.absf %52 : vector<128x128xf32>
      %55 = vector.broadcast %53 : f32 to vector<128x128xf32>
      %56 = arith.mulf %55, %54 : vector<128x128xf32>
      %57 = arith.addf %47, %56 : vector<128x128xf32>
      %58 = vector.extract_strided_slice %11 {offsets = [0, 4], sizes = [128, 1], strides = [1, 1]} : vector<128x8xf32> to vector<128x1xf32>
      %59 = vector.extract_strided_slice %12 {offsets = [4, 0], sizes = [1, 128], strides = [1, 1]} : vector<8x128xf32> to vector<1x128xf32>
      %60 = vector.broadcast %58 : vector<128x1xf32> to vector<128x128xf32>
      %61 = vector.broadcast %59 : vector<1x128xf32> to vector<128x128xf32>
      %62 = arith.addf %60, %61 : vector<128x128xf32>
      %c0_16 = arith.constant 0 : index
      %c4 = arith.constant 4 : index
      %63 = memref.load %arg10[%c0_16, %c4] : memref<1x8xf32, #tpu.memory_space<smem>>
      %64 = math.absf %62 : vector<128x128xf32>
      %65 = vector.broadcast %63 : f32 to vector<128x128xf32>
      %66 = arith.mulf %65, %64 : vector<128x128xf32>
      %67 = arith.addf %57, %66 : vector<128x128xf32>
      %68 = vector.extract_strided_slice %11 {offsets = [0, 5], sizes = [128, 1], strides = [1, 1]} : vector<128x8xf32> to vector<128x1xf32>
      %69 = vector.extract_strided_slice %12 {offsets = [5, 0], sizes = [1, 128], strides = [1, 1]} : vector<8x128xf32> to vector<1x128xf32>
      %70 = vector.broadcast %68 : vector<128x1xf32> to vector<128x128xf32>
      %71 = vector.broadcast %69 : vector<1x128xf32> to vector<128x128xf32>
      %72 = arith.addf %70, %71 : vector<128x128xf32>
      %c0_17 = arith.constant 0 : index
      %c5 = arith.constant 5 : index
      %73 = memref.load %arg10[%c0_17, %c5] : memref<1x8xf32, #tpu.memory_space<smem>>
      %74 = math.absf %72 : vector<128x128xf32>
      %75 = vector.broadcast %73 : f32 to vector<128x128xf32>
      %76 = arith.mulf %75, %74 : vector<128x128xf32>
      %77 = arith.addf %67, %76 : vector<128x128xf32>
      %78 = vector.extract_strided_slice %11 {offsets = [0, 6], sizes = [128, 1], strides = [1, 1]} : vector<128x8xf32> to vector<128x1xf32>
      %79 = vector.extract_strided_slice %12 {offsets = [6, 0], sizes = [1, 128], strides = [1, 1]} : vector<8x128xf32> to vector<1x128xf32>
      %80 = vector.broadcast %78 : vector<128x1xf32> to vector<128x128xf32>
      %81 = vector.broadcast %79 : vector<1x128xf32> to vector<128x128xf32>
      %82 = arith.addf %80, %81 : vector<128x128xf32>
      %c0_18 = arith.constant 0 : index
      %c6 = arith.constant 6 : index
      %83 = memref.load %arg10[%c0_18, %c6] : memref<1x8xf32, #tpu.memory_space<smem>>
      %84 = math.absf %82 : vector<128x128xf32>
      %85 = vector.broadcast %83 : f32 to vector<128x128xf32>
      %86 = arith.mulf %85, %84 : vector<128x128xf32>
      %87 = arith.addf %77, %86 : vector<128x128xf32>
      %88 = vector.extract_strided_slice %11 {offsets = [0, 7], sizes = [128, 1], strides = [1, 1]} : vector<128x8xf32> to vector<128x1xf32>
      %89 = vector.extract_strided_slice %12 {offsets = [7, 0], sizes = [1, 128], strides = [1, 1]} : vector<8x128xf32> to vector<1x128xf32>
      %90 = vector.broadcast %88 : vector<128x1xf32> to vector<128x128xf32>
      %91 = vector.broadcast %89 : vector<1x128xf32> to vector<128x128xf32>
      %92 = arith.addf %90, %91 : vector<128x128xf32>
      %c0_19 = arith.constant 0 : index
      %c7 = arith.constant 7 : index
      %93 = memref.load %arg10[%c0_19, %c7] : memref<1x8xf32, #tpu.memory_space<smem>>
      %94 = math.absf %92 : vector<128x128xf32>
      %95 = vector.broadcast %93 : f32 to vector<128x128xf32>
      %96 = arith.mulf %95, %94 : vector<128x128xf32>
      %97 = arith.addf %87, %96 : vector<128x128xf32>
      %c0_20 = arith.constant 0 : index
      %c0_21 = arith.constant 0 : index
      %98 = vector.load %arg9[%c0_20, %c0_21] : memref<128x128xi8, #tpu.memory_space<vmem>>, vector<128x128xi8>
      %c0_i8 = arith.constant 0 : i8
      %99 = vector.broadcast %c0_i8 : i8 to vector<128x128xi8>
      %100 = arith.cmpi ne, %98, %99 : vector<128x128xi8>
      %cst = arith.constant -1.000000e+30 : f32
      %101 = vector.broadcast %cst : f32 to vector<128x128xf32>
      %102 = arith.select %100, %97, %101 : vector<128x128xi1>, vector<128x128xf32>
      %c0_22 = arith.constant 0 : index
      %c0_23 = arith.constant 0 : index
      %103 = vector.load %arg15[%c0_22, %c0_23] : memref<128x1xf32, #tpu.memory_space<vmem>>, vector<128x1xf32>
      %cst_24 = arith.constant dense<0xFF800000> : vector<128xf32>
      %104 = vector.multi_reduction <maximumf>, %102, %cst_24 [1] : vector<128x128xf32> to vector<128xf32>
      %105 = vector.shape_cast %104 : vector<128xf32> to vector<128x1xf32>
      %106 = arith.maximumf %103, %105 : vector<128x1xf32>
      %107 = arith.subf %103, %106 : vector<128x1xf32>
      %108 = math.exp %107 : vector<128x1xf32>
      %109 = vector.broadcast %106 : vector<128x1xf32> to vector<128x128xf32>
      %110 = arith.subf %102, %109 : vector<128x128xf32>
      %111 = math.exp %110 : vector<128x128xf32>
      %cst_25 = arith.constant 0.000000e+00 : f32
      %112 = vector.broadcast %cst_25 : f32 to vector<128x128xf32>
      %113 = arith.select %100, %111, %112 : vector<128x128xi1>, vector<128x128xf32>
      %c0_26 = arith.constant 0 : index
      %c0_27 = arith.constant 0 : index
      %114 = vector.load %arg16[%c0_26, %c0_27] : memref<128x1xf32, #tpu.memory_space<vmem>>, vector<128x1xf32>
      %115 = arith.mulf %108, %114 : vector<128x1xf32>
      %cst_28 = arith.constant dense<0.000000e+00> : vector<128xf32>
      %116 = vector.multi_reduction <add>, %113, %cst_28 [1] : vector<128x128xf32> to vector<128xf32>
      %117 = vector.shape_cast %116 : vector<128xf32> to vector<128x1xf32>
      %118 = arith.addf %115, %117 : vector<128x1xf32>
      %c0_29 = arith.constant 0 : index
      %c0_30 = arith.constant 0 : index
      %119 = vector.load %arg16[%c0_29, %c0_30] : memref<128x1xf32, #tpu.memory_space<vmem>>, vector<128x1xf32>
      tpu.vector_store %arg16[%c0_29, %c0_30], %118 {strides = array<i32>} : memref<128x1xf32, #tpu.memory_space<vmem>>, vector<128x1xf32>,
      %c0_31 = arith.constant 0 : index
      %c0_32 = arith.constant 0 : index
      %120 = vector.load %arg17[%c0_31, %c0_32] : memref<128x8xf32, #tpu.memory_space<vmem>>, vector<128x8xf32>
      %121 = vector.broadcast %108 : vector<128x1xf32> to vector<128x8xf32>
      %122 = arith.mulf %121, %120 : vector<128x8xf32>
      %c0_33 = arith.constant 0 : index
      %c0_34 = arith.constant 0 : index
      %123 = vector.load %arg6[%c0_33, %c0_34] : memref<128x8xf32, #tpu.memory_space<vmem>>, vector<128x8xf32>
      %cst_35 = arith.constant dense<0.000000e+00> : vector<128x8xf32>
      %124 = tpu.matmul %113, %123, %cst_35 {dimension_numbers = #tpu.dot_dimension_numbers<[1], [0], [0], [1], [0, 0, 1, 1], [], []>, precision = #tpu.contract_precision<fp32>} : vector<128x128xf32>, vector<128x8xf32>, vector<128x8xf32> -> vector<128x8xf32>
      %125 = arith.addf %122, %124 : vector<128x8xf32>
      %c0_36 = arith.constant 0 : index
      %c0_37 = arith.constant 0 : index
      %126 = vector.load %arg17[%c0_36, %c0_37] : memref<128x8xf32, #tpu.memory_space<vmem>>, vector<128x8xf32>
      tpu.vector_store %arg17[%c0_36, %c0_37], %125 {strides = array<i32>} : memref<128x8xf32, #tpu.memory_space<vmem>>, vector<128x8xf32>,
      %c0_38 = arith.constant 0 : index
      %c0_39 = arith.constant 0 : index
      %127 = vector.load %arg15[%c0_38, %c0_39] : memref<128x1xf32, #tpu.memory_space<vmem>>, vector<128x1xf32>
      tpu.vector_store %arg15[%c0_38, %c0_39], %106 {strides = array<i32>} : memref<128x1xf32, #tpu.memory_space<vmem>>, vector<128x1xf32>,
    } else {
    }
    %c0_i32_2 = arith.constant 0 : i32
    %8 = arith.cmpi eq, %arg1, %c0_i32_2 : i32
    %9 = arith.extui %8 : i1 to i32
    %c0_i32_3 = arith.constant 0 : i32
    %10 = arith.cmpi ne, %9, %c0_i32_3 : i32
    scf.if %10 {
      %c0 = arith.constant 0 : index
      %c0_4 = arith.constant 0 : index
      %11 = vector.load %arg17[%c0, %c0_4] : memref<128x8xf32, #tpu.memory_space<vmem>>, vector<128x8xf32>
      %c0_5 = arith.constant 0 : index
      %c0_6 = arith.constant 0 : index
      %12 = vector.load %arg16[%c0_5, %c0_6] : memref<128x1xf32, #tpu.memory_space<vmem>>, vector<128x1xf32>
      %13 = vector.broadcast %12 : vector<128x1xf32> to vector<128x8xf32>
      %14 = arith.divf %11, %13 : vector<128x8xf32>
      %15 = tpu.transpose %14, [1, 0] : vector<128x8xf32> -> vector<8x128xf32>
      %cst = arith.constant 0.000000e+00 : f32
      %16 = vector.broadcast %cst : f32 to vector<1x128xf32>
      %17 = vector.extract_strided_slice %15 {offsets = [0, 0], sizes = [1, 128], strides = [1, 1]} : vector<8x128xf32> to vector<1x128xf32>
      %c0_7 = arith.constant 0 : index
      %c0_8 = arith.constant 0 : index
      %18 = memref.load %arg11[%c0_7, %c0_8] : memref<1x8xf32, #tpu.memory_space<smem>>
      %19 = vector.broadcast %18 : f32 to vector<1x128xf32>
      %20 = arith.addf %17, %19 : vector<1x128xf32>
      %cst_9 = arith.constant 0.000000e+00 : f32
      %21 = vector.broadcast %cst_9 : f32 to vector<1x128xf32>
      %22 = arith.maximumf %20, %21 : vector<1x128xf32>
      %c0_10 = arith.constant 0 : index
      %c0_11 = arith.constant 0 : index
      %23 = memref.load %arg12[%c0_10, %c0_11] : memref<1x8xf32, #tpu.memory_space<smem>>
      %24 = vector.broadcast %23 : f32 to vector<1x128xf32>
      %25 = arith.mulf %24, %22 : vector<1x128xf32>
      %26 = arith.addf %16, %25 : vector<1x128xf32>
      %27 = vector.extract_strided_slice %15 {offsets = [1, 0], sizes = [1, 128], strides = [1, 1]} : vector<8x128xf32> to vector<1x128xf32>
      %c0_12 = arith.constant 0 : index
      %c1 = arith.constant 1 : index
      %28 = memref.load %arg11[%c0_12, %c1] : memref<1x8xf32, #tpu.memory_space<smem>>
      %29 = vector.broadcast %28 : f32 to vector<1x128xf32>
      %30 = arith.addf %27, %29 : vector<1x128xf32>
      %cst_13 = arith.constant 0.000000e+00 : f32
      %31 = vector.broadcast %cst_13 : f32 to vector<1x128xf32>
      %32 = arith.maximumf %30, %31 : vector<1x128xf32>
      %c0_14 = arith.constant 0 : index
      %c1_15 = arith.constant 1 : index
      %33 = memref.load %arg12[%c0_14, %c1_15] : memref<1x8xf32, #tpu.memory_space<smem>>
      %34 = vector.broadcast %33 : f32 to vector<1x128xf32>
      %35 = arith.mulf %34, %32 : vector<1x128xf32>
      %36 = arith.addf %26, %35 : vector<1x128xf32>
      %37 = vector.extract_strided_slice %15 {offsets = [2, 0], sizes = [1, 128], strides = [1, 1]} : vector<8x128xf32> to vector<1x128xf32>
      %c0_16 = arith.constant 0 : index
      %c2 = arith.constant 2 : index
      %38 = memref.load %arg11[%c0_16, %c2] : memref<1x8xf32, #tpu.memory_space<smem>>
      %39 = vector.broadcast %38 : f32 to vector<1x128xf32>
      %40 = arith.addf %37, %39 : vector<1x128xf32>
      %cst_17 = arith.constant 0.000000e+00 : f32
      %41 = vector.broadcast %cst_17 : f32 to vector<1x128xf32>
      %42 = arith.maximumf %40, %41 : vector<1x128xf32>
      %c0_18 = arith.constant 0 : index
      %c2_19 = arith.constant 2 : index
      %43 = memref.load %arg12[%c0_18, %c2_19] : memref<1x8xf32, #tpu.memory_space<smem>>
      %44 = vector.broadcast %43 : f32 to vector<1x128xf32>
      %45 = arith.mulf %44, %42 : vector<1x128xf32>
      %46 = arith.addf %36, %45 : vector<1x128xf32>
      %47 = vector.extract_strided_slice %15 {offsets = [3, 0], sizes = [1, 128], strides = [1, 1]} : vector<8x128xf32> to vector<1x128xf32>
      %c0_20 = arith.constant 0 : index
      %c3 = arith.constant 3 : index
      %48 = memref.load %arg11[%c0_20, %c3] : memref<1x8xf32, #tpu.memory_space<smem>>
      %49 = vector.broadcast %48 : f32 to vector<1x128xf32>
      %50 = arith.addf %47, %49 : vector<1x128xf32>
      %cst_21 = arith.constant 0.000000e+00 : f32
      %51 = vector.broadcast %cst_21 : f32 to vector<1x128xf32>
      %52 = arith.maximumf %50, %51 : vector<1x128xf32>
      %c0_22 = arith.constant 0 : index
      %c3_23 = arith.constant 3 : index
      %53 = memref.load %arg12[%c0_22, %c3_23] : memref<1x8xf32, #tpu.memory_space<smem>>
      %54 = vector.broadcast %53 : f32 to vector<1x128xf32>
      %55 = arith.mulf %54, %52 : vector<1x128xf32>
      %56 = arith.addf %46, %55 : vector<1x128xf32>
      %57 = vector.extract_strided_slice %15 {offsets = [4, 0], sizes = [1, 128], strides = [1, 1]} : vector<8x128xf32> to vector<1x128xf32>
      %c0_24 = arith.constant 0 : index
      %c4 = arith.constant 4 : index
      %58 = memref.load %arg11[%c0_24, %c4] : memref<1x8xf32, #tpu.memory_space<smem>>
      %59 = vector.broadcast %58 : f32 to vector<1x128xf32>
      %60 = arith.addf %57, %59 : vector<1x128xf32>
      %cst_25 = arith.constant 0.000000e+00 : f32
      %61 = vector.broadcast %cst_25 : f32 to vector<1x128xf32>
      %62 = arith.maximumf %60, %61 : vector<1x128xf32>
      %c0_26 = arith.constant 0 : index
      %c4_27 = arith.constant 4 : index
      %63 = memref.load %arg12[%c0_26, %c4_27] : memref<1x8xf32, #tpu.memory_space<smem>>
      %64 = vector.broadcast %63 : f32 to vector<1x128xf32>
      %65 = arith.mulf %64, %62 : vector<1x128xf32>
      %66 = arith.addf %56, %65 : vector<1x128xf32>
      %67 = vector.extract_strided_slice %15 {offsets = [5, 0], sizes = [1, 128], strides = [1, 1]} : vector<8x128xf32> to vector<1x128xf32>
      %c0_28 = arith.constant 0 : index
      %c5 = arith.constant 5 : index
      %68 = memref.load %arg11[%c0_28, %c5] : memref<1x8xf32, #tpu.memory_space<smem>>
      %69 = vector.broadcast %68 : f32 to vector<1x128xf32>
      %70 = arith.addf %67, %69 : vector<1x128xf32>
      %cst_29 = arith.constant 0.000000e+00 : f32
      %71 = vector.broadcast %cst_29 : f32 to vector<1x128xf32>
      %72 = arith.maximumf %70, %71 : vector<1x128xf32>
      %c0_30 = arith.constant 0 : index
      %c5_31 = arith.constant 5 : index
      %73 = memref.load %arg12[%c0_30, %c5_31] : memref<1x8xf32, #tpu.memory_space<smem>>
      %74 = vector.broadcast %73 : f32 to vector<1x128xf32>
      %75 = arith.mulf %74, %72 : vector<1x128xf32>
      %76 = arith.addf %66, %75 : vector<1x128xf32>
      %77 = vector.extract_strided_slice %15 {offsets = [6, 0], sizes = [1, 128], strides = [1, 1]} : vector<8x128xf32> to vector<1x128xf32>
      %c0_32 = arith.constant 0 : index
      %c6 = arith.constant 6 : index
      %78 = memref.load %arg11[%c0_32, %c6] : memref<1x8xf32, #tpu.memory_space<smem>>
      %79 = vector.broadcast %78 : f32 to vector<1x128xf32>
      %80 = arith.addf %77, %79 : vector<1x128xf32>
      %cst_33 = arith.constant 0.000000e+00 : f32
      %81 = vector.broadcast %cst_33 : f32 to vector<1x128xf32>
      %82 = arith.maximumf %80, %81 : vector<1x128xf32>
      %c0_34 = arith.constant 0 : index
      %c6_35 = arith.constant 6 : index
      %83 = memref.load %arg12[%c0_34, %c6_35] : memref<1x8xf32, #tpu.memory_space<smem>>
      %84 = vector.broadcast %83 : f32 to vector<1x128xf32>
      %85 = arith.mulf %84, %82 : vector<1x128xf32>
      %86 = arith.addf %76, %85 : vector<1x128xf32>
      %87 = vector.extract_strided_slice %15 {offsets = [7, 0], sizes = [1, 128], strides = [1, 1]} : vector<8x128xf32> to vector<1x128xf32>
      %c0_36 = arith.constant 0 : index
      %c7 = arith.constant 7 : index
      %88 = memref.load %arg11[%c0_36, %c7] : memref<1x8xf32, #tpu.memory_space<smem>>
      %89 = vector.broadcast %88 : f32 to vector<1x128xf32>
      %90 = arith.addf %87, %89 : vector<1x128xf32>
      %cst_37 = arith.constant 0.000000e+00 : f32
      %91 = vector.broadcast %cst_37 : f32 to vector<1x128xf32>
      %92 = arith.maximumf %90, %91 : vector<1x128xf32>
      %c0_38 = arith.constant 0 : index
      %c7_39 = arith.constant 7 : index
      %93 = memref.load %arg12[%c0_38, %c7_39] : memref<1x8xf32, #tpu.memory_space<smem>>
      %94 = vector.broadcast %93 : f32 to vector<1x128xf32>
      %95 = arith.mulf %94, %92 : vector<1x128xf32>
      %96 = arith.addf %86, %95 : vector<1x128xf32>
      %c0_40 = arith.constant 0 : index
      %c0_41 = arith.constant 0 : index
      %97 = memref.load %arg13[%c0_40, %c0_41] : memref<1x1xf32, #tpu.memory_space<smem>>
      %98 = vector.broadcast %97 : f32 to vector<1x128xf32>
      %99 = arith.addf %96, %98 : vector<1x128xf32>
      %100 = arith.negf %99 : vector<1x128xf32>
      %101 = math.exp %100 : vector<1x128xf32>
      %cst_42 = arith.constant 1.000000e+00 : f32
      %102 = vector.broadcast %cst_42 : f32 to vector<1x128xf32>
      %103 = arith.addf %102, %101 : vector<1x128xf32>
      %104 = arith.divf %102, %103 : vector<1x128xf32>
      %c0_43 = arith.constant 0 : index
      %c0_44 = arith.constant 0 : index
      %105 = vector.load %arg14[%c0_43, %c0_44] : memref<1x128xf32, #tpu.memory_space<vmem>>, vector<1x128xf32>
      tpu.vector_store %arg14[%c0_43, %c0_44], %104 {strides = array<i32>} : memref<1x128xf32, #tpu.memory_space<vmem>>, vector<1x128xf32>,
    } else {
    }
    return
  }
  func.func @transform_0(%arg0: i32, %arg1: i32, %arg2: memref<1xi32, #tpu.memory_space<smem>>, %arg3: memref<1xi32, #tpu.memory_space<smem>>) -> (i32, i32) {
    %c0_i32 = arith.constant 0 : i32
    %c0_i32_0 = arith.constant 0 : i32
    return %arg0, %c0_i32 : i32, i32
  }
  func.func @transform_1(%arg0: i32, %arg1: i32, %arg2: memref<1xi32, #tpu.memory_space<smem>>, %arg3: memref<1xi32, #tpu.memory_space<smem>>) -> (i32, i32) {
    %c0_i32 = arith.constant 0 : i32
    %c0_i32_0 = arith.constant 0 : i32
    return %arg0, %c0_i32 : i32, i32
  }
  func.func @transform_2(%arg0: i32, %arg1: i32, %arg2: memref<1xi32, #tpu.memory_space<smem>>, %arg3: memref<1xi32, #tpu.memory_space<smem>>) -> (i32, i32) {
    %c1_i32 = arith.constant 1 : i32
    %0 = arith.muli %arg0, %c1_i32 : i32
    %1 = arith.addi %0, %arg1 : i32
    %2 = arith.index_cast %1 : i32 to index
    %3 = memref.load %arg2[%2] : memref<1xi32, #tpu.memory_space<smem>>
    %c0_i32 = arith.constant 0 : i32
    %c0_i32_0 = arith.constant 0 : i32
    return %3, %c0_i32 : i32, i32
  }
  func.func @transform_3(%arg0: i32, %arg1: i32, %arg2: memref<1xi32, #tpu.memory_space<smem>>, %arg3: memref<1xi32, #tpu.memory_space<smem>>) -> (i32, i32) {
    %c1_i32 = arith.constant 1 : i32
    %0 = arith.muli %arg0, %c1_i32 : i32
    %1 = arith.addi %0, %arg1 : i32
    %2 = arith.index_cast %1 : i32 to index
    %3 = memref.load %arg2[%2] : memref<1xi32, #tpu.memory_space<smem>>
    %c0_i32 = arith.constant 0 : i32
    %c0_i32_0 = arith.constant 0 : i32
    return %c0_i32, %3 : i32, i32
  }
  func.func @transform_4(%arg0: i32, %arg1: i32, %arg2: memref<1xi32, #tpu.memory_space<smem>>, %arg3: memref<1xi32, #tpu.memory_space<smem>>) -> (i32, i32) {
    %c1_i32 = arith.constant 1 : i32
    %0 = arith.muli %arg0, %c1_i32 : i32
    %1 = arith.addi %0, %arg1 : i32
    %2 = arith.index_cast %1 : i32 to index
    %3 = memref.load %arg2[%2] : memref<1xi32, #tpu.memory_space<smem>>
    %c0_i32 = arith.constant 0 : i32
    %c0_i32_0 = arith.constant 0 : i32
    return %c0_i32, %3 : i32, i32
  }
  func.func @transform_5(%arg0: i32, %arg1: i32, %arg2: memref<1xi32, #tpu.memory_space<smem>>, %arg3: memref<1xi32, #tpu.memory_space<smem>>) -> (i32, i32) {
    %c1_i32 = arith.constant 1 : i32
    %0 = arith.muli %arg0, %c1_i32 : i32
    %1 = arith.addi %0, %arg1 : i32
    %2 = arith.index_cast %1 : i32 to index
    %3 = memref.load %arg2[%2] : memref<1xi32, #tpu.memory_space<smem>>
    %c0_i32 = arith.constant 0 : i32
    return %arg0, %3 : i32, i32
  }
  func.func @transform_6(%arg0: i32, %arg1: i32, %arg2: memref<1xi32, #tpu.memory_space<smem>>, %arg3: memref<1xi32, #tpu.memory_space<smem>>) -> (i32, i32) {
    %c0_i32 = arith.constant 0 : i32
    %c0_i32_0 = arith.constant 0 : i32
    %c0_i32_1 = arith.constant 0 : i32
    return %c0_i32, %c0_i32_0 : i32, i32
  }
  func.func @transform_7(%arg0: i32, %arg1: i32, %arg2: memref<1xi32, #tpu.memory_space<smem>>, %arg3: memref<1xi32, #tpu.memory_space<smem>>) -> (i32, i32) {
    %c0_i32 = arith.constant 0 : i32
    %c0_i32_0 = arith.constant 0 : i32
    %c0_i32_1 = arith.constant 0 : i32
    return %c0_i32, %c0_i32_0 : i32, i32
  }
  func.func @transform_8(%arg0: i32, %arg1: i32, %arg2: memref<1xi32, #tpu.memory_space<smem>>, %arg3: memref<1xi32, #tpu.memory_space<smem>>) -> (i32, i32) {
    %c0_i32 = arith.constant 0 : i32
    %c0_i32_0 = arith.constant 0 : i32
    %c0_i32_1 = arith.constant 0 : i32
    return %c0_i32, %c0_i32_0 : i32, i32
  }
  func.func @transform_9(%arg0: i32, %arg1: i32, %arg2: memref<1xi32, #tpu.memory_space<smem>>, %arg3: memref<1xi32, #tpu.memory_space<smem>>) -> (i32, i32) {
    %c0_i32 = arith.constant 0 : i32
    %c0_i32_0 = arith.constant 0 : i32
    %c0_i32_1 = arith.constant 0 : i32
    return %c0_i32, %c0_i32_0 : i32, i32
  }
  func.func @transform_10(%arg0: i32, %arg1: i32, %arg2: memref<1xi32, #tpu.memory_space<smem>>, %arg3: memref<1xi32, #tpu.memory_space<smem>>) -> (i32, i32) {
    %c0_i32 = arith.constant 0 : i32
    %c0_i32_0 = arith.constant 0 : i32
    return %c0_i32, %arg0 : i32, i32
  }
}

</mosaic_0001>

<bundles_post_ra>
// kernel: tpu_custom_call.1
= control target key start
LH: loop header
LB: loop body
LE: loop exit
PB: predicated region body
PF: predicated region fallthrough
CT: control target
= control target key end

     0   :  { %s7030_s0 = inlined_call_operand.<no memory space> [shape: s32[1], index: 0, kind: input, shape index: {}]   ;;  %s7031_s1 = inlined_call_operand.<no memory space> [shape: s32[1], index: 1, kind: input, shape index: {}]   ;;  %s7032_s2 = inlined_call_operand.vmem [shape: f32[128,8], index: 2, kind: input, shape index: {}]   ;;  %s7033_s3 = inlined_call_operand.vmem [shape: f32[128,1], index: 3, kind: input, shape index: {}]   ;;  %s7034_s4 = inlined_call_operand.vmem [shape: f32[128,8], index: 4, kind: input, shape index: {}]   ;;  %s7035_s5 = inlined_call_operand.vmem [shape: f32[8,128], index: 5, kind: input, shape index: {}]   ;;  %s7036_s6 = inlined_call_operand.vmem [shape: f32[1,128], index: 6, kind: input, shape index: {}]   ;;  %s7037_s7 = inlined_call_operand.vmem [shape: s8[128,128], index: 7, kind: input, shape index: {}]   ;;  %s7038_s8 = inlined_call_operand.vmem [shape: f32[1,8], index: 8, kind: input, shape index: {}]   ;;  %s7039_s9 = inlined_call_operand.vmem [shape: f32[1,8], index: 9, kind: input, shape index: {}]   ;;  %s7040_s10 = inlined_call_operand.vmem [shape: f32[1,8], index: 10, kind: input, shape index: {}]   ;;  %s7041_s11 = inlined_call_operand.<no memory space> [shape: f32[1,1], index: 11, kind: input, shape index: {}]   ;;  %s7042_s12 = inlined_call_operand.hbm [shape: f32[1,128], index: 12, kind: output, shape index: {}]  }
   0x1   :  { %19 = sst [smem:[#allocation8]] %s7041_s11 }
   0x2   :  { %20 = vsyncpa [#allocation11], 0 }
   0x3   :  { %21 = vsyncpa [#allocation13], 0  ;;  %s84_s25 = sshll.u32 %s7039_s9, 4  ;;  %s85_s25 = int_to_ptr.vmem [resolvable:$true] %s84_s25 }
   0x4   :  { %22 = vsyncpa [#allocation10], 0  ;;  %s74_s28 = sshll.u32 %s7038_s8, 4  ;;  %s4724_s29 = scalar_lea.vmem %s85_s25, 16  ;;  %s75_s28 = int_to_ptr.vmem [resolvable:$true] %s74_s28 }
   0x5   :  { %p4725_p0 = scmp.ne.s32.totalorder %s85_s25, %s4724_s29  ;;  %p4729_p1 = scmp.lt.s32.totalorder %s85_s25, %s85_s25 }
   0x6   :  { %p4730_p2 = scmp.lt.s32.totalorder %s4724_s29, %s4724_s29 }
   0x8   :  { %p4731_p3 = por %p4730_p2, %p4729_p1 }
   0xa   :  { %p4732_p4 = pnand %p4731_p3, %p4725_p0 }
   0xc   :  { %4735 = shalt.err (!%p4732_p4)
}
   0xd   :  { %s4788_s11 = smov [#allocation12]   ;;  %s4736_s30 = scalar_lea.vmem %s75_s28, 16 }
   0xe   :  { %87 = dma.vmem_to_smem %s85_s25, 16, %s4788_s11, [#allocation13]  }
   0xf   :  { %p4737_p5 = scmp.ne.s32.totalorder %s75_s28, %s4736_s30  ;;  %p4741_p6 = scmp.lt.s32.totalorder %s75_s28, %s75_s28 }
  0x10   :  { %p4742_p7 = scmp.lt.s32.totalorder %s4736_s30, %s4736_s30 }
  0x12   :  { %p4743_p8 = por %p4742_p7, %p4741_p6 }
  0x14   :  { %p4744_p9 = pnand %p4743_p8, %p4737_p5 }
  0x16   :  { %4747 = shalt.err (!%p4744_p9)
}
  0x17   :  { %s4789_s9 = smov [#allocation9]   ;;  %s94_s14 = sshll.u32 %s7040_s10, 4  ;;  %s95_s14 = int_to_ptr.vmem [resolvable:$true] %s94_s14 }
  0x18   :  { %77 = dma.vmem_to_smem %s75_s28, 16, %s4789_s9, [#allocation11]  }
  0x19   :  { %s4748_s15 = scalar_lea.vmem %s95_s14, 16  ;;  %p4753_p11 = scmp.lt.s32.totalorder %s95_s14, %s95_s14 }
  0x1a   :  { %p4749_p10 = scmp.ne.s32.totalorder %s95_s14, %s4748_s15  ;;  %p4754_p12 = scmp.lt.s32.totalorder %s4748_s15, %s4748_s15 }
  0x1c   :  { %p4755_p13 = por %p4754_p12, %p4753_p11 }
  0x1e   :  { %p4756_p0 = pnand %p4755_p13, %p4749_p10 }
  0x20   :  { %4759 = shalt.err (!%p4756_p0)
}
  0x21   :  { %s4790_s16 = smov [#allocation14]  }
  0x22   :  { %97 = dma.vmem_to_smem %s95_s14, 16, %s4790_s16, [#allocation13]  }
  0x23   :  { %4782 = dma.done.wait [#allocation11], 16  }
  0x24   :  { %4783 = vsyncadd [#allocation11], 4294967280 }
  0x25   :  { %4784 = dma.done.wait [#allocation13], 32  }
  0x26   :  { %4785 = vsyncadd [#allocation13], 4294967264 }
  0x27   :  { %109 = sfence }
  0x28   :  { %s3719_s19 = sshll.u32 %s7030_s0, 4  ;;  %p146_p1 = scmp.lt.s32.totalorder %s7030_s0, 0  ;;  %vm7060_vm0 = vcmask 7168   ;;  %v4791_v0 = vmov -1e+30   ;;  %v4792_v1 = vmov 0.0  }
  0x29   :  { %p4890_p2 = scmp.lt.s32.totalorder %s3719_s19, 15  ;;  %174 = vst.msk [vmem:[#allocation2] sm:$0xff] %vm7060_vm0, %v4791_v0  ;;  %175 = vst.msk [vmem:[#allocation2 + $0x8] sm:$0xff] %vm7060_vm0, %v4791_v0  ;;  %vm7059_vm1 = vcmask 64512   ;;  %p3724_p3 = scmp.le.s32.totalorder %s7031_s1, 0 }
  0x2a   :  { %176 = vst.msk [vmem:[#allocation2 + $0x10] sm:$0xff] %vm7060_vm0, %v4791_v0  ;;  %177 = vst.msk [vmem:[#allocation2 + $0x18] sm:$0xff] %vm7060_vm0, %v4791_v0  ;;  %s147_s28 = scalar_select %p146_p1, %s7030_s0, 0 }
  0x2b   :  { %178 = vst.msk [vmem:[#allocation2 + $0x20] sm:$0xff] %vm7060_vm0, %v4791_v0  ;;  %179 = vst.msk [vmem:[#allocation2 + $0x28] sm:$0xff] %vm7060_vm0, %v4791_v0  ;;  %s7380_s19 = smov (!%p4890_p2, %s3719_s19), 15 }
  0x2c   :  { %180 = vst.msk [vmem:[#allocation2 + $0x30] sm:$0xff] %vm7060_vm0, %v4791_v0  ;;  %181 = vst.msk [vmem:[#allocation2 + $0x38] sm:$0xff] %vm7060_vm0, %v4791_v0  ;;  %s3721_s30 = sshll.u32 %s147_s28, 3  ;;  %s4958_s13 = scalar_lea.vmem %s7036_s6, %s147_s28 }
  0x2d   :  { %182 = vst.msk [vmem:[#allocation2 + $0x40] sm:$0xff] %vm7060_vm0, %v4791_v0  ;;  %183 = vst.msk [vmem:[#allocation2 + $0x48] sm:$0xff] %vm7060_vm0, %v4791_v0  ;;  %s3720_s14 = sshll.u32 %s7380_s19, 3  ;;  %s4963_s17 = scalar_lea.vmem %s7035_s5, %s3721_s30 }
  0x2e   :  { %184 = vst.msk [vmem:[#allocation2 + $0x50] sm:$0xff] %vm7060_vm0, %v4791_v0  ;;  %185 = vst.msk [vmem:[#allocation2 + $0x58] sm:$0xff] %vm7060_vm0, %v4791_v0  ;;  %s4968_s20 = scalar_lea.vmem %s7034_s4, %s3720_s14  ;;  %s4973_s22 = scalar_lea.vmem %s7037_s7, %s3721_s30 }
  0x2f   :  { %186 = vst.msk [vmem:[#allocation2 + $0x60] sm:$0xff] %vm7060_vm0, %v4791_v0  ;;  %187 = vst.msk [vmem:[#allocation2 + $0x68] sm:$0xff] %vm7060_vm0, %v4791_v0 }
  0x30   :  { %188 = vst.msk [vmem:[#allocation2 + $0x70] sm:$0xff] %vm7060_vm0, %v4791_v0  ;;  %189 = vst.msk [vmem:[#allocation2 + $0x78] sm:$0xff] %vm7060_vm0, %v4791_v0 }
  0x31   :  { %190 = vst.msk [vmem:[#allocation3] sm:$0xff] %vm7060_vm0, %v4792_v1  ;;  %191 = vst.msk [vmem:[#allocation3 + $0x8] sm:$0xff] %vm7060_vm0, %v4792_v1 }
  0x32   :  { %192 = vst.msk [vmem:[#allocation3 + $0x10] sm:$0xff] %vm7060_vm0, %v4792_v1  ;;  %193 = vst.msk [vmem:[#allocation3 + $0x18] sm:$0xff] %vm7060_vm0, %v4792_v1 }
  0x33   :  { %194 = vst.msk [vmem:[#allocation3 + $0x20] sm:$0xff] %vm7060_vm0, %v4792_v1  ;;  %195 = vst.msk [vmem:[#allocation3 + $0x28] sm:$0xff] %vm7060_vm0, %v4792_v1 }
  0x34   :  { %196 = vst.msk [vmem:[#allocation3 + $0x30] sm:$0xff] %vm7060_vm0, %v4792_v1  ;;  %197 = vst.msk [vmem:[#allocation3 + $0x38] sm:$0xff] %vm7060_vm0, %v4792_v1 }
  0x35   :  { %198 = vst.msk [vmem:[#allocation3 + $0x40] sm:$0xff] %vm7060_vm0, %v4792_v1  ;;  %199 = vst.msk [vmem:[#allocation3 + $0x48] sm:$0xff] %vm7060_vm0, %v4792_v1 }
  0x36   :  { %200 = vst.msk [vmem:[#allocation3 + $0x50] sm:$0xff] %vm7060_vm0, %v4792_v1  ;;  %201 = vst.msk [vmem:[#allocation3 + $0x58] sm:$0xff] %vm7060_vm0, %v4792_v1 }
  0x37   :  { %202 = vst.msk [vmem:[#allocation3 + $0x60] sm:$0xff] %vm7060_vm0, %v4792_v1  ;;  %203 = vst.msk [vmem:[#allocation3 + $0x68] sm:$0xff] %vm7060_vm0, %v4792_v1 }
  0x38   :  { %204 = vst.msk [vmem:[#allocation3 + $0x70] sm:$0xff] %vm7060_vm0, %v4792_v1  ;;  %205 = vst.msk [vmem:[#allocation3 + $0x78] sm:$0xff] %vm7060_vm0, %v4792_v1 }
  0x39   :  { %207 = vst.msk [vmem:[#allocation4] sm:$0xff] %vm7059_vm1, %v4792_v1  ;;  %208 = vst.msk [vmem:[#allocation4 + $0x8] sm:$0xff] %vm7059_vm1, %v4792_v1 }
  0x3a   :  { %209 = vst.msk [vmem:[#allocation4 + $0x10] sm:$0xff] %vm7059_vm1, %v4792_v1  ;;  %210 = vst.msk [vmem:[#allocation4 + $0x18] sm:$0xff] %vm7059_vm1, %v4792_v1  ;;  %227 = sbr.rel (%p3724_p3) target bundleno = 1161 (0x489), region = 61 }
  0x3b   :  { %211 = vst.msk [vmem:[#allocation4 + $0x20] sm:$0xff] %vm7059_vm1, %v4792_v1  ;;  %212 = vst.msk [vmem:[#allocation4 + $0x28] sm:$0xff] %vm7059_vm1, %v4792_v1 }
  0x3c   :  { %213 = vst.msk [vmem:[#allocation4 + $0x30] sm:$0xff] %vm7059_vm1, %v4792_v1  ;;  %214 = vst.msk [vmem:[#allocation4 + $0x38] sm:$0xff] %vm7059_vm1, %v4792_v1 }
  0x3d   :  { %215 = vst.msk [vmem:[#allocation4 + $0x40] sm:$0xff] %vm7059_vm1, %v4792_v1  ;;  %216 = vst.msk [vmem:[#allocation4 + $0x48] sm:$0xff] %vm7059_vm1, %v4792_v1 }
  0x3e   :  { %217 = vst.msk [vmem:[#allocation4 + $0x50] sm:$0xff] %vm7059_vm1, %v4792_v1  ;;  %218 = vst.msk [vmem:[#allocation4 + $0x58] sm:$0xff] %vm7059_vm1, %v4792_v1 }
  0x3f   :  { %219 = vst.msk [vmem:[#allocation4 + $0x60] sm:$0xff] %vm7059_vm1, %v4792_v1  ;;  %220 = vst.msk [vmem:[#allocation4 + $0x68] sm:$0xff] %vm7059_vm1, %v4792_v1 }
  0x40   :  { %221 = vst.msk [vmem:[#allocation4 + $0x70] sm:$0xff] %vm7059_vm1, %v4792_v1  ;;  %222 = vst.msk [vmem:[#allocation4 + $0x78] sm:$0xff] %vm7059_vm1, %v4792_v1 }
  0x41   :  { %v247_v2 = vld [vmem:[%s7033_s3 + $0x10] sm:$0xff]  ;;  %v245_v3 = vld [vmem:[%s7033_s3] sm:$0xff]  ;;  %v7053_v4 = vmov 0   ;;  %v248_v5 = vld [vmem:[%s7033_s3 + $0x18] sm:$0xff]  ;;  %v4794_v35 = vmov 1   ;;  %v4795_v36 = vmov 2   ;;  %v444_v48 = vlaneseq }
  0x42   :  { %4564 = vset.pattern.permute.xlu1 %v7053_v4  ;;  %4563 = vset.pattern.permute.xlu0 %v7053_v4  ;;  %v246_v6 = vld [vmem:[%s7033_s3 + $0x8] sm:$0xff]  ;;  %v249_v8 = vld [vmem:[%s7033_s3 + $0x20] sm:$0xff]  ;;  %v252_v9 = vld [vmem:[%s7033_s3 + $0x38] sm:$0xff]  ;;  %v7051_v37 = vmov 3   ;;  %v7045_v51 = vmov 4   ;;  %v7043_v55 = vmov 5  }
  0x43   :  { %274 = vperm.xlu1 %4564, %v247_v2   ;;  %264 = vperm.xlu0 %4563, %v245_v3   ;;  %v250_v7 = vld [vmem:[%s7033_s3 + $0x28] sm:$0xff]  ;;  %v251_v10 = vld [vmem:[%s7033_s3 + $0x30] sm:$0xff]  ;;  %v253_v12 = vld [vmem:[%s7033_s3 + $0x40] sm:$0xff]  ;;  %v5183_v52 = vshrl.u32 %v444_v48, 7  ;;  %s464_s8 = sld [smem:[#allocation9]]  ;;  %v7049_v2 = vmov 6  }
  0x44   :  { %v254_v11 = vld [vmem:[%s7033_s3 + $0x48] sm:$0xff]  ;;  %v256_v13 = vld [vmem:[%s7033_s3 + $0x58] sm:$0xff]  ;;  %v255_v14 = vld [vmem:[%s7033_s3 + $0x50] sm:$0xff]  ;;  %s3727_s14 = sld [smem:[#allocation9 + $0x2]]  ;;  %s3728_s15 = sld [smem:[#allocation9 + $0x3]] }
  0x45   :  { %v258_v15 = vld [vmem:[%s7033_s3 + $0x68] sm:$0xff]  ;;  %v257_v16 = vld [vmem:[%s7033_s3 + $0x60] sm:$0xff]  ;;  %v260_v17 = vld [vmem:[%s7033_s3 + $0x78] sm:$0xff]  ;;  %v446_v56 = vsub.s32 0, %v5183_v52  ;;  %s3729_s16 = sld [smem:[#allocation9 + $0x4]]  ;;  %s5557_s18 = sld [smem:[#allocation9 + $0x5]] }
  0x46   :  { %v259_v18 = vld [vmem:[%s7033_s3 + $0x70] sm:$0xff]  ;;  %v5031_v19 = vld [vmem:[%s7032_s2 + $0x8] sm:$0xff]  ;;  %v5036_v20 = vld [vmem:[%s7032_s2] sm:$0xff]  ;;  %s3731_s10 = sld [smem:[#allocation9 + $0x6]]  ;;  %s3732_s0 = sld [smem:[#allocation9 + $0x7]] }
  0x47   :  { %279 = vperm.xlu1 %4564, %v248_v5   ;;  %269 = vperm.xlu0 %4563, %v246_v6   ;;  %v5043_v21 = vld [vmem:[%s7032_s2 + $0x18] sm:$0xff]  ;;  %v5048_v22 = vld [vmem:[%s7032_s2 + $0x10] sm:$0xff]  ;;  %v5055_v23 = vld [vmem:[%s7032_s2 + $0x28] sm:$0xff] }
  0x48   :  { %v5060_v24 = vld [vmem:[%s7032_s2 + $0x20] sm:$0xff]  ;;  %v5067_v25 = vld [vmem:[%s7032_s2 + $0x38] sm:$0xff]  ;;  %v5072_v26 = vld [vmem:[%s7032_s2 + $0x30] sm:$0xff] }
  0x49   :  { %v5079_v27 = vld [vmem:[%s7032_s2 + $0x48] sm:$0xff]  ;;  %v5084_v28 = vld [vmem:[%s7032_s2 + $0x40] sm:$0xff]  ;;  %v5091_v29 = vld [vmem:[%s7032_s2 + $0x58] sm:$0xff]  ;;  %v5212_v1 = vstv %s464_s8 }
  0x4a   :  { %v5096_v30 = vld [vmem:[%s7032_s2 + $0x50] sm:$0xff]  ;;  %v5103_v31 = vld [vmem:[%s7032_s2 + $0x68] sm:$0xff]  ;;  %v5108_v32 = vld [vmem:[%s7032_s2 + $0x60] sm:$0xff] }
  0x4b   :  { %289 = vperm.xlu1 %4564, %v250_v7   ;;  %284 = vperm.xlu0 %4563, %v249_v8   ;;  %v243_v33 = vld [vmem:[%s7032_s2 + $0x78] sm:$0xff]  ;;  %v5118_v34 = vld [vmem:[%s7032_s2 + $0x70] sm:$0xff]  ;;  %v5194_v57 = vld [vmem:[%s4963_s17] sm:$0xff]  ;;  %s3726_s17 = sld [smem:[#allocation9 + $0x1]] }
  0x4c   :  { %v5202_v60 = vrot.slane %v5194_v57, %v446_v56  ;;  %v5210_v0 = vld [vmem:[%s4958_s13] ss:$0 sm:$0xff] }
  0x4f   :  { %299 = vperm.xlu1 %4564, %v252_v9   ;;  %294 = vperm.xlu0 %4563, %v251_v10  }
  0x53   :  { %309 = vperm.xlu1 %4564, %v254_v11   ;;  %304 = vperm.xlu0 %4563, %v253_v12  }
  0x57   :  { %319 = vperm.xlu1 %4564, %v256_v13   ;;  %314 = vperm.xlu0 %4563, %v255_v14  }
  0x5b   :  { %329 = vperm.xlu1 %4564, %v258_v15   ;;  %324 = vperm.xlu0 %4563, %v257_v16   ;;  %v7047_v15 = vmov 7  }
  0x5f   :  { %339 = vperm.xlu1 %4564, %v260_v17   ;;  %334 = vperm.xlu0 %4563, %v259_v18  }
  0x63   :  { %371 = vperm.xlu1 %4564, %v5031_v19   ;;  %366 = vperm.xlu0 %4563, %v5036_v20  }
  0x67   :  { %381 = vperm.xlu1 %4564, %v5043_v21   ;;  %376 = vperm.xlu0 %4563, %v5048_v22  }
  0x6b   :  { %391 = vperm.xlu1 %4564, %v5055_v23   ;;  %386 = vperm.xlu0 %4563, %v5060_v24  }
  0x6f   :  { %401 = vperm.xlu1 %4564, %v5067_v25   ;;  %396 = vperm.xlu0 %4563, %v5072_v26  }
  0x73   :  { %411 = vperm.xlu1 %4564, %v5079_v27   ;;  %406 = vperm.xlu0 %4563, %v5084_v28  }
  0x77   :  { %421 = vperm.xlu1 %4564, %v5091_v29   ;;  %416 = vperm.xlu0 %4563, %v5096_v30  }
  0x7b   :  { %431 = vperm.xlu1 %4564, %v5103_v31   ;;  %426 = vperm.xlu0 %4563, %v5108_v32  }
  0x7f   :  { %441 = vperm.xlu1 %4564, %v243_v33   ;;  %436 = vperm.xlu0 %4563, %v5118_v34  }
  0x83   :  { %4566 = vset.pattern.permute.xlu1 %v4794_v35  ;;  %4565 = vset.pattern.permute.xlu0 %v4794_v35 }
  0x84   :  { %519 = vperm.xlu1 %4566, %v5031_v19   ;;  %515 = vperm.xlu0 %4565, %v5036_v20  }
  0x88   :  { %523 = vperm.xlu1 %4566, %v5048_v22   ;;  %527 = vperm.xlu0 %4565, %v5043_v21  }
  0x8c   :  { %531 = vperm.xlu1 %4566, %v5060_v24   ;;  %535 = vperm.xlu0 %4565, %v5055_v23  }
  0x90   :  { %539 = vperm.xlu1 %4566, %v5072_v26   ;;  %543 = vperm.xlu0 %4565, %v5067_v25  }
  0x94   :  { %547 = vperm.xlu1 %4566, %v5084_v28   ;;  %551 = vperm.xlu0 %4565, %v5079_v27  }
  0x98   :  { %555 = vperm.xlu1 %4566, %v5096_v30   ;;  %559 = vperm.xlu0 %4565, %v5091_v29  }
  0x9c   :  { %563 = vperm.xlu1 %4566, %v5108_v32   ;;  %567 = vperm.xlu0 %4565, %v5103_v31  }
  0xa0   :  { %571 = vperm.xlu1 %4566, %v5118_v34   ;;  %575 = vperm.xlu0 %4565, %v243_v33  }
  0xa4   :  { %4567 = vset.pattern.permute.xlu1 %v4795_v36  ;;  %4568 = vset.pattern.permute.xlu0 %v4795_v36 }
  0xa5   :  { %649 = vperm.xlu1 %4567, %v5036_v20   ;;  %653 = vperm.xlu0 %4568, %v5031_v19  }
  0xa9   :  { %657 = vperm.xlu1 %4567, %v5048_v22   ;;  %665 = vperm.xlu0 %4568, %v5060_v24  }
  0xad   :  { %661 = vperm.xlu1 %4567, %v5043_v21   ;;  %673 = vperm.xlu0 %4568, %v5072_v26  }
  0xb1   :  { %669 = vperm.xlu1 %4567, %v5055_v23   ;;  %681 = vperm.xlu0 %4568, %v5084_v28  }
  0xb5   :  { %677 = vperm.xlu1 %4567, %v5067_v25   ;;  %689 = vperm.xlu0 %4568, %v5096_v30  }
  0xb9   :  { %685 = vperm.xlu1 %4567, %v5079_v27   ;;  %697 = vperm.xlu0 %4568, %v5108_v32  }
  0xbd   :  { %693 = vperm.xlu1 %4567, %v5091_v29   ;;  %705 = vperm.xlu0 %4568, %v5118_v34  }
  0xc1   :  { %701 = vperm.xlu1 %4567, %v5103_v31   ;;  %4569 = vset.pattern.permute.xlu0 %v7051_v37 }
  0xc2   :  { %v5152_v38 = vpop.permute.xlu1 %274  ;;  %v5154_v39 = vpop.permute.xlu0 %264  ;;  %783 = vperm.xlu0 %4569, %v5036_v20  }
  0xc5   :  { %709 = vperm.xlu1 %4567, %v243_v33  }
  0xc6   :  { %v5157_v40 = vpop.permute.xlu1 %279  ;;  %v270_v41 = vpop.permute.xlu0 %269  ;;  %795 = vperm.xlu0 %4569, %v5043_v21  }
  0xc7   :  { %v349_v3 = vadd.f32 %v5210_v0, %v270_v41 }
  0xc9   :  { %4570 = vset.pattern.permute.xlu1 %v7051_v37 }
  0xca   :  { %v5161_v42 = vpop.permute.xlu1 %289  ;;  %v285_v43 = vpop.permute.xlu0 %284  ;;  %787 = vperm.xlu1 %4570, %v5031_v19   ;;  %803 = vperm.xlu0 %4569, %v5055_v23  }
  0xcb   :  { %v352_v13 = vadd.f32 %v5210_v0, %v285_v43 }
  0xce   :  { %v5165_v44 = vpop.permute.xlu1 %299  ;;  %v295_v45 = vpop.permute.xlu0 %294  ;;  %791 = vperm.xlu1 %4570, %v5048_v22   ;;  %823 = vperm.xlu0 %4569, %v5096_v30  }
  0xcf   :  { %v354_v36 = vadd.f32 %v5210_v0, %v295_v45  ;;  %v355_v56 = vadd.f32 %v5210_v0, %v5165_v44 }
  0xd2   :  { %v5169_v46 = vpop.permute.xlu1 %309  ;;  %v5171_v47 = vpop.permute.xlu0 %304  ;;  %799 = vperm.xlu1 %4570, %v5060_v24   ;;  %827 = vperm.xlu0 %4569, %v5091_v29  }
  0xd6   :  { %v5175_v49 = vpop.permute.xlu1 %319  ;;  %v5177_v50 = vpop.permute.xlu0 %314  ;;  %4571 = vset.pattern.permute.xlu1 %v7045_v51  ;;  %4592 = vset.pattern.permute.xlu0 %v7045_v51 }
  0xd7   :  { %917 = vperm.xlu1 %4571, %v5036_v20   ;;  %921 = vperm.xlu0 %4592, %v5031_v19  }
  0xda   :  { %v5185_v53 = vpop.permute.xlu1 %329  ;;  %v5187_v54 = vpop.permute.xlu0 %324 }
  0xdb   :  { %4572 = vset.pattern.permute.xlu1 %v7043_v55  ;;  %925 = vperm.xlu0 %4592, %v5048_v22  }
  0xdc   :  { %1051 = vperm.xlu1 %4572, %v5036_v20  }
  0xde   :  { %v5196_v58 = vpop.permute.xlu1 %339  ;;  %v5198_v59 = vpop.permute.xlu0 %334 }
  0xdf   :  { %929 = vperm.xlu0 %4592, %v5043_v21  }
  0xe0   :  { %1055 = vperm.xlu1 %4572, %v5031_v19  }
  0xe2   :  { %v372_v61 = vpop.permute.xlu1 %371  ;;  %v5205_v62 = vpop.permute.xlu0 %366 }
  0xe3   :  { %v449_v63 = vadd.f32 %v5202_v60, %v372_v61  ;;  %937 = vperm.xlu0 %4592, %v5055_v23  }
  0xe4   :  { %4573 = vset.pattern.permute.xlu1 %v7049_v2 }
  0xe5   :  { %v466_v5 = vand.u32 2147483647, %v449_v63  ;;  %1185 = vperm.xlu1 %4573, %v5036_v20  }
  0xe6   :  { %v5217_v6 = vpop.permute.xlu1 %381  ;;  %v5219_v7 = vpop.permute.xlu0 %376 }
  0xe7   :  { %v483_v8 = vmul.f32 %v5212_v1, %v466_v5  ;;  %941 = vperm.xlu0 %4592, %v5072_v26  }
  0xe9   :  { %v5223_v9 = vadd.f32 %v483_v8, %v349_v3  ;;  %1189 = vperm.xlu1 %4573, %v5031_v19  }
  0xea   :  { %v5226_v10 = vpop.permute.xlu1 %391  ;;  %v387_v11 = vpop.permute.xlu0 %386 }
  0xeb   :  { %961 = vperm.xlu0 %4592, %v5091_v29   ;;  %v452_v12 = vadd.f32 %v5202_v60, %v387_v11 }
  0xed   :  { %v469_v14 = vand.u32 2147483647, %v452_v12  ;;  %4574 = vset.pattern.permute.xlu1 %v7047_v15  ;;  %v356_v12 = vadd.f32 %v5210_v0, %v5171_v47  ;;  %v358_v47 = vadd.f32 %v5210_v0, %v5177_v50  ;;  %v360_v50 = vadd.f32 %v5210_v0, %v5187_v54 }
  0xee   :  { %v402_v16 = vpop.permute.xlu1 %401  ;;  %1319 = vperm.xlu1 %4574, %v5036_v20   ;;  %v397_v17 = vpop.permute.xlu0 %396 }
  0xef   :  { %v486_v18 = vmul.f32 %v5212_v1, %v469_v14  ;;  %v455_v33 = vadd.f32 %v5202_v60, %v402_v16  ;;  %965 = vperm.xlu0 %4592, %v5108_v32   ;;  %v454_v35 = vadd.f32 %v5202_v60, %v397_v17  ;;  %v357_v17 = vadd.f32 %v5210_v0, %v5169_v46 }
  0xf1   :  { %v5238_v41 = vadd.f32 %v486_v18, %v352_v13  ;;  %v472_v43 = vand.u32 2147483647, %v455_v33  ;;  %v471_v48 = vand.u32 2147483647, %v454_v35 }
  0xf2   :  { %v412_v61 = vpop.permute.xlu1 %411  ;;  %4575 = vset.pattern.permute.xlu1 %v7043_v55  ;;  %v407_v20 = vpop.permute.xlu0 %406 }
  0xf3   :  { %v489_v63 = vmul.f32 %v5212_v1, %v472_v43  ;;  %v488_v3 = vmul.f32 %v5212_v1, %v471_v48  ;;  %v457_v5 = vadd.f32 %v5202_v60, %v412_v61  ;;  %1063 = vperm.xlu1 %4575, %v5043_v21   ;;  %4600 = vset.pattern.permute.xlu0 %v7049_v2 }
  0xf4   :  { %v456_v45 = vadd.f32 %v5202_v60, %v407_v20  ;;  %1205 = vperm.xlu0 %4600, %v5055_v23  }
  0xf5   :  { %v5250_v8 = vadd.f32 %v489_v63, %v355_v56  ;;  %v5252_v44 = vadd.f32 %v488_v3, %v354_v36  ;;  %v474_v11 = vand.u32 2147483647, %v457_v5  ;;  %v359_v56 = vadd.f32 %v5210_v0, %v5175_v49 }
  0xf6   :  { %v473_v13 = vand.u32 2147483647, %v456_v45  ;;  %v422_v14 = vpop.permute.xlu1 %421  ;;  %v417_v16 = vpop.permute.xlu0 %416  ;;  %v580_v49 = vsub.s32 1, %v5183_v52 }
  0xf7   :  { %v491_v18 = vmul.f32 %v5212_v1, %v474_v11  ;;  %v459_v33 = vadd.f32 %v5202_v60, %v422_v14  ;;  %4576 = vset.pattern.permute.xlu1 %v7045_v51  ;;  %v458_v35 = vadd.f32 %v5202_v60, %v417_v16 }
  0xf8   :  { %v490_v36 = vmul.f32 %v5212_v1, %v473_v13  ;;  %933 = vperm.xlu1 %4576, %v5060_v24   ;;  %1209 = vperm.xlu0 %4600, %v5072_v26  }
  0xf9   :  { %v5267_v43 = vadd.f32 %v491_v18, %v357_v17  ;;  %v476_v46 = vand.u32 2147483647, %v459_v33  ;;  %v475_v48 = vand.u32 2147483647, %v458_v35  ;;  %v361_v17 = vadd.f32 %v5210_v0, %v5185_v53 }
  0xfa   :  { %v5271_v61 = vadd.f32 %v490_v36, %v356_v12  ;;  %v432_v20 = vpop.permute.xlu1 %431  ;;  %v427_v63 = vpop.permute.xlu0 %426 }
  0xfb   :  { %v493_v3 = vmul.f32 %v5212_v1, %v476_v46  ;;  %v492_v5 = vmul.f32 %v5212_v1, %v475_v48  ;;  %v461_v45 = vadd.f32 %v5202_v60, %v432_v20  ;;  %v460_v11 = vadd.f32 %v5202_v60, %v427_v63 }
  0xfc   :  { %4577 = vset.pattern.permute.xlu1 %v7049_v2  ;;  %1229 = vperm.xlu0 %4600, %v5091_v29   ;;  %v5297_v48 = vrot.slane %v5194_v57, %v580_v49 }
  0xfd   :  { %v5282_v12 = vadd.f32 %v493_v3, %v359_v56  ;;  %v5284_v13 = vadd.f32 %v492_v5, %v358_v47  ;;  %v478_v14 = vand.u32 2147483647, %v461_v45  ;;  %v477_v16 = vand.u32 2147483647, %v460_v11  ;;  %1193 = vperm.xlu1 %4577, %v5048_v22  }
  0xfe   :  { %v442_v18 = vpop.permute.xlu1 %441  ;;  %v437_v54 = vpop.permute.xlu0 %436  ;;  %v362_v47 = vadd.f32 %v5210_v0, %v5198_v59  ;;  %v363_v3 = vadd.f32 %v5210_v0, %v5196_v58 }
  0xff   :  { %v495_v33 = vmul.f32 %v5212_v1, %v478_v14  ;;  %v494_v35 = vmul.f32 %v5212_v1, %v477_v16  ;;  %v463_v36 = vadd.f32 %v5202_v60, %v442_v18  ;;  %v462_v46 = vadd.f32 %v5202_v60, %v437_v54 }
 0x100   :  { %1233 = vperm.xlu0 %4600, %v5108_v32   ;;  %v5316_v16 = vstv %s3726_s17 }
 0x101   :  { %v5299_v56 = vadd.f32 %v495_v33, %v361_v17  ;;  %v5301_v53 = vadd.f32 %v494_v35, %v360_v50  ;;  %v480_v20 = vand.u32 2147483647, %v463_v36  ;;  %v479_v63 = vand.u32 2147483647, %v462_v46  ;;  %1197 = vperm.xlu1 %4577, %v5043_v21  }
 0x103   :  { %v497_v5 = vmul.f32 %v5212_v1, %v480_v20  ;;  %v496_v59 = vmul.f32 %v5212_v1, %v479_v63  ;;  %v520_v45 = vpop.permute.xlu1 %519  ;;  %v5308_v11 = vpop.permute.xlu0 %515 }
 0x104   :  { %v583_v49 = vadd.f32 %v5297_v48, %v520_v45  ;;  %4608 = vset.pattern.permute.xlu0 %v7043_v55 }
 0x105   :  { %v5312_v50 = vadd.f32 %v497_v5, %v363_v3  ;;  %v5314_v14 = vadd.f32 %v496_v59, %v362_v47  ;;  %4578 = vset.pattern.permute.xlu1 %v7051_v37  ;;  %1059 = vperm.xlu0 %4608, %v5048_v22  }
 0x106   :  { %v600_v58 = vand.u32 2147483647, %v583_v49  ;;  %807 = vperm.xlu1 %4578, %v5072_v26  }
 0x107   :  { %v5321_v17 = vpop.permute.xlu1 %523  ;;  %v5323_v18 = vpop.permute.xlu0 %527 }
 0x108   :  { %v617_v54 = vmul.f32 %v5316_v16, %v600_v58 }
 0x109   :  { %1067 = vperm.xlu0 %4608, %v5060_v24  }
 0x10a   :  { %v5328_v33 = vadd.f32 %v617_v54, %v5223_v9  ;;  %4579 = vset.pattern.permute.xlu1 %v7047_v15 }
 0x10b   :  { %v532_v35 = vpop.permute.xlu1 %531  ;;  %1327 = vperm.xlu1 %4579, %v5048_v22   ;;  %v5332_v36 = vpop.permute.xlu0 %535 }
 0x10c   :  { %v586_v46 = vadd.f32 %v5297_v48, %v532_v35 }
 0x10d   :  { %1071 = vperm.xlu0 %4608, %v5055_v23  }
 0x10e   :  { %v603_v47 = vand.u32 2147483647, %v586_v46 }
 0x10f   :  { %v540_v20 = vpop.permute.xlu1 %539  ;;  %4580 = vset.pattern.permute.xlu1 %v7051_v37  ;;  %v544_v63 = vpop.permute.xlu0 %543 }
 0x110   :  { %v620_v3 = vmul.f32 %v5316_v16, %v603_v47  ;;  %v588_v9 = vadd.f32 %v5297_v48, %v540_v20  ;;  %v589_v5 = vadd.f32 %v5297_v48, %v544_v63  ;;  %811 = vperm.xlu1 %4580, %v5067_v25  }
 0x111   :  { %1091 = vperm.xlu0 %4608, %v5096_v30  }
 0x112   :  { %v5343_v22 = vadd.f32 %v620_v3, %v5238_v41  ;;  %v605_v59 = vand.u32 2147483647, %v588_v9  ;;  %v606_v45 = vand.u32 2147483647, %v589_v5 }
 0x113   :  { %v548_v49 = vpop.permute.xlu1 %547  ;;  %v552_v58 = vpop.permute.xlu0 %551 }
 0x114   :  { %v622_v54 = vmul.f32 %v5316_v16, %v605_v59  ;;  %v623_v35 = vmul.f32 %v5316_v16, %v606_v45  ;;  %v590_v46 = vadd.f32 %v5297_v48, %v548_v49  ;;  %v591_v47 = vadd.f32 %v5297_v48, %v552_v58  ;;  %4581 = vset.pattern.permute.xlu1 %v7047_v15 }
 0x115   :  { %1331 = vperm.xlu1 %4581, %v5043_v21   ;;  %1095 = vperm.xlu0 %4608, %v5091_v29  }
 0x116   :  { %v5353_v41 = vadd.f32 %v622_v54, %v5252_v44  ;;  %v5356_v20 = vadd.f32 %v623_v35, %v5250_v8  ;;  %v607_v63 = vand.u32 2147483647, %v590_v46  ;;  %v608_v3 = vand.u32 2147483647, %v591_v47 }
 0x117   :  { %v556_v9 = vpop.permute.xlu1 %555  ;;  %v560_v5 = vpop.permute.xlu0 %559 }
 0x118   :  { %v624_v59 = vmul.f32 %v5316_v16, %v607_v63  ;;  %v625_v45 = vmul.f32 %v5316_v16, %v608_v3  ;;  %v592_v49 = vadd.f32 %v5297_v48, %v556_v9  ;;  %v593_v21 = vadd.f32 %v5297_v48, %v560_v5 }
 0x119   :  { %4582 = vset.pattern.permute.xlu1 %v7049_v2  ;;  %1107 = vperm.xlu0 %4608, %v5118_v34  }
 0x11a   :  { %v5365_v44 = vadd.f32 %v624_v59, %v5271_v61  ;;  %v5368_v8 = vadd.f32 %v625_v45, %v5267_v43  ;;  %v609_v58 = vand.u32 2147483647, %v592_v49  ;;  %v610_v54 = vand.u32 2147483647, %v593_v21  ;;  %1201 = vperm.xlu1 %4582, %v5060_v24  }
 0x11b   :  { %v564_v35 = vpop.permute.xlu1 %563  ;;  %v568_v46 = vpop.permute.xlu0 %567  ;;  %v714_v61 = vsub.s32 2, %v5183_v52 }
 0x11c   :  { %v626_v47 = vmul.f32 %v5316_v16, %v609_v58  ;;  %v627_v63 = vmul.f32 %v5316_v16, %v610_v54  ;;  %v594_v3 = vadd.f32 %v5297_v48, %v564_v35  ;;  %v595_v9 = vadd.f32 %v5297_v48, %v568_v46 }
 0x11d   :  { %4610 = vset.pattern.permute.xlu0 %v7047_v15  ;;  %v5391_v35 = vrot.slane %v5194_v57, %v714_v61 }
 0x11e   :  { %v5378_v43 = vadd.f32 %v626_v47, %v5284_v13  ;;  %v5381_v5 = vadd.f32 %v627_v63, %v5282_v12  ;;  %v611_v59 = vand.u32 2147483647, %v594_v3  ;;  %v612_v45 = vand.u32 2147483647, %v595_v9  ;;  %4583 = vset.pattern.permute.xlu1 %v7045_v51  ;;  %1323 = vperm.xlu0 %4610, %v5031_v19  }
 0x11f   :  { %v572_v49 = vpop.permute.xlu1 %571  ;;  %945 = vperm.xlu1 %4583, %v5067_v25   ;;  %v576_v21 = vpop.permute.xlu0 %575 }
 0x120   :  { %v628_v58 = vmul.f32 %v5316_v16, %v611_v59  ;;  %v629_v54 = vmul.f32 %v5316_v16, %v612_v45  ;;  %v596_v13 = vadd.f32 %v5297_v48, %v572_v49  ;;  %v597_v12 = vadd.f32 %v5297_v48, %v576_v21 }
 0x122   :  { %v5394_v46 = vadd.f32 %v628_v58, %v5301_v53  ;;  %v5397_v19 = vadd.f32 %v629_v54, %v5299_v56  ;;  %v613_v47 = vand.u32 2147483647, %v596_v13  ;;  %v614_v63 = vand.u32 2147483647, %v597_v12  ;;  %1335 = vperm.xlu0 %4610, %v5060_v24  }
 0x123   :  { %4584 = vset.pattern.permute.xlu1 %v7051_v37  ;;  %v5413_v24 = vstv %s3727_s14 }
 0x124   :  { %v630_v3 = vmul.f32 %v5316_v16, %v613_v47  ;;  %v631_v9 = vmul.f32 %v5316_v16, %v614_v63  ;;  %815 = vperm.xlu1 %4584, %v5084_v28   ;;  %v5404_v61 = vpop.permute.xlu1 %649  ;;  %v654_v59 = vpop.permute.xlu0 %653 }
 0x125   :  { %v717_v53 = vadd.f32 %v5391_v35, %v654_v59 }
 0x126   :  { %v5408_v56 = vadd.f32 %v630_v3, %v5314_v14  ;;  %v5411_v45 = vadd.f32 %v631_v9, %v5312_v50  ;;  %1339 = vperm.xlu0 %4610, %v5055_v23  }
 0x127   :  { %v734_v49 = vand.u32 2147483647, %v717_v53 }
 0x128   :  { %4585 = vset.pattern.permute.xlu1 %v7043_v55  ;;  %v5417_v21 = vpop.permute.xlu1 %657  ;;  %v666_v58 = vpop.permute.xlu0 %665 }
 0x129   :  { %v751_v54 = vmul.f32 %v5413_v24, %v734_v49  ;;  %v720_v13 = vadd.f32 %v5391_v35, %v666_v58  ;;  %1075 = vperm.xlu1 %4585, %v5072_v26  }
 0x12a   :  { %1347 = vperm.xlu0 %4610, %v5067_v25  }
 0x12b   :  { %v5424_v50 = vadd.f32 %v751_v54, %v5328_v33  ;;  %v737_v14 = vand.u32 2147483647, %v720_v13 }
 0x12c   :  { %v5426_v12 = vpop.permute.xlu1 %661  ;;  %v674_v23 = vpop.permute.xlu0 %673 }
 0x12d   :  { %7135 = vst [vmem:[#allocation19_spill] sm:$0xff] %v5424_v50  ;;  %v754_v47 = vmul.f32 %v5413_v24, %v737_v14  ;;  %v722_v63 = vadd.f32 %v5391_v35, %v674_v23  ;;  %4586 = vset.pattern.permute.xlu1 %v7051_v37 }
 0x12e   :  { %819 = vperm.xlu1 %4586, %v5079_v27   ;;  %1359 = vperm.xlu0 %4610, %v5096_v30  }
 0x12f   :  { %v5434_v3 = vadd.f32 %v754_v47, %v5343_v22  ;;  %v739_v9 = vand.u32 2147483647, %v722_v63 }
 0x130   :  { %v5436_v33 = vpop.permute.xlu1 %669  ;;  %v682_v59 = vpop.permute.xlu0 %681 }
 0x131   :  { %v756_v53 = vmul.f32 %v5413_v24, %v739_v9  ;;  %v724_v49 = vadd.f32 %v5391_v35, %v682_v59 }
 0x132   :  { %4587 = vset.pattern.permute.xlu1 %v7043_v55  ;;  %1363 = vperm.xlu0 %4610, %v5091_v29  }
 0x133   :  { %v5443_v58 = vadd.f32 %v756_v53, %v5353_v41  ;;  %v741_v54 = vand.u32 2147483647, %v724_v49  ;;  %1079 = vperm.xlu1 %4587, %v5067_v25  }
 0x134   :  { %v678_v22 = vpop.permute.xlu1 %677  ;;  %v690_v13 = vpop.permute.xlu0 %689 }
 0x135   :  { %7136 = vst [vmem:[#allocation20_spill] sm:$0xff] %v5443_v58  ;;  %v758_v14 = vmul.f32 %v5413_v24, %v741_v54  ;;  %v723_v23 = vadd.f32 %v5391_v35, %v678_v22  ;;  %v726_v47 = vadd.f32 %v5391_v35, %v690_v13 }
 0x136   :  { %1371 = vperm.xlu0 %4610, %v5103_v31  }
 0x137   :  { %v5451_v63 = vadd.f32 %v758_v14, %v5365_v44  ;;  %v740_v29 = vand.u32 2147483647, %v723_v23  ;;  %v743_v9 = vand.u32 2147483647, %v726_v47  ;;  %4588 = vset.pattern.permute.xlu1 %v7045_v51 }
 0x138   :  { %949 = vperm.xlu1 %4588, %v5084_v28   ;;  %v686_v41 = vpop.permute.xlu1 %685  ;;  %v698_v59 = vpop.permute.xlu0 %697 }
 0x139   :  { %7137 = vst [vmem:[#allocation21_spill] sm:$0xff] %v5451_v63  ;;  %v757_v53 = vmul.f32 %v5413_v24, %v740_v29  ;;  %v760_v49 = vmul.f32 %v5413_v24, %v743_v9  ;;  %v725_v54 = vadd.f32 %v5391_v35, %v686_v41  ;;  %v728_v22 = vadd.f32 %v5391_v35, %v698_v59 }
 0x13a   :  { %1375 = vperm.xlu0 %4610, %v5118_v34  }
 0x13b   :  { %v5461_v44 = vadd.f32 %v757_v53, %v5356_v20  ;;  %v5464_v13 = vadd.f32 %v760_v49, %v5378_v43  ;;  %v742_v14 = vand.u32 2147483647, %v725_v54  ;;  %v745_v23 = vand.u32 2147483647, %v728_v22 }
 0x13c   :  { %953 = vperm.xlu1 %4588, %v5079_v27   ;;  %v694_v47 = vpop.permute.xlu1 %693  ;;  %v706_v29 = vpop.permute.xlu0 %705 }
 0x13d   :  { %7138 = vst [vmem:[#allocation22_spill] sm:$0xff] %v5461_v44  ;;  %7139 = vst [vmem:[#allocation23_spill] sm:$0xff] %v5464_v13  ;;  %v759_v9 = vmul.f32 %v5413_v24, %v742_v14  ;;  %v762_v41 = vmul.f32 %v5413_v24, %v745_v23  ;;  %v727_v59 = vadd.f32 %v5391_v35, %v694_v47  ;;  %v7150_v13 = vmov 3  }
 0x13e   :  { %v730_v34 = vadd.f32 %v5391_v35, %v706_v29  ;;  %4616 = vset.pattern.permute.xlu0 %v7053_v4 }
 0x13f   :  { %v5473_v20 = vadd.f32 %v759_v9, %v5368_v8  ;;  %v5476_v43 = vadd.f32 %v762_v41, %v5394_v46  ;;  %v744_v53 = vand.u32 2147483647, %v727_v59 }
 0x140   :  { %v747_v49 = vand.u32 2147483647, %v730_v34  ;;  %4589 = vset.pattern.permute.xlu1 %v7049_v2  ;;  %v702_v54 = vpop.permute.xlu1 %701 }
 0x141   :  { %7140 = vst [vmem:[#allocation24_spill] sm:$0xff] %v5473_v20  ;;  %7141 = vst [vmem:[#allocation25_spill] sm:$0xff] %v5476_v43  ;;  %v761_v22 = vmul.f32 %v5413_v24, %v744_v53  ;;  %v729_v23 = vadd.f32 %v5391_v35, %v702_v54  ;;  %1213 = vperm.xlu1 %4589, %v5067_v25   ;;  %v784_v47 = vpop.permute.xlu0 %783 }
 0x142   :  { %v764_v14 = vmul.f32 %v5413_v24, %v747_v49 }
 0x143   :  { %v5484_v8 = vadd.f32 %v761_v22, %v5381_v5  ;;  %v746_v29 = vand.u32 2147483647, %v729_v23 }
 0x144   :  { %v5487_v46 = vadd.f32 %v764_v14, %v5408_v56  ;;  %v710_v9 = vpop.permute.xlu1 %709 }
 0x145   :  { %v763_v41 = vmul.f32 %v5413_v24, %v746_v29  ;;  %v731_v59 = vadd.f32 %v5391_v35, %v710_v9  ;;  %4590 = vset.pattern.permute.xlu1 %v7043_v55  ;;  %v5492_v34 = vpop.permute.xlu0 %795  ;;  %v1452_v29 = vld [vmem:[%s4973_s22] sm:$0xff] }
 0x146   :  { %7142 = vst [vmem:[#allocation26_spill] sm:$0xff] %v5487_v46  ;;  %1083 = vperm.xlu1 %4590, %v5084_v28   ;;  %vm1456_vm2 = vnez %v1452_v29 }
 0x147   :  { %v5496_v25 = vadd.f32 %v763_v41, %v5397_v19  ;;  %v748_v5 = vand.u32 2147483647, %v731_v59  ;;  %v848_v41 = vsub.s32 3, %v5183_v52 }
 0x149   :  { %7143 = vst [vmem:[#allocation27_spill] sm:$0xff] %v5496_v25  ;;  %v765_v56 = vmul.f32 %v5413_v24, %v748_v5  ;;  %v5499_v53 = vpop.permute.xlu1 %787  ;;  %v5501_v49 = vpop.permute.xlu0 %803  ;;  %v582_v5 = vadd.f32 %v5297_v48, %v5308_v11  ;;  %v5535_v29 = vrot.slane %v5194_v57, %v848_v41  ;;  %v1250_v11 = vsub.s32 6, %v5183_v52 }
 0x14a   :  { %7144 = vst [vmem:[#allocation28_spill] sm:$0xff] %v5499_v53  ;;  %4591 = vset.pattern.permute.xlu1 %v7047_v15  ;;  %v1116_v15 = vsub.s32 5, %v5183_v52  ;;  %v5592_v53 = vstv %s3731_s10 }
 0x14b   :  { %v5505_v54 = vadd.f32 %v765_v56, %v5411_v45  ;;  %1343 = vperm.xlu1 %4591, %v5072_v26   ;;  %v448_v45 = vadd.f32 %v5202_v60, %v5205_v62  ;;  %v982_v56 = vsub.s32 4, %v5183_v52  ;;  %v5532_v62 = vsel %vm1456_vm2, 16843009, %v7053_v4 }
 0x14c   :  { %7148 = vst [vmem:[#allocation32_spill] sm:$0xff] %v5532_v62  ;;  %v716_v4 = vadd.f32 %v5391_v35, %v5404_v61  ;;  %v850_v46 = vadd.f32 %v5535_v29, %v784_v47  ;;  %v5555_v20 = vrot.slane %v5194_v57, %v1116_v15 }
 0x14d   :  { %7145 = vst [vmem:[#allocation29_spill] sm:$0xff] %v5505_v54  ;;  %v5508_v22 = vpop.permute.xlu1 %791  ;;  %v5510_v14 = vpop.permute.xlu0 %823  ;;  %v465_v59 = vand.u32 2147483647, %v448_v45  ;;  %v348_v45 = vadd.f32 %v5210_v0, %v5154_v39  ;;  %v599_v54 = vand.u32 2147483647, %v582_v5  ;;  %v5546_v25 = vrot.slane %v5194_v57, %v982_v56 }
 0x14e   :  { %7146 = vst [vmem:[#allocation30_spill] sm:$0xff] %v5510_v14  ;;  %v733_v43 = vand.u32 2147483647, %v716_v4  ;;  %v867_v15 = vand.u32 2147483647, %v850_v46  ;;  %v1384_v4 = vsub.s32 7, %v5183_v52 }
 0x14f   :  { %4593 = vset.pattern.permute.xlu1 %v7043_v55  ;;  %v482_v37 = vmul.f32 %v5212_v1, %v465_v59  ;;  %v5560_v59 = vrot.slane %v5194_v57, %v1250_v11  ;;  %v616_v56 = vmul.f32 %v5316_v16, %v599_v54  ;;  %v7151_v46 = vmov 7  }
 0x150   :  { %1087 = vperm.xlu1 %4593, %v5079_v27  }
 0x151   :  { %v5514_v19 = vpop.permute.xlu1 %799  ;;  %v828_v23 = vpop.permute.xlu0 %827  ;;  %v498_v5 = vadd.f32 %v482_v37, %v348_v45 }
 0x152   :  { %v861_v47 = vadd.f32 %v5535_v29, %v828_v23 }
 0x153   :  { %v632_v54 = vadd.f32 %v616_v56, %v498_v5  ;;  %v5589_v56 = vrot.slane %v5194_v57, %v1384_v4 }
 0x154   :  { %4594 = vset.pattern.permute.xlu1 %v7045_v51 }
 0x155   :  { %957 = vperm.xlu1 %4594, %v5096_v30  }
 0x156   :  { %v918_v26 = vpop.permute.xlu1 %917  ;;  %v5521_v9 = vpop.permute.xlu0 %921 }
 0x157   :  { %7147 = vst [vmem:[#allocation31_spill] sm:$0xff] %v5521_v9  ;;  %v984_v63 = vadd.f32 %v5546_v25, %v918_v26  ;;  %v750_v26 = vmul.f32 %v5413_v24, %v733_v43  ;;  %v5577_v9 = vstv %s3729_s16 }
 0x159   :  { %4595 = vset.pattern.permute.xlu1 %v7049_v2  ;;  %v1464_v2 = vunpack.c.0.s8 %v5532_v62  ;;  %v1001_v45 = vand.u32 2147483647, %v984_v63  ;;  %v766_v63 = vadd.f32 %v750_v26, %v632_v54 }
 0x15a   :  { %1217 = vperm.xlu1 %4595, %v5084_v28   ;;  %v5529_v55 = vpop.permute.xlu0 %925 }
 0x15b   :  { %v1052_v51 = vpop.permute.xlu1 %1051  ;;  %v1480_v61 = vpack.c.b16 %v1464_v2, %v1464_v2  ;;  %v5570_v2 = vstv %s3728_s15  ;;  %v1018_v43 = vmul.f32 %v5577_v9, %v1001_v45 }
 0x15c   :  { %v1118_v11 = vadd.f32 %v5555_v20, %v1052_v51  ;;  %v884_v51 = vmul.f32 %v5570_v2, %v867_v15 }
 0x15d   :  { %v1481_v37 = vpack.c.b8 %v1480_v61, %v1480_v61  ;;  %v5585_v61 = vstv %s5557_s18 }
 0x15e   :  { %1221 = vperm.xlu1 %4595, %v5079_v27   ;;  %v5549_v41 = vpop.permute.xlu0 %929  ;;  %v1135_v44 = vand.u32 2147483647, %v1118_v11 }
 0x15f   :  { %v5551_v39 = vpop.permute.xlu1 %1055  ;;  %vm1512_vm3 = vnez %v1481_v37  ;;  %v7153_v37 = vmov 0  }
 0x160   :  { %7149 = vst [vmem:[#allocation33_spill] sm:$0xff] %v5551_v39  ;;  %v1152_v11 = vmul.f32 %v5585_v61, %v1135_v44  ;;  %v1528_v54 = vsel %vm1512_vm3, 16843009, %v7153_v37  ;;  %v5605_v44 = vstv %s3732_s0 }
 0x162   :  { %4596 = vset.pattern.permute.xlu1 %v7150_v13  ;;  %v5565_v50 = vpop.permute.xlu0 %937 }
 0x163   :  { %831 = vperm.xlu1 %4596, %v5108_v32   ;;  %v878_v32 = vand.u32 2147483647, %v861_v47 }
 0x164   :  { %v1186_v14 = vpop.permute.xlu1 %1185 }
 0x165   :  { %v1252_v39 = vadd.f32 %v5560_v59, %v1186_v14  ;;  %v895_v47 = vmul.f32 %v5570_v2, %v878_v32 }
 0x166   :  { %v5575_v23 = vpop.permute.xlu0 %941 }
 0x167   :  { %4597 = vset.pattern.permute.xlu1 %v7151_v46  ;;  %v1269_v14 = vand.u32 2147483647, %v1252_v39 }
 0x168   :  { %1351 = vperm.xlu1 %4597, %v5084_v28   ;;  %v5582_v52 = vpop.permute.xlu1 %1189  ;;  %v900_v28 = vadd.f32 %v884_v51, %v766_v63  ;;  %v1544_v63 = vunpack.c.0.s8 %v1528_v54  ;;  %v7158_v54 = vmov 6  }
 0x169   :  { %7152 = vst [vmem:[#allocation34_spill] sm:$0xff] %v5582_v52  ;;  %v1286_v57 = vmul.f32 %v5592_v53, %v1269_v14 }
 0x16a   :  { %v962_v5 = vpop.permute.xlu0 %961  ;;  %v1034_v45 = vadd.f32 %v1018_v43, %v900_v28  ;;  %vm5616_vm4 = vcmp.ne.s32.totalorder %v1544_v63, 0 }
 0x16b   :  { %v995_v15 = vadd.f32 %v5546_v25, %v962_v5  ;;  %v911_v5 = vadd.f32 %v895_v47, %v5484_v8  ;;  %v7155_v8 = vmov 0 }
 0x16c   :  { %4598 = vset.pattern.permute.xlu1 %v7150_v13  ;;  %v1168_v52 = vadd.f32 %v1152_v11, %v1034_v45  ;;  %v7156_v8 = vsel %vm5616_vm4, 4294967295, %v7155_v8  ;;  %v450_v11 = vadd.f32 %v5202_v60, %v5219_v7  ;;  %v1466_v45 = vunpack.c.2.s8 %v5532_v62 }
 0x16d   :  { %v1012_v26 = vand.u32 2147483647, %v995_v15  ;;  %835 = vperm.xlu1 %4598, %v5103_v31   ;;  %v1320_v39 = vpop.permute.xlu1 %1319  ;;  %7157 = vst [vmem:[#allocation36_spill] sm:$0xff] %v7156_v8  ;;  %v718_v7 = vadd.f32 %v5391_v35, %v5417_v21  ;;  %v986_v21 = vadd.f32 %v5546_v25, %v5529_v55 }
 0x16e   :  { %v1386_v4 = vadd.f32 %v5589_v56, %v1320_v39  ;;  %v5601_v32 = vpop.permute.xlu0 %965  ;;  %v1302_v28 = vadd.f32 %v1286_v57, %v1168_v52  ;;  %v467_v57 = vand.u32 2147483647, %v450_v11 }
 0x16f   :  { %7154 = vst [vmem:[#allocation35_spill] sm:$0xff] %v5601_v32  ;;  %v1029_v51 = vmul.f32 %v5577_v9, %v1012_v26  ;;  %v1003_v32 = vand.u32 2147483647, %v986_v21 }
 0x170   :  { %v1403_v58 = vand.u32 2147483647, %v1386_v4  ;;  %v451_v4 = vadd.f32 %v5202_v60, %v5217_v6  ;;  %v854_v6 = vadd.f32 %v5535_v29, %v5514_v19  ;;  %v585_v19 = vadd.f32 %v5297_v48, %v5323_v18 }
 0x171   :  { %v5607_v15 = vadd.f32 %v1029_v51, %v911_v5  ;;  %4599 = vset.pattern.permute.xlu1 %v7151_v46  ;;  %v7161_v51 = vmov 4   ;;  %v1467_v18 = vunpack.c.3.s8 %v5532_v62 }
 0x172   :  { %v1420_v43 = vmul.f32 %v5605_v44, %v1403_v58  ;;  %1355 = vperm.xlu1 %4599, %v5079_v27   ;;  %v5612_v14 = vpop.permute.xlu1 %1063  ;;  %v584_v27 = vadd.f32 %v5297_v48, %v5321_v17  ;;  %v852_v17 = vadd.f32 %v5535_v29, %v5508_v22  ;;  %v350_v22 = vadd.f32 %v5210_v0, %v5152_v38  ;;  %v5660_v38 = vld [vmem:[%s7032_s2 + $0x70] sm:$0xff] }
 0x173   :  { %v5614_v39 = vpop.permute.xlu0 %1205  ;;  %v468_v11 = vand.u32 2147483647, %v451_v4  ;;  %v871_v4 = vand.u32 2147483647, %v854_v6 }
 0x174   :  { %v1436_v47 = vadd.f32 %v1420_v43, %v1302_v28  ;;  %v601_v5 = vand.u32 2147483647, %v584_v27  ;;  %v1484_v43 = vpack.c.b16 %v1466_v45, %v1466_v45  ;;  %v484_v28 = vmul.f32 %v5212_v1, %v467_v57 }
 0x175   :  { %v869_v8 = vand.u32 2147483647, %v852_v17 }
 0x176   :  { %4601 = vset.pattern.permute.xlu1 %v7158_v54  ;;  %v5625_v58 = vsel %vm5616_vm4, %v1436_v47, -1e+30  ;;  %v735_v47 = vand.u32 2147483647, %v718_v7  ;;  %v618_v27 = vmul.f32 %v5316_v16, %v601_v5  ;;  %v1485_v57 = vpack.c.b8 %v1484_v43, %v1484_v43 }
 0x177   :  { %7159 = vst [vmem:[#allocation37_spill] sm:$0xff] %v5625_v58  ;;  %1225 = vperm.xlu1 %4601, %v5096_v30   ;;  %v934_v52 = vpop.permute.xlu1 %933  ;;  %1608 = vmax.xlane.f32.xlu0 %v5625_v58  ;;  %v5631_v26 = vpop.permute.xlu0 %1209  ;;  %v500_v7 = vadd.f32 %v484_v28, %v350_v22  ;;  %v485_v5 = vmul.f32 %v5212_v1, %v468_v11  ;;  %v7165_v11 = vmov 5  }
 0x178   :  { %7160 = vst [vmem:[#allocation38_spill] sm:$0xff] %v5631_v26  ;;  %v752_v55 = vmul.f32 %v5413_v24, %v735_v47  ;;  %v886_v43 = vmul.f32 %v5570_v2, %v869_v8  ;;  %v719_v28 = vadd.f32 %v5391_v35, %v5426_v12  ;;  %vm5671_vm5 = vnez %v1485_v57  ;;  %v5688_v57 = vld [vmem:[%s7032_s2 + $0x60] sm:$0xff] }
 0x179   :  { %v634_v17 = vadd.f32 %v618_v27, %v500_v7  ;;  %v602_v12 = vand.u32 2147483647, %v585_v19  ;;  %v853_v27 = vadd.f32 %v5535_v29, %v5492_v34  ;;  %v987_v34 = vadd.f32 %v5546_v25, %v5549_v41 }
 0x17a   :  { %v736_v19 = vand.u32 2147483647, %v719_v28  ;;  %v1121_v41 = vadd.f32 %v5555_v20, %v5612_v14 }
 0x17b   :  { %4602 = vset.pattern.permute.xlu1 %v7161_v51  ;;  %v5641_v30 = vpop.permute.xlu0 %1229  ;;  %v768_v6 = vadd.f32 %v752_v55, %v634_v17  ;;  %v1530_v55 = vsel %vm5671_vm5, 16843009, %v7153_v37 }
 0x17c   :  { %969 = vperm.xlu1 %4602, %v5103_v31   ;;  %v1194_v63 = vpop.permute.xlu1 %1193  ;;  %v988_v31 = vadd.f32 %v5546_v25, %v934_v52  ;;  %v351_v52 = vadd.f32 %v5210_v0, %v5157_v40 }
 0x17d   :  { %v1254_v40 = vadd.f32 %v5560_v59, %v1194_v63  ;;  %v902_v63 = vadd.f32 %v886_v43, %v768_v6  ;;  %v870_v43 = vand.u32 2147483647, %v853_v27  ;;  %v1546_v6 = vunpack.c.0.s8 %v1530_v55 }
 0x17e   :  { %v1005_v47 = vand.u32 2147483647, %v988_v31  ;;  %v888_v31 = vmul.f32 %v5570_v2, %v871_v4 }
 0x17f   :  { %v5652_v58 = vpop.permute.xlu0 %1233  ;;  %v1271_v26 = vand.u32 2147483647, %v1254_v40  ;;  %v5708_v40 = vld [vmem:[%s7032_s2 + $0x78] sm:$0xff]  ;;  %vm5721_vm6 = vcmp.ne.s32.totalorder %v1546_v6, 0 }
 0x180   :  { %7162 = vst [vmem:[#allocation39_spill] sm:$0xff] %v5652_v58  ;;  %4603 = vset.pattern.permute.xlu1 %v7150_v13  ;;  %v1198_v45 = vpop.permute.xlu1 %1197  ;;  %v1020_v58 = vmul.f32 %v5577_v9, %v1003_v32  ;;  %v501_v32 = vadd.f32 %v485_v5, %v351_v52  ;;  %v1022_v4 = vmul.f32 %v5577_v9, %v1005_v47 }
 0x181   :  { %839 = vperm.xlu1 %4603, %v5660_v38   ;;  %v619_v5 = vmul.f32 %v5316_v16, %v602_v12  ;;  %v904_v22 = vadd.f32 %v888_v31, %v5434_v3  ;;  %v753_v3 = vmul.f32 %v5413_v24, %v736_v19  ;;  %v1288_v14 = vmul.f32 %v5592_v53, %v1271_v26 }
 0x182   :  { %v1036_v62 = vadd.f32 %v1020_v58, %v902_v63  ;;  %v1453_v63 = vld [vmem:[%s4973_s22 + $0x8] sm:$0xff] }
 0x183   :  { %v635_v55 = vadd.f32 %v619_v5, %v501_v32  ;;  %vm1457_vm8 = vnez %v1453_v63  ;;  %v1263_v5 = vadd.f32 %v5560_v59, %v5641_v30  ;;  %v721_v30 = vadd.f32 %v5391_v35, %v5436_v33 }
 0x184   :  { %v1060_v21 = vpop.permute.xlu0 %1059  ;;  %v855_v35 = vadd.f32 %v5535_v29, %v5501_v49 }
 0x185   :  { %v1120_v0 = vadd.f32 %v5555_v20, %v1060_v21  ;;  %4604 = vset.pattern.permute.xlu1 %v7165_v11  ;;  %v5680_v8 = vpop.permute.xlu1 %807  ;;  %v1486_v21 = vpack.c.b16 %v1467_v18, %v1467_v18 }
 0x186   :  { %1099 = vperm.xlu1 %4604, %v5688_v57  }
 0x187   :  { %v1137_v7 = vand.u32 2147483647, %v1120_v0  ;;  %v1038_v0 = vadd.f32 %v1022_v4, %v904_v22  ;;  %v1487_v27 = vpack.c.b8 %v1486_v21, %v1486_v21 }
 0x188   :  { %v1068_v17 = vpop.permute.xlu0 %1067 }
 0x189   :  { %v1154_v46 = vmul.f32 %v5585_v61, %v1137_v7  ;;  %v1122_v52 = vadd.f32 %v5555_v20, %v1068_v17  ;;  %v453_v7 = vadd.f32 %v5202_v60, %v5226_v10  ;;  %v887_v17 = vmul.f32 %v5570_v2, %v870_v43  ;;  %v5735_v10 = vld [vmem:[%s7032_s2 + $0x68] sm:$0xff] }
 0x18a   :  { %4605 = vset.pattern.permute.xlu1 %v7150_v13  ;;  %v1328_v28 = vpop.permute.xlu1 %1327  ;;  %v1004_v13 = vand.u32 2147483647, %v987_v34  ;;  %v1138_v34 = vand.u32 2147483647, %v1121_v41  ;;  %vm1515_vm7 = vnez %v1487_v27  ;;  %v1280_v27 = vand.u32 2147483647, %v1263_v5 }
 0x18b   :  { %v1170_v47 = vadd.f32 %v1154_v46, %v1036_v62  ;;  %v1139_v58 = vand.u32 2147483647, %v1122_v52  ;;  %v1388_v18 = vadd.f32 %v5589_v56, %v1328_v28  ;;  %843 = vperm.xlu1 %4605, %v5708_v40   ;;  %v1255_v62 = vadd.f32 %v5560_v59, %v1198_v45 }
 0x18c   :  { %v5712_v12 = vpop.permute.xlu0 %1071  ;;  %v769_v52 = vadd.f32 %v753_v3, %v635_v55  ;;  %v1021_v60 = vmul.f32 %v5577_v9, %v1004_v13  ;;  %v587_v28 = vadd.f32 %v5297_v48, %v5332_v36  ;;  %v1155_v41 = vmul.f32 %v5585_v61, %v1138_v34 }
 0x18d   :  { %v1156_v46 = vmul.f32 %v5585_v61, %v1139_v58  ;;  %v1405_v31 = vand.u32 2147483647, %v1388_v18  ;;  %v1304_v21 = vadd.f32 %v1288_v14, %v1170_v47  ;;  %v1272_v43 = vand.u32 2147483647, %v1255_v62 }
 0x18e   :  { %v903_v6 = vadd.f32 %v887_v17, %v769_v52  ;;  %v1531_v58 = vsel %vm1515_vm7, 16843009, %v7153_v37  ;;  %v5751_v18 = vsel %vm1457_vm8, 16843009, %v7153_v37  ;;  %v470_v3 = vand.u32 2147483647, %v453_v7 }
 0x18f   :  { %v5725_v4 = vadd.f32 %v1156_v46, %v1038_v0  ;;  %v1422_v26 = vmul.f32 %v5605_v44, %v1405_v31  ;;  %4606 = vset.pattern.permute.xlu1 %v7165_v11  ;;  %v5729_v45 = vpop.permute.xlu1 %811  ;;  %v1469_v0 = vunpack.c.1.s8 %v5751_v18  ;;  %v1289_v14 = vmul.f32 %v5592_v53, %v1272_v43 }
 0x190   :  { %1103 = vperm.xlu1 %4606, %v5735_v10   ;;  %v5738_v32 = vpop.permute.xlu0 %1091  ;;  %v1037_v13 = vadd.f32 %v1021_v60, %v903_v6  ;;  %v604_v31 = vand.u32 2147483647, %v587_v28  ;;  %v1547_v33 = vunpack.c.0.s8 %v1531_v58  ;;  %v487_v34 = vmul.f32 %v5212_v1, %v470_v3 }
 0x191   :  { %v1438_v22 = vadd.f32 %v1422_v26, %v1304_v21  ;;  %v738_v26 = vand.u32 2147483647, %v721_v30  ;;  %v989_v21 = vadd.f32 %v5546_v25, %v5565_v50  ;;  %v1490_v60 = vpack.c.b16 %v1469_v0, %v1469_v0 }
 0x192   :  { %v1171_v7 = vadd.f32 %v1155_v41, %v1037_v13  ;;  %v1297_v5 = vmul.f32 %v5592_v53, %v1280_v27  ;;  %v621_v1 = vmul.f32 %v5316_v16, %v604_v31  ;;  %v872_v28 = vand.u32 2147483647, %v855_v35 }
 0x193   :  { %v5747_v47 = vsel %vm5721_vm6, %v1438_v22, -1e+30  ;;  %v1123_v50 = vadd.f32 %v5555_v20, %v5712_v12  ;;  %vm5780_vm9 = vcmp.ne.s32.totalorder %v1547_v33, 0  ;;  %v755_v30 = vmul.f32 %v5413_v24, %v738_v26  ;;  %v7171_v26 = vld [vmem:[#allocation38_spill] sm:$0xff] }
 0x194   :  { %4607 = vset.pattern.permute.xlu1 %v7161_v51  ;;  %v1332_v48 = vpop.permute.xlu1 %1331  ;;  %1612 = vmax.xlane.f32.xlu0 %v5747_v47  ;;  %v1096_v36 = vpop.permute.xlu0 %1095  ;;  %v4685_v51 = vld [vmem:[%s4958_s13] ss:$0 sm:$0xff]  ;;  %v1305_v22 = vadd.f32 %v1289_v14, %v1171_v7  ;;  %v1006_v13 = vand.u32 2147483647, %v989_v21  ;;  %v889_v27 = vmul.f32 %v5570_v2, %v872_v28  ;;  %v1257_v24 = vadd.f32 %v5560_v59, %v5614_v39 }
 0x195   :  { %v1389_v62 = vadd.f32 %v5589_v56, %v1332_v48  ;;  %v1129_v46 = vadd.f32 %v5555_v20, %v1096_v36  ;;  %973 = vperm.xlu1 %4607, %v5660_v38   ;;  %v353_v63 = vadd.f32 %v4685_v51, %v5161_v42  ;;  %v856_v48 = vadd.f32 %v5535_v29, %v5680_v8 }
 0x196   :  { %v1491_v36 = vpack.c.b8 %v1490_v60, %v1490_v60  ;;  %v1140_v14 = vand.u32 2147483647, %v1123_v50  ;;  %v990_v31 = vadd.f32 %v5546_v25, %v5575_v23  ;;  %v7170_v7 = vmov 7  }
 0x197   :  { %v1406_v55 = vand.u32 2147483647, %v1389_v62  ;;  %v1146_v17 = vand.u32 2147483647, %v1129_v46  ;;  %v503_v3 = vadd.f32 %v487_v34, %v353_v63  ;;  %v1023_v46 = vmul.f32 %v5577_v9, %v1006_v13 }
 0x198   :  { %v5769_v52 = vpop.permute.xlu0 %1107  ;;  %v873_v35 = vand.u32 2147483647, %v856_v48  ;;  %vm1517_vm10 = vnez %v1491_v36  ;;  %v1274_v63 = vand.u32 2147483647, %v1257_v24  ;;  %v1157_v39 = vmul.f32 %v5585_v61, %v1140_v14 }
 0x199   :  { %v1423_v49 = vmul.f32 %v5605_v44, %v1406_v55  ;;  %v1163_v43 = vmul.f32 %v5585_v61, %v1146_v17  ;;  %977 = vperm.xlu1 %4607, %v5708_v40   ;;  %v5775_v42 = vpop.permute.xlu1 %1201  ;;  %v1533_v17 = vsel %vm1517_vm10, 16843009, %v7153_v37  ;;  %v1007_v34 = vand.u32 2147483647, %v990_v31 }
 0x19a   :  { %v1258_v23 = vadd.f32 %v5560_v59, %v7171_v26  ;;  %v890_v21 = vmul.f32 %v5570_v2, %v873_v35 }
 0x19b   :  { %v1179_v41 = vadd.f32 %v1163_v43, %v5607_v15  ;;  %v1439_v58 = vadd.f32 %v1423_v49, %v1305_v22  ;;  %v637_v15 = vadd.f32 %v621_v1, %v503_v3  ;;  %v1024_v28 = vmul.f32 %v5577_v9, %v1007_v34 }
 0x19c   :  { %v1275_v50 = vand.u32 2147483647, %v1258_v23 }
 0x19d   :  { %4609 = vset.pattern.permute.xlu1 %v7158_v54  ;;  %v5789_v16 = vpop.permute.xlu0 %1323  ;;  %v5793_v12 = vsel %vm5780_vm9, %v1439_v58, -1e+30  ;;  %v5795_v0 = vadd.f32 %v1297_v5, %v1179_v41  ;;  %v771_v62 = vadd.f32 %v755_v30, %v637_v15  ;;  %v1291_v5 = vmul.f32 %v5592_v53, %v1274_v63  ;;  %v7172_v41 = vld [vmem:[#allocation20_spill] sm:$0xff] }
 0x19e   :  { %1237 = vperm.xlu1 %4609, %v5735_v10   ;;  %v946_v8 = vpop.permute.xlu1 %945  ;;  %1614 = vmax.xlane.f32.xlu0 %v5793_v12  ;;  %v906_v58 = vadd.f32 %v890_v21, %v7172_v41  ;;  %v1292_v15 = vmul.f32 %v5592_v53, %v1275_v50 }
 0x19f   :  { %v905_v51 = vadd.f32 %v889_v27, %v771_v62  ;;  %v991_v63 = vadd.f32 %v5546_v25, %v946_v8  ;;  %v7175_v8 = vld [vmem:[#allocation28_spill] sm:$0xff] }
 0x1a0   :  { %v1040_v27 = vadd.f32 %v1024_v28, %v906_v58 }
 0x1a1   :  { %v5805_v33 = vpop.permute.xlu0 %1335  ;;  %v1039_v55 = vadd.f32 %v1023_v46, %v905_v51  ;;  %v857_v51 = vadd.f32 %v5535_v29, %v5729_v45  ;;  %v1008_v26 = vand.u32 2147483647, %v991_v63 }
 0x1a2   :  { %4611 = vset.pattern.permute.xlu1 %v7170_v7 }
 0x1a3   :  { %1367 = vperm.xlu1 %4611, %v5688_v57   ;;  %v5810_v10 = vpop.permute.xlu1 %815  ;;  %v1173_v49 = vadd.f32 %v1157_v39, %v1039_v55  ;;  %v1549_v57 = vunpack.c.0.s8 %v1533_v17  ;;  %v874_v55 = vand.u32 2147483647, %v857_v51 }
 0x1a5   :  { %v1340_v60 = vpop.permute.xlu0 %1339  ;;  %v1307_v13 = vadd.f32 %v1291_v5, %v1173_v49  ;;  %vm5824_vm11 = vcmp.ne.s32.totalorder %v1549_v57, 0  ;;  %v891_v45 = vmul.f32 %v5570_v2, %v874_v55  ;;  %v851_v5 = vadd.f32 %v5535_v29, %v7175_v8  ;;  %v7176_v57 = vld [vmem:[#allocation32_spill] sm:$0xff] }
 0x1a6   :  { %v1391_v43 = vadd.f32 %v5589_v56, %v1340_v60 }
 0x1a7   :  { %4612 = vset.pattern.permute.xlu1 %v7165_v11 }
 0x1a8   :  { %v1408_v22 = vand.u32 2147483647, %v1391_v43  ;;  %1111 = vperm.xlu1 %4612, %v5708_v40   ;;  %v1076_v1 = vpop.permute.xlu1 %1075 }
 0x1a9   :  { %v1124_v3 = vadd.f32 %v5555_v20, %v1076_v1  ;;  %v1348_v21 = vpop.permute.xlu0 %1347  ;;  %v7177_v1 = vld [vmem:[#allocation22_spill] sm:$0xff] }
 0x1aa   :  { %v1425_v30 = vmul.f32 %v5605_v44, %v1408_v22  ;;  %v1465_v22 = vunpack.c.1.s8 %v7176_v57  ;;  %v907_v28 = vadd.f32 %v891_v45, %v7177_v1  ;;  %v1256_v1 = vadd.f32 %v5560_v59, %v5775_v42 }
 0x1ab   :  { %v1141_v48 = vand.u32 2147483647, %v1124_v3  ;;  %v7178_v3 = vld [vmem:[#allocation31_spill] sm:$0xff]  ;;  %v1390_v42 = vadd.f32 %v5589_v56, %v5805_v33 }
 0x1ac   :  { %4613 = vset.pattern.permute.xlu1 %v7158_v54  ;;  %v1441_v11 = vadd.f32 %v1425_v30, %v1307_v13  ;;  %v1471_v54 = vunpack.c.3.s8 %v5751_v18  ;;  %v985_v30 = vadd.f32 %v5546_v25, %v7178_v3 }
 0x1ad   :  { %v1158_v24 = vmul.f32 %v5585_v61, %v1141_v48  ;;  %1241 = vperm.xlu1 %4613, %v5660_v38   ;;  %v5832_v14 = vpop.permute.xlu1 %819 }
 0x1ae   :  { %v5836_v62 = vsel %vm5824_vm11, %v1441_v11, -1e+30  ;;  %v1494_v38 = vpack.c.b16 %v1471_v54, %v1471_v54  ;;  %v868_v11 = vand.u32 2147483647, %v851_v5  ;;  %v1002_v55 = vand.u32 2147483647, %v985_v30 }
 0x1af   :  { %v1174_v46 = vadd.f32 %v1158_v24, %v1040_v27  ;;  %1618 = vmax.xlane.f32.xlu0 %v5836_v62  ;;  %v1482_v27 = vpack.c.b16 %v1465_v22, %v1465_v22  ;;  %v1468_v24 = vunpack.c.0.s8 %v5751_v18  ;;  %v1387_v5 = vadd.f32 %v5589_v56, %v5789_v16 }
 0x1b0   :  { %v1495_v34 = vpack.c.b8 %v1494_v38, %v1494_v38  ;;  %v1019_v57 = vmul.f32 %v5577_v9, %v1002_v55 }
 0x1b1   :  { %1245 = vperm.xlu1 %4613, %v5708_v40   ;;  %v5841_v31 = vadd.f32 %v1292_v15, %v1174_v46  ;;  %v7179_v46 = vld [vmem:[#allocation33_spill] sm:$0xff]  ;;  %v1483_v45 = vpack.c.b8 %v1482_v27, %v1482_v27 }
 0x1b2   :  { %v1080_v35 = vpop.permute.xlu1 %1079  ;;  %vm1519_vm12 = vnez %v1495_v34  ;;  %v1119_v54 = vadd.f32 %v5555_v20, %v7179_v46 }
 0x1b3   :  { %v1125_v17 = vadd.f32 %v5555_v20, %v1080_v35  ;;  %v1535_v43 = vsel %vm1519_vm12, 16843009, %v7153_v37  ;;  %vm1513_vm14 = vnez %v1483_v45 }
 0x1b4   :  { %v1551_v15 = vunpack.c.0.s8 %v1535_v43  ;;  %v1136_v8 = vand.u32 2147483647, %v1119_v54  ;;  %v1128_v54 = vadd.f32 %v5555_v20, %v5738_v32 }
 0x1b5   :  { %4614 = vset.pattern.permute.xlu1 %v7170_v7  ;;  %v1393_v7 = vadd.f32 %v5589_v56, %v1348_v21  ;;  %v1142_v60 = vand.u32 2147483647, %v1125_v17  ;;  %v7180_v17 = vld [vmem:[#allocation34_spill] sm:$0xff] }
 0x1b6   :  { %1379 = vperm.xlu1 %4614, %v5708_v40   ;;  %v1025_v40 = vmul.f32 %v5577_v9, %v1008_v26  ;;  %v1253_v34 = vadd.f32 %v5560_v59, %v7180_v17  ;;  %vm5875_vm13 = vcmp.ne.s32.totalorder %v1551_v15, 0  ;;  %v1153_v30 = vmul.f32 %v5585_v61, %v1136_v8 }
 0x1b7   :  { %v5848_v39 = vpop.permute.xlu1 %949  ;;  %v1410_v50 = vand.u32 2147483647, %v1393_v7  ;;  %v1159_v41 = vmul.f32 %v5585_v61, %v1142_v60  ;;  %v1488_v7 = vpack.c.b16 %v1468_v24, %v1468_v24  ;;  %v1470_v60 = vunpack.c.2.s8 %v5751_v18 }
 0x1b8   :  { %v1041_v13 = vadd.f32 %v1025_v40, %v907_v28  ;;  %v885_v40 = vmul.f32 %v5570_v2, %v868_v11  ;;  %v1270_v22 = vand.u32 2147483647, %v1253_v34  ;;  %v1273_v15 = vand.u32 2147483647, %v1256_v1 }
 0x1b9   :  { %v1427_v35 = vmul.f32 %v5605_v44, %v1410_v50  ;;  %v7183_v50 = vld [vmem:[#allocation30_spill] sm:$0xff]  ;;  %v1489_v16 = vpack.c.b8 %v1488_v7, %v1488_v7  ;;  %v1529_v24 = vsel %vm1513_vm14, 16843009, %v7153_v37  ;;  %v1407_v17 = vand.u32 2147483647, %v1390_v42 }
 0x1ba   :  { %4615 = vset.pattern.permute.xlu1 %v7153_v37  ;;  %v1175_v51 = vadd.f32 %v1159_v41, %v1041_v13  ;;  %v860_v18 = vadd.f32 %v5535_v29, %v7183_v50  ;;  %v1492_v41 = vpack.c.b16 %v1470_v60, %v1470_v60  ;;  %v1404_v13 = vand.u32 2147483647, %v1387_v5 }
 0x1bb   :  { %v5852_v23 = vpop.permute.xlu1 %953  ;;  %v1287_v11 = vmul.f32 %v5592_v53, %v1270_v22  ;;  %vm1516_vm15 = vnez %v1489_v16  ;;  %v1545_v34 = vunpack.c.0.s8 %v1529_v24  ;;  %v1424_v8 = vmul.f32 %v5605_v44, %v1407_v17 }
 0x1bc   :  { %v877_v46 = vand.u32 2147483647, %v860_v18  ;;  %v1421_v55 = vmul.f32 %v5605_v44, %v1404_v13  ;;  %v1532_v7 = vsel %vm1516_vm15, 16843009, %v7153_v37 }
 0x1bd   :  { %vm5911_vm5 = vcmp.ne.s32.totalorder %v1545_v34, 0  ;;  %v1548_v22 = vunpack.c.0.s8 %v1532_v7 }
 0x1be   :  { %v894_v60 = vmul.f32 %v5570_v2, %v877_v46 }
 0x1bf   :  { %vm5932_vm7 = vcmp.ne.s32.totalorder %v1548_v22, 0 }
 0x1c0   :  { %v1214_v49 = vpop.permute.xlu1 %1213 }
 0x1c1   :  { %v1259_v58 = vadd.f32 %v5560_v59, %v1214_v49 }
 0x1c3   :  { %v1276_v48 = vand.u32 2147483647, %v1259_v58  ;;  %v7184_v58 = vld [vmem:[#allocation19_spill] sm:$0xff] }
 0x1c4   :  { %v901_v3 = vadd.f32 %v885_v40, %v7184_v58  ;;  %v1145_v40 = vand.u32 2147483647, %v1128_v54  ;;  %v7187_v58 = vld [vmem:[#allocation23_spill] sm:$0xff] }
 0x1c5   :  { %v1293_v38 = vmul.f32 %v5592_v53, %v1276_v48  ;;  %v5871_v63 = vpop.permute.xlu1 %1083 }
 0x1c6   :  { %v1035_v48 = vadd.f32 %v1019_v57, %v901_v3  ;;  %v910_v3 = vadd.f32 %v894_v60, %v7187_v58  ;;  %v1126_v34 = vadd.f32 %v5555_v20, %v5871_v63  ;;  %v1360_v58 = vpop.permute.xlu0 %1359 }
 0x1c7   :  { %v1309_v26 = vadd.f32 %v1293_v38, %v1175_v51  ;;  %v1454_v51 = vld [vmem:[%s4973_s22 + $0x10] sm:$0xff] }
 0x1c8   :  { %v1169_v38 = vadd.f32 %v1153_v30, %v1035_v48  ;;  %vm1458_vm2 = vnez %v1454_v51  ;;  %v1162_v30 = vmul.f32 %v5585_v61, %v1145_v40  ;;  %v992_v51 = vadd.f32 %v5546_v25, %v5848_v39  ;;  %v7192_v40 = vld [vmem:[#allocation35_spill] sm:$0xff] }
 0x1c9   :  { %v1443_v49 = vadd.f32 %v1427_v35, %v1309_v26  ;;  %v1493_v35 = vpack.c.b8 %v1492_v41, %v1492_v41  ;;  %v1290_v26 = vmul.f32 %v5592_v53, %v1273_v15  ;;  %v5916_v1 = vsel %vm1458_vm2, 16843009, %v7153_v37 }
 0x1ca   :  { %v1344_v43 = vpop.permute.xlu1 %1343  ;;  %v1303_v45 = vadd.f32 %v1287_v11, %v1169_v38  ;;  %v1472_v41 = vunpack.c.0.s8 %v5916_v1  ;;  %v1009_v7 = vand.u32 2147483647, %v992_v51  ;;  %v1475_v63 = vunpack.c.3.s8 %v5916_v1 }
 0x1cb   :  { %v5888_v28 = vsel %vm5875_vm13, %v1443_v49, -1e+30  ;;  %v1392_v33 = vadd.f32 %v5589_v56, %v1344_v43  ;;  %vm1518_vm3 = vnez %v1493_v35  ;;  %v1306_v18 = vadd.f32 %v1290_v26, %v5725_v4 }
 0x1cc   :  { %1622 = vmax.xlane.f32.xlu0 %v5888_v28  ;;  %v1437_v57 = vadd.f32 %v1421_v55, %v1303_v45  ;;  %v1534_v16 = vsel %vm1518_vm3, 16843009, %v7153_v37  ;;  %v858_v4 = vadd.f32 %v5535_v29, %v5810_v10  ;;  %v1496_v35 = vpack.c.b16 %v1472_v41, %v1472_v41 }
 0x1cd   :  { %v1409_v5 = vand.u32 2147483647, %v1392_v33  ;;  %v1440_v15 = vadd.f32 %v1424_v8, %v1306_v18  ;;  %v1550_v46 = vunpack.c.0.s8 %v1534_v16  ;;  %v1473_v45 = vunpack.c.1.s8 %v5916_v1 }
 0x1ce   :  { %v5927_v11 = vsel %vm5911_vm5, %v1437_v57, -1e+30  ;;  %v875_v33 = vand.u32 2147483647, %v858_v4  ;;  %v1497_v39 = vpack.c.b8 %v1496_v35, %v1496_v35  ;;  %v859_v57 = vadd.f32 %v5535_v29, %v5832_v14 }
 0x1cf   :  { %v5898_v27 = vpop.permute.xlu1 %1087  ;;  %v1426_v13 = vmul.f32 %v5605_v44, %v1409_v5  ;;  %v5940_v55 = vsel %vm5932_vm7, %v1440_v15, -1e+30  ;;  %vm5948_vm8 = vcmp.ne.s32.totalorder %v1550_v46, 0  ;;  %v1143_v5 = vand.u32 2147483647, %v1126_v34 }
 0x1d0   :  { %v892_v8 = vmul.f32 %v5570_v2, %v875_v33  ;;  %vm1520_vm10 = vnez %v1497_v39  ;;  %v1026_v18 = vmul.f32 %v5577_v9, %v1009_v7  ;;  %v876_v4 = vand.u32 2147483647, %v859_v57 }
 0x1d1   :  { %v1442_v17 = vadd.f32 %v1426_v13, %v5841_v31  ;;  %v996_v31 = vadd.f32 %v5546_v25, %v7192_v40  ;;  %v7193_v13 = vld [vmem:[#allocation21_spill] sm:$0xff]  ;;  %v1160_v15 = vmul.f32 %v5585_v61, %v1143_v5  ;;  %v1536_v14 = vsel %vm1520_vm10, 16843009, %v7153_v37  ;;  %v1364_v5 = vpop.permute.xlu0 %1363 }
 0x1d2   :  { %v1474_v51 = vunpack.c.2.s8 %v5916_v1  ;;  %v1127_v33 = vadd.f32 %v5555_v20, %v5898_v27  ;;  %v893_v27 = vmul.f32 %v5570_v2, %v876_v4 }
 0x1d3   :  { %v1013_v41 = vand.u32 2147483647, %v996_v31 }
 0x1d4   :  { %v958_v32 = vpop.permute.xlu1 %957 }
 0x1d5   :  { %v994_v49 = vadd.f32 %v5546_v25, %v958_v32  ;;  %v5958_v32 = vsel %vm5948_vm8, %v1442_v17, -1e+30 }
 0x1d7   :  { %v1011_v50 = vand.u32 2147483647, %v994_v49 }
 0x1d9   :  { %v1028_v42 = vmul.f32 %v5577_v9, %v1011_v50  ;;  %v1218_v48 = vpop.permute.xlu1 %1217  ;;  %v1498_v50 = vpack.c.b16 %v1473_v45, %v1473_v45  ;;  %v7194_v45 = vld [vmem:[#allocation25_spill] sm:$0xff] }
 0x1da   :  { %1610 = vmax.xlane.f32.xlu1 %v5927_v11  ;;  %v1260_v60 = vadd.f32 %v5560_v59, %v1218_v48  ;;  %v993_v48 = vadd.f32 %v5546_v25, %v5852_v23  ;;  %v1030_v23 = vmul.f32 %v5577_v9, %v1013_v41 }
 0x1db   :  { %v1044_v54 = vadd.f32 %v1028_v42, %v910_v3  ;;  %v908_v42 = vadd.f32 %v892_v8, %v7193_v13  ;;  %v1499_v35 = vpack.c.b8 %v1498_v50, %v1498_v50 }
 0x1dc   :  { %v1277_v16 = vand.u32 2147483647, %v1260_v60  ;;  %v1552_v60 = vunpack.c.0.s8 %v1536_v14  ;;  %v1010_v40 = vand.u32 2147483647, %v993_v48  ;;  %v7197_v48 = vld [vmem:[#allocation24_spill] sm:$0xff] }
 0x1dd   :  { %v1222_v38 = vpop.permute.xlu1 %1221  ;;  %v5943_v10 = vadd.f32 %v1162_v30, %v1044_v54  ;;  %v1502_v30 = vpack.c.b16 %v1475_v63, %v1475_v63  ;;  %v1042_v17 = vadd.f32 %v1026_v18, %v908_v42  ;;  %vm1521_vm12 = vnez %v1499_v35 }
 0x1de   :  { %1616 = vmax.xlane.f32.xlu1 %v5940_v55  ;;  %v1294_v34 = vmul.f32 %v5592_v53, %v1277_v16  ;;  %v1261_v63 = vadd.f32 %v5560_v59, %v1222_v38  ;;  %vm5987_vm14 = vcmp.ne.s32.totalorder %v1552_v60, 0  ;;  %v1397_v38 = vadd.f32 %v5589_v56, %v1364_v5 }
 0x1df   :  { %v1176_v31 = vadd.f32 %v1160_v15, %v1042_v17  ;;  %v1503_v1 = vpack.c.b8 %v1502_v30, %v1502_v30  ;;  %v1537_v42 = vsel %vm1521_vm12, 16843009, %v7153_v37  ;;  %v909_v15 = vadd.f32 %v893_v27, %v7197_v48 }
 0x1e0   :  { %v1278_v30 = vand.u32 2147483647, %v1261_v63  ;;  %v1414_v35 = vand.u32 2147483647, %v1397_v38 }
 0x1e1   :  { %v1310_v16 = vadd.f32 %v1294_v34, %v1176_v31  ;;  %vm1523_vm15 = vnez %v1503_v1  ;;  %v1396_v34 = vadd.f32 %v5589_v56, %v1360_v58 }
 0x1e2   :  { %v832_v49 = vpop.permute.xlu1 %831  ;;  %1620 = vmax.xlane.f32.xlu1 %v5958_v32  ;;  %v1295_v17 = vmul.f32 %v5592_v53, %v1278_v30  ;;  %v1431_v60 = vmul.f32 %v5605_v44, %v1414_v35 }
 0x1e3   :  { %v862_v22 = vadd.f32 %v5535_v29, %v832_v49  ;;  %v1500_v49 = vpack.c.b16 %v1474_v51, %v1474_v51  ;;  %v1413_v5 = vand.u32 2147483647, %v1396_v34 }
 0x1e4   :  { %v1447_v38 = vadd.f32 %v1431_v60, %v5795_v0 }
 0x1e5   :  { %v879_v3 = vand.u32 2147483647, %v862_v22  ;;  %v1144_v22 = vand.u32 2147483647, %v1127_v33  ;;  %v1430_v30 = vmul.f32 %v5605_v44, %v1413_v5 }
 0x1e7   :  { %v896_v46 = vmul.f32 %v5570_v2, %v879_v3  ;;  %v1352_v54 = vpop.permute.xlu1 %1351  ;;  %v1027_v3 = vmul.f32 %v5577_v9, %v1010_v40  ;;  %v1161_v14 = vmul.f32 %v5585_v61, %v1144_v22  ;;  %v6013_v22 = vpop.permute.xlu0 %1371 }
 0x1e8   :  { %v1394_v39 = vadd.f32 %v5589_v56, %v1352_v54 }
 0x1e9   :  { %v912_v7 = vadd.f32 %v896_v46, %v7194_v45  ;;  %v1501_v46 = vpack.c.b8 %v1500_v49, %v1500_v49  ;;  %v1043_v51 = vadd.f32 %v1027_v3, %v909_v15 }
 0x1ea   :  { %v1411_v8 = vand.u32 2147483647, %v1394_v39  ;;  %v1553_v39 = vunpack.c.0.s8 %v1537_v42 }
 0x1eb   :  { %v5981_v57 = vadd.f32 %v1030_v23, %v912_v7  ;;  %v1539_v23 = vsel %vm1523_vm15, 16843009, %v7153_v37  ;;  %v1177_v45 = vadd.f32 %v1161_v14, %v1043_v51  ;;  %vm1522_vm2 = vnez %v1501_v46  ;;  %v6032_v0 = vpop.permute.xlu0 %1375 }
 0x1ec   :  { %v1428_v50 = vmul.f32 %v5605_v44, %v1411_v8  ;;  %v5985_v18 = vpop.permute.xlu1 %835  ;;  %v1555_v8 = vunpack.c.0.s8 %v1539_v23  ;;  %vm6008_vm3 = vcmp.ne.s32.totalorder %v1553_v39, 0  ;;  %v1538_v58 = vsel %vm1522_vm2, 16843009, %v7153_v37 }
 0x1ed   :  { %v1311_v63 = vadd.f32 %v1295_v17, %v1177_v45  ;;  %v1554_v3 = vunpack.c.0.s8 %v1538_v58  ;;  %v7204_v17 = vld [vmem:[#allocation39_spill] sm:$0xff]  ;;  %v1455_v45 = vld [vmem:[%s4973_s22 + $0x18] sm:$0xff] }
 0x1ee   :  { %v1444_v13 = vadd.f32 %v1428_v50, %v1310_v16  ;;  %vm6023_vm10 = vcmp.ne.s32.totalorder %v1555_v8, 0  ;;  %vm1459_vm15 = vnez %v1455_v45 }
 0x1ef   :  { %v6030_v14 = vsel %vm6023_vm10, %v1447_v38, -1e+30  ;;  %vm6034_vm12 = vcmp.ne.s32.totalorder %v1554_v3, 0  ;;  %v6059_v8 = vsel %vm1459_vm15, 16843009, %v7153_v37 }
 0x1f0   :  { %v5998_v4 = vsel %vm5987_vm14, %v1444_v13, -1e+30 }
 0x1f1   :  { %v1356_v54 = vpop.permute.xlu1 %1355  ;;  %1624 = vmax.xlane.f32.xlu1 %v5998_v4 }
 0x1f2   :  { %v1395_v33 = vadd.f32 %v5589_v56, %v1356_v54 }
 0x1f4   :  { %v1412_v7 = vand.u32 2147483647, %v1395_v33  ;;  %v1264_v33 = vadd.f32 %v5560_v59, %v7204_v17 }
 0x1f6   :  { %v1429_v40 = vmul.f32 %v5605_v44, %v1412_v7  ;;  %v1226_v31 = vpop.permute.xlu1 %1225  ;;  %v1281_v60 = vand.u32 2147483647, %v1264_v33 }
 0x1f7   :  { %v1262_v1 = vadd.f32 %v5560_v59, %v1226_v31 }
 0x1f8   :  { %v1445_v27 = vadd.f32 %v1429_v40, %v1311_v63  ;;  %v1298_v5 = vmul.f32 %v5592_v53, %v1281_v60 }
 0x1f9   :  { %v1279_v50 = vand.u32 2147483647, %v1262_v1 }
 0x1fa   :  { %v6017_v16 = vsel %vm6008_vm3, %v1445_v27, -1e+30  ;;  %v1477_v27 = vunpack.c.1.s8 %v6059_v8 }
 0x1fb   :  { %v1296_v13 = vmul.f32 %v5592_v53, %v1279_v50  ;;  %v970_v42 = vpop.permute.xlu1 %969  ;;  %1626 = vmax.xlane.f32.xlu0 %v6017_v16 }
 0x1fc   :  { %v997_v17 = vadd.f32 %v5546_v25, %v970_v42 }
 0x1fd   :  { %v1312_v15 = vadd.f32 %v1296_v13, %v5943_v10  ;;  %v6044_v10 = vld [vmem:[#allocation2] sm:$0xff]  ;;  %v863_v13 = vadd.f32 %v5535_v29, %v5985_v18 }
 0x1ff   :  { %1630 = vmax.xlane.f32.xlu0 %v6030_v14  ;;  %v1446_v54 = vadd.f32 %v1430_v30, %v1312_v15  ;;  %v1476_v30 = vunpack.c.0.s8 %v6059_v8  ;;  %v1506_v15 = vpack.c.b16 %v1477_v27, %v1477_v27 }
 0x200   :  { %v840_v35 = vpop.permute.xlu1 %839 }
 0x201   :  { %v6041_v51 = vsel %vm6034_vm12, %v1446_v54, -1e+30  ;;  %v864_v58 = vadd.f32 %v5535_v29, %v840_v35  ;;  %v1132_v54 = vadd.f32 %v5555_v20, %v5769_v52 }
 0x202   :  { %1628 = vmax.xlane.f32.xlu1 %v6041_v51 }
 0x203   :  { %v881_v3 = vand.u32 2147483647, %v864_v58  ;;  %v1149_v60 = vand.u32 2147483647, %v1132_v54 }
 0x204   :  { %v1609_v34 = vpop.xlane.xlu0 %1608 }
 0x205   :  { %v6049_v39 = vmax.f32 %v6044_v10, %v1609_v34  ;;  %v1100_v23 = vpop.permute.xlu1 %1099  ;;  %v898_v35 = vmul.f32 %v5570_v2, %v881_v3  ;;  %v1504_v34 = vpack.c.b16 %v1476_v30, %v1476_v30  ;;  %v1166_v3 = vmul.f32 %v5585_v61, %v1149_v60 }
 0x206   :  { %v1130_v7 = vadd.f32 %v5555_v20, %v1100_v23  ;;  %v880_v23 = vand.u32 2147483647, %v863_v13 }
 0x207   :  { %3392 = vst.msk [vmem:[#allocation2] sm:$0xff] %vm7060_vm0, %v6049_v39  ;;  %v1505_v58 = vpack.c.b8 %v1504_v34, %v1504_v34 }
 0x208   :  { %v1147_v40 = vand.u32 2147483647, %v1130_v7  ;;  %v1507_v7 = vpack.c.b8 %v1506_v15, %v1506_v15  ;;  %v897_v42 = vmul.f32 %v5570_v2, %v880_v23  ;;  %v1478_v23 = vunpack.c.2.s8 %v6059_v8 }
 0x209   :  { %vm1524_vm15 = vnez %v1505_v58 }
 0x20a   :  { %v1164_v31 = vmul.f32 %v5585_v61, %v1147_v40  ;;  %v6056_v63 = vpop.permute.xlu1 %843  ;;  %vm1525_vm2 = vnez %v1507_v7 }
 0x20b   :  { %v1541_v54 = vsel %vm1525_vm2, 16843009, %v7153_v37 }
 0x20c   :  { %v1180_v1 = vadd.f32 %v1164_v31, %v5981_v57  ;;  %v1014_v31 = vand.u32 2147483647, %v997_v17 }
 0x20e   :  { %v6065_v50 = vadd.f32 %v1298_v5, %v1180_v1  ;;  %v7205_v5 = vld [vmem:[#allocation26_spill] sm:$0xff]  ;;  %v1031_v13 = vmul.f32 %v5577_v9, %v1014_v31  ;;  %v1557_v31 = vunpack.c.0.s8 %v1541_v54 }
 0x20f   :  { %v1104_v38 = vpop.permute.xlu1 %1103  ;;  %v914_v1 = vadd.f32 %v898_v35, %v7205_v5  ;;  %v1540_v5 = vsel %vm1524_vm15, 16843009, %v7153_v37 }
 0x210   :  { %v1131_v45 = vadd.f32 %v5555_v20, %v1104_v38  ;;  %v1399_v38 = vadd.f32 %v5589_v56, %v6013_v22  ;;  %vm6103_vm2 = vcmp.ne.s32.totalorder %v1557_v31, 0  ;;  %v6120_v31 = vld [vmem:[#allocation2 + $0x18] sm:$0xff] }
 0x211   :  { %7213 = vst [vmem:[#allocation28_spill] sm:$0xff] %v6120_v31 }
 0x212   :  { %v1148_v27 = vand.u32 2147483647, %v1131_v45  ;;  %v6090_v45 = vld [vmem:[#allocation2 + $0x10] sm:$0xff]  ;;  %v1416_v60 = vand.u32 2147483647, %v1399_v38  ;;  %v1556_v38 = vunpack.c.0.s8 %v1540_v5 }
 0x213   :  { %7207 = vst [vmem:[#allocation38_spill] sm:$0xff] %v6090_v45 }
 0x214   :  { %v974_v57 = vpop.permute.xlu1 %973  ;;  %vm6115_vm15 = vcmp.ne.s32.totalorder %v1556_v38, 0 }
 0x215   :  { %v998_v33 = vadd.f32 %v5546_v25, %v974_v57  ;;  %v7206_v57 = vld [vmem:[#allocation27_spill] sm:$0xff] }
 0x216   :  { %v913_v35 = vadd.f32 %v897_v42, %v7206_v57 }
 0x217   :  { %v1015_v40 = vand.u32 2147483647, %v998_v33  ;;  %v1165_v33 = vmul.f32 %v5585_v61, %v1148_v27  ;;  %v1508_v27 = vpack.c.b16 %v1478_v23, %v1478_v23 }
 0x218   :  { %v978_v18 = vpop.permute.xlu1 %977  ;;  %v1047_v7 = vadd.f32 %v1031_v13, %v913_v35  ;;  %v1479_v35 = vunpack.c.3.s8 %v6059_v8 }
 0x219   :  { %v1032_v52 = vmul.f32 %v5577_v9, %v1015_v40 }
 0x21a   :  { %v1510_v5 = vpack.c.b16 %v1479_v35, %v1479_v35 }
 0x21b   :  { %v1048_v30 = vadd.f32 %v1032_v52, %v914_v1  ;;  %v1181_v1 = vadd.f32 %v1165_v33, %v1047_v7 }
 0x21d   :  { %v1238_v15 = vpop.permute.xlu1 %1237  ;;  %v6084_v17 = vadd.f32 %v1166_v3, %v1048_v30  ;;  %v1433_v30 = vmul.f32 %v5605_v44, %v1416_v60  ;;  %v865_v60 = vadd.f32 %v5535_v29, %v6056_v63  ;;  %v1400_v29 = vadd.f32 %v5589_v56, %v6032_v0 }
 0x21e   :  { %v1265_v34 = vadd.f32 %v5560_v59, %v1238_v15 }
 0x21f   :  { %v1417_v38 = vand.u32 2147483647, %v1400_v29 }
 0x220   :  { %v1282_v40 = vand.u32 2147483647, %v1265_v34  ;;  %v1509_v34 = vpack.c.b8 %v1508_v27, %v1508_v27 }
 0x221   :  { %v1613_v22 = vpop.xlane.xlu0 %1612 }
 0x222   :  { %v1299_v52 = vmul.f32 %v5592_v53, %v1282_v40  ;;  %v6095_v58 = vmax.f32 %v6090_v45, %v1613_v22  ;;  %v1368_v42 = vpop.permute.xlu1 %1367  ;;  %vm1526_vm1 = vnez %v1509_v34 }
 0x223   :  { %v1398_v3 = vadd.f32 %v5589_v56, %v1368_v42  ;;  %v882_v42 = vand.u32 2147483647, %v865_v60 }
 0x224   :  { %7208 = vst [vmem:[#allocation20_spill] sm:$0xff] %v6095_v58  ;;  %v1315_v15 = vadd.f32 %v1299_v52, %v1181_v1  ;;  %3394 = vst.msk [vmem:[#allocation2 + $0x10] sm:$0xff] %vm7060_vm0, %v6095_v58  ;;  %v999_v1 = vadd.f32 %v5546_v25, %v978_v18  ;;  %v1511_v18 = vpack.c.b8 %v1510_v5, %v1510_v5 }
 0x225   :  { %v1415_v54 = vand.u32 2147483647, %v1398_v3 }
 0x226   :  { %v1449_v33 = vadd.f32 %v1433_v30, %v1315_v15  ;;  %v1016_v0 = vand.u32 2147483647, %v999_v1  ;;  %v6257_v15 = vld [vmem:[#allocation2 + $0x20] sm:$0xff] }
 0x227   :  { %v1432_v23 = vmul.f32 %v5605_v44, %v1415_v54  ;;  %v1112_v7 = vpop.permute.xlu1 %1111  ;;  %v899_v54 = vmul.f32 %v5570_v2, %v882_v42  ;;  %v7216_v2 = vmov 0  ;;  %7230 = vst [vmem:[#allocation25_spill] sm:$0xff] %v6257_v15 }
 0x228   :  { %v6113_v40 = vsel %vm6103_vm2, %v1449_v33, -1e+30  ;;  %v1133_v27 = vadd.f32 %v5555_v20, %v1112_v7  ;;  %v1033_v60 = vmul.f32 %v5577_v9, %v1016_v0 }
 0x229   :  { %1634 = vmax.xlane.f32.xlu0 %v6113_v40  ;;  %v1448_v8 = vadd.f32 %v1432_v23, %v6065_v50  ;;  %v1542_v50 = vsel %vm1526_vm1, 16843009, %v7153_v37  ;;  %vm1527_vm1 = vnez %v1511_v18 }
 0x22a   :  { %v1150_v35 = vand.u32 2147483647, %v1133_v27  ;;  %v1558_v34 = vunpack.c.0.s8 %v1542_v50  ;;  %v1543_v42 = vsel %vm1527_vm1, 16843009, %v7153_v37 }
 0x22b   :  { %v1615_v63 = vpop.xlane.xlu0 %1614  ;;  %v6128_v52 = vsel %vm6115_vm15, %v1448_v8, -1e+30  ;;  %v1434_v8 = vmul.f32 %v5605_v44, %v1417_v38  ;;  %v1559_v18 = vunpack.c.0.s8 %v1543_v42  ;;  %v6214_v42 = vld [vmem:[%s4968_s20 + $0x18] sm:$0xff] }
 0x22c   :  { %v6132_v3 = vmax.f32 %v6120_v31, %v1615_v63  ;;  %v1242_v30 = vpop.permute.xlu1 %1241  ;;  %1632 = vmax.xlane.f32.xlu1 %v6128_v52  ;;  %v7215_v63 = vld [vmem:[#allocation29_spill] sm:$0xff] }
 0x22d   :  { %v1266_v25 = vadd.f32 %v5560_v59, %v1242_v30  ;;  %v915_v29 = vadd.f32 %v899_v54, %v7215_v63  ;;  %v1167_v30 = vmul.f32 %v5585_v61, %v1150_v35  ;;  %vm6164_vm1 = vcmp.ne.s32.totalorder %v1559_v18, 0 }
 0x22e   :  { %7214 = vst [vmem:[#allocation32_spill] sm:$0xff] %v6132_v3  ;;  %3395 = vst.msk [vmem:[#allocation2 + $0x18] sm:$0xff] %vm7060_vm0, %v6132_v3  ;;  %vm6149_vm0 = vcmp.ne.s32.totalorder %v1558_v34, 0 }
 0x22f   :  { %v1283_v20 = vand.u32 2147483647, %v1266_v25  ;;  %v7217_v2 = vsel %vm6149_vm0, 4294967295, %v7216_v2  ;;  %v1049_v25 = vadd.f32 %v1033_v60, %v915_v29 }
 0x230   :  { %v1246_v33 = vpop.permute.xlu1 %1245 }
 0x231   :  { %v1300_v23 = vmul.f32 %v5592_v53, %v1283_v20  ;;  %v1267_v7 = vadd.f32 %v5560_v59, %v1246_v33  ;;  %v1183_v0 = vadd.f32 %v1167_v30, %v1049_v25  ;;  %v6162_v20 = vld [vmem:[#allocation2 + $0x28] sm:$0xff]  ;;  %v6211_v30 = vld [vmem:[%s4968_s20 + $0x10] sm:$0xff] }
 0x232   :  { %7218 = vst [vmem:[#allocation22_spill] sm:$0xff] %v6162_v20 }
 0x233   :  { %v1316_v5 = vadd.f32 %v1300_v23, %v6084_v17  ;;  %v1284_v1 = vand.u32 2147483647, %v1267_v7  ;;  %v6187_v23 = vld [vmem:[%s4968_s20 + $0x8] sm:$0xff]  ;;  %v6189_v7 = vld [vmem:[#allocation2 + $0x38] sm:$0xff] }
 0x234   :  { %7224 = vst [vmem:[#allocation34_spill] sm:$0xff] %v6189_v7 }
 0x235   :  { %v1380_v27 = vpop.permute.xlu1 %1379  ;;  %v1450_v59 = vadd.f32 %v1434_v8, %v1316_v5  ;;  %v1301_v9 = vmul.f32 %v5592_v53, %v1284_v1  ;;  %v7219_v53 = vmov 0  ;;  %v7066_v8 = vand.u32 4294901760, %v6187_v23 }
 0x236   :  { %v1401_v50 = vadd.f32 %v5589_v56, %v1380_v27  ;;  %v7220_v53 = vsel %vm6164_vm1, 4294967295, %v7219_v53  ;;  %v7065_v27 = vand.u32 4294901760, %v6211_v30 }
 0x237   :  { %v6158_v17 = vsel %vm6149_vm0, %v1450_v59, -1e+30  ;;  %v1317_v38 = vadd.f32 %v1301_v9, %v1183_v0  ;;  %7221 = vst [vmem:[#allocation31_spill] sm:$0xff] %v7220_v53  ;;  %vm7223_vm0 = vcmask 7168   ;;  %v7064_v59 = vand.u32 4294901760, %v6214_v42  ;;  %v6225_v9 = vld [vmem:[%s4968_s20 + $0x20] sm:$0xff] }
 0x238   :  { %v1418_v61 = vand.u32 2147483647, %v1401_v50  ;;  %1636 = vmax.xlane.f32.xlu1 %v6158_v17  ;;  %v6228_v50 = vld [vmem:[%s4968_s20 + $0x28] sm:$0xff]  ;;  %v7063_v18 = vand.u32 4294901760, %v6225_v9  ;;  %v6448_v53 = vld [vmem:[#allocation2 + $0x78] sm:$0xff] }
 0x239   :  { %v6222_v25 = vpack.c.bf16 %v7064_v59, %v7065_v27  ;;  %v7062_v0 = vand.u32 4294901760, %v6228_v50  ;;  %v6276_v59 = vld [vmem:[%s4968_s20 + $0x48] sm:$0xff] }
 0x23a   :  { %v1435_v37 = vmul.f32 %v5605_v44, %v1418_v61  ;;  %v6184_v44 = vld [vmem:[%s4968_s20] sm:$0xff]  ;;  %v6234_v61 = vld [vmem:[#allocation2 + $0x8] sm:$0xff] }
 0x23b   :  { %v7069_v60 = vand.u32 4294901760, %v6184_v44  ;;  %7226 = vst [vmem:[#allocation19_spill] sm:$0xff] %v6222_v25  ;;  %7227 = vst [vmem:[#allocation23_spill] sm:$0xff] %v6234_v61 }
 0x23c   :  { %v1619_v56 = vpop.xlane.xlu0 %1618  ;;  %v1451_v54 = vadd.f32 %v1435_v37, %v1317_v38  ;;  %v6242_v38 = vpack.c.bf16 %v7062_v0, %v7063_v18  ;;  %v6273_v18 = vld [vmem:[%s4968_s20 + $0x40] sm:$0xff] }
 0x23d   :  { %v6169_v35 = vmax.f32 %v6162_v20, %v1619_v56  ;;  %v6197_v1 = vpack.c.bf16 %v7066_v8, %v7069_v60  ;;  %v6245_v56 = vld [vmem:[%s4968_s20 + $0x30] sm:$0xff]  ;;  %v7078_v27 = vand.u32 4294901760, %v6273_v18  ;;  %v7077_v8 = vand.u32 4294901760, %v6276_v59  ;;  %v6383_v20 = vld [vmem:[#allocation2 + $0x58] sm:$0xff] }
 0x23e   :  { %v6173_v33 = vsel %vm6164_vm1, %v1451_v54, -1e+30  ;;  %7228 = vst [vmem:[#allocation35_spill] sm:$0xff] %v6242_v38  ;;  %v6248_v54 = vld [vmem:[%s4968_s20 + $0x38] sm:$0xff]  ;;  %v7068_v29 = vand.u32 4294901760, %v6245_v56  ;;  %7243 = vst [vmem:[#allocation47_spill] sm:$0xff] %v6383_v20 }
 0x23f   :  { %7222 = vst [vmem:[#allocation33_spill] sm:$0xff] %v6169_v35  ;;  %3397 = vst.msk [vmem:[#allocation2 + $0x28] sm:$0xff] %vm7223_vm0, %v6169_v35  ;;  %1638 = vmax.xlane.f32.xlu0 %v6173_v33  ;;  %4373 = vmatprep.subr.bf16.mxu0 %v6197_v1  ;;  %v7067_v34 = vand.u32 4294901760, %v6248_v54 }
 0x240   :  { %4277 = vmatprep.subr.bf16.mxu1 %v6197_v1  ;;  %4375 = vmatpush3.bf16.msra.mxu0 %v6197_v1  ;;  %vm7244_vm1 = vmmov %vm7223_vm0 }
 0x241   :  { %4279 = vmatpush3.bf16.msra.mxu1 %v6197_v1  ;;  %4377 = vmatprep.subr.bf16.mxu0 %v6222_v25 }
 0x242   :  { %4281 = vmatprep.subr.bf16.mxu1 %v6222_v25 }
 0x244   :  { %4379 = vmatpush3.bf16.msra.mxu0 %v6222_v25 }
 0x245   :  { %4283 = vmatpush3.bf16.msra.mxu1 %v6222_v25  ;;  %4381 = vmatprep.subr.bf16.mxu0 %v6242_v38 }
 0x246   :  { %4285 = vmatprep.subr.bf16.mxu1 %v6242_v38 }
 0x248   :  { %4383 = vmatpush3.bf16.msra.mxu0 %v6242_v38 }
 0x249   :  { %1706 = vperm.xlu1 %4615, %v6049_v39   ;;  %4287 = vmatpush3.bf16.msra.mxu1 %v6242_v38  ;;  %v6301_v38 = vld [vmem:[%s4968_s20 + $0x50] sm:$0xff] }
 0x24a   :  { %v7083_v25 = vand.u32 4294901760, %v6301_v38 }
 0x24d   :  { %1716 = vperm.xlu1 %4615, %v6095_v58  }
 0x251   :  { %1721 = vperm.xlu1 %4615, %v6132_v3  }
 0x259   :  { %v1623_v5 = vpop.xlane.xlu0 %1622 }
 0x25a   :  { %v6200_v63 = vmax.f32 %v6189_v7, %v1623_v5 }
 0x25c   :  { %7225 = vst [vmem:[#allocation30_spill] sm:$0xff] %v6200_v63  ;;  %3399 = vst.msk [vmem:[#allocation2 + $0x38] sm:$0xff] %vm7223_vm0, %v6200_v63 }
 0x267   :  { %v1611_v37 = vpop.xlane.xlu1 %1610 }
 0x268   :  { %v6251_v5 = vmax.f32 %v6234_v61, %v1611_v37  ;;  %v6270_v37 = vpack.c.bf16 %v7067_v34, %v7068_v29  ;;  %v6285_v34 = vld [vmem:[#allocation2 + $0x30] sm:$0xff] }
 0x269   :  { %7233 = vst [vmem:[#allocation26_spill] sm:$0xff] %v6285_v34 }
 0x26a   :  { %7229 = vst [vmem:[#allocation21_spill] sm:$0xff] %v6251_v5  ;;  %3393 = vst.msk [vmem:[#allocation2 + $0x8] sm:$0xff] %vm7223_vm0, %v6251_v5  ;;  %1711 = vperm.xlu0 %4616, %v6251_v5   ;;  %4385 = vmatprep.subr.bf16.mxu0 %v6270_v37 }
 0x26b   :  { %7231 = vst [vmem:[#allocation24_spill] sm:$0xff] %v6270_v37  ;;  %v1617_v0 = vpop.xlane.xlu1 %1616  ;;  %4289 = vmatprep.subr.bf16.mxu1 %v6270_v37  ;;  %4387 = vmatpush3.bf16.msra.mxu0 %v6270_v37 }
 0x26c   :  { %v6279_v13 = vmax.f32 %v6257_v15, %v1617_v0  ;;  %4291 = vmatpush3.bf16.msra.mxu1 %v6270_v37  ;;  %v6298_v0 = vpack.c.bf16 %v7077_v8, %v7078_v27  ;;  %v6304_v37 = vld [vmem:[%s4968_s20 + $0x58] sm:$0xff]  ;;  %v6327_v27 = vld [vmem:[%s4968_s20 + $0x60] sm:$0xff] }
 0x26d   :  { %v7082_v7 = vand.u32 4294901760, %v6304_v37  ;;  %v7089_v8 = vand.u32 4294901760, %v6327_v27 }
 0x26e   :  { %7232 = vst [vmem:[#allocation39_spill] sm:$0xff] %v6279_v13  ;;  %3396 = vst.msk [vmem:[#allocation2 + $0x20] sm:$0xff] %vm7223_vm0, %v6279_v13  ;;  %1726 = vperm.xlu1 %4615, %v6279_v13   ;;  %4389 = vmatprep.subr.bf16.mxu0 %v6298_v0  ;;  %v6330_v13 = vld [vmem:[%s4968_s20 + $0x68] sm:$0xff] }
 0x26f   :  { %7234 = vst [vmem:[#allocation27_spill] sm:$0xff] %v6298_v0  ;;  %v1621_v60 = vpop.xlane.xlu1 %1620  ;;  %4293 = vmatprep.subr.bf16.mxu1 %v6298_v0  ;;  %4391 = vmatpush3.bf16.msra.mxu0 %v6298_v0 }
 0x270   :  { %v6307_v29 = vmax.f32 %v6285_v34, %v1621_v60  ;;  %4295 = vmatpush3.bf16.msra.mxu1 %v6298_v0  ;;  %v6324_v60 = vpack.c.bf16 %v7082_v7, %v7083_v25  ;;  %v7088_v0 = vand.u32 4294901760, %v6330_v13  ;;  %v6346_v25 = vld [vmem:[%s4968_s20 + $0x70] sm:$0xff]  ;;  %v6349_v34 = vld [vmem:[%s4968_s20 + $0x78] sm:$0xff] }
 0x271   :  { %v7095_v15 = vand.u32 4294901760, %v6346_v25 }
 0x272   :  { %7235 = vst [vmem:[#allocation29_spill] sm:$0xff] %v6307_v29  ;;  %3398 = vst.msk [vmem:[#allocation2 + $0x30] sm:$0xff] %vm7223_vm0, %v6307_v29  ;;  %1731 = vperm.xlu1 %4615, %v6169_v35   ;;  %4393 = vmatprep.subr.bf16.mxu0 %v6324_v60  ;;  %v6343_v7 = vpack.c.bf16 %v7088_v0, %v7089_v8  ;;  %v6364_v8 = vld [vmem:[#allocation2 + $0x40] sm:$0xff] }
 0x273   :  { %7236 = vst [vmem:[#allocation40_spill] sm:$0xff] %v6324_v60  ;;  %4297 = vmatprep.subr.bf16.mxu1 %v6324_v60  ;;  %4395 = vmatpush3.bf16.msra.mxu0 %v6324_v60  ;;  %7239 = vst [vmem:[#allocation43_spill] sm:$0xff] %v6364_v8 }
 0x274   :  { %4299 = vmatpush3.bf16.msra.mxu1 %v6324_v60  ;;  %7237 = vst [vmem:[#allocation41_spill] sm:$0xff] %v6343_v7  ;;  %4397 = vmatprep.subr.bf16.mxu0 %v6343_v7  ;;  %v7094_v60 = vand.u32 4294901760, %v6349_v34 }
 0x275   :  { %4301 = vmatprep.subr.bf16.mxu1 %v6343_v7 }
 0x276   :  { %1736 = vperm.xlu1 %4615, %v6307_v29   ;;  %v6362_v0 = vpack.c.bf16 %v7094_v60, %v7095_v15  ;;  %v6378_v60 = vld [vmem:[#allocation2 + $0x48] sm:$0xff] }
 0x277   :  { %4399 = vmatpush3.bf16.msra.mxu0 %v6343_v7  ;;  %7241 = vst [vmem:[#allocation45_spill] sm:$0xff] %v6378_v60 }
 0x278   :  { %4303 = vmatpush3.bf16.msra.mxu1 %v6343_v7  ;;  %7238 = vst [vmem:[#allocation42_spill] sm:$0xff] %v6362_v0  ;;  %4401 = vmatprep.subr.bf16.mxu0 %v6362_v0 }
 0x279   :  { %4305 = vmatprep.subr.bf16.mxu1 %v6362_v0 }
 0x27a   :  { %1741 = vperm.xlu1 %4615, %v6200_v63  }
 0x27b   :  { %4403 = vmatpush3.bf16.msra.mxu0 %v6362_v0 }
 0x27c   :  { %4307 = vmatpush3.bf16.msra.mxu1 %v6362_v0 }
 0x27e   :  { %v1625_v29 = vpop.xlane.xlu1 %1624 }
 0x27f   :  { %v6371_v7 = vmax.f32 %v6364_v8, %v1625_v29 }
 0x281   :  { %7240 = vst [vmem:[#allocation44_spill] sm:$0xff] %v6371_v7  ;;  %3400 = vst.msk [vmem:[#allocation2 + $0x40] sm:$0xff] %vm7223_vm0, %v6371_v7  ;;  %1746 = vperm.xlu1 %4615, %v6371_v7   ;;  %v6393_v7 = vld [vmem:[#allocation2 + $0x50] sm:$0xff] }
 0x282   :  { %7246 = vst [vmem:[#allocation49_spill] sm:$0xff] %v6393_v7 }
 0x288   :  { %v1627_v15 = vpop.xlane.xlu0 %1626 }
 0x289   :  { %v6381_v35 = vmax.f32 %v6378_v60, %v1627_v15  ;;  %v6413_v60 = vld [vmem:[#allocation2 + $0x60] sm:$0xff] }
 0x28a   :  { %7251 = vst [vmem:[#allocation53_spill] sm:$0xff] %v6413_v60 }
 0x28b   :  { %7242 = vst [vmem:[#allocation46_spill] sm:$0xff] %v6381_v35  ;;  %3401 = vst.msk [vmem:[#allocation2 + $0x48] sm:$0xff] %vm7244_vm1, %v6381_v35  ;;  %1751 = vperm.xlu1 %4615, %v6381_v35  }
 0x28c   :  { %v1631_v63 = vpop.xlane.xlu0 %1630  ;;  %vm7248_vm1 = vmmov %vm7223_vm0 }
 0x28d   :  { %v6391_v0 = vmax.f32 %v6383_v20, %v1631_v63  ;;  %v6408_v63 = vld [vmem:[#allocation2 + $0x68] sm:$0xff] }
 0x28e   :  { %7249 = vst [vmem:[#allocation51_spill] sm:$0xff] %v6408_v63 }
 0x28f   :  { %7245 = vst [vmem:[#allocation48_spill] sm:$0xff] %v6391_v0  ;;  %3403 = vst.msk [vmem:[#allocation2 + $0x58] sm:$0xff] %vm7223_vm0, %v6391_v0  ;;  %v1629_v8 = vpop.xlane.xlu1 %1628  ;;  %1761 = vperm.xlu1 %4615, %v6391_v0   ;;  %v7256_v0 = vand.u32 4294901760, %v6187_v23 }
 0x290   :  { %v6401_v29 = vmax.f32 %v6393_v7, %v1629_v8  ;;  %v7255_v8 = vand.u32 4294901760, %v6184_v44 }
 0x292   :  { %7247 = vst [vmem:[#allocation50_spill] sm:$0xff] %v6401_v29  ;;  %3402 = vst.msk [vmem:[#allocation2 + $0x50] sm:$0xff] %vm7248_vm1, %v6401_v29  ;;  %1756 = vperm.xlu0 %4616, %v6401_v29  }
 0x293   :  { %vm7253_vm1 = vmmov %vm7223_vm0 }
 0x2b6   :  { %v1635_v15 = vpop.xlane.xlu0 %1634 }
 0x2b7   :  { %v6411_v20 = vmax.f32 %v6408_v63, %v1635_v15  ;;  %v6428_v15 = vld [vmem:[#allocation2 + $0x70] sm:$0xff]  ;;  %v2316_v63 = vsub.f32 %v6184_v44, %v7255_v8 }
 0x2b8   :  { %7254 = vst [vmem:[#allocation55_spill] sm:$0xff] %v6428_v15  ;;  %v7258_v8 = vld [vmem:[#allocation37_spill] sm:$0xff] }
 0x2b9   :  { %7250 = vst [vmem:[#allocation52_spill] sm:$0xff] %v6411_v20  ;;  %3405 = vst.msk [vmem:[#allocation2 + $0x68] sm:$0xff] %vm7223_vm0, %v6411_v20  ;;  %v1633_v35 = vpop.xlane.xlu1 %1632  ;;  %1771 = vperm.xlu1 %4615, %v6411_v20   ;;  %v2323_v20 = vsub.f32 %v6187_v23, %v7256_v0  ;;  %v2317_v5 = vand.u32 4294901760, %v2316_v63 }
 0x2ba   :  { %v6421_v7 = vmax.f32 %v6413_v60, %v1633_v35  ;;  %7259 = vst [vmem:[#allocation37_spill] sm:$0xff] %v6448_v53 }
 0x2bb   :  { %v2324_v61 = vand.u32 4294901760, %v2323_v20  ;;  %v2318_v3 = vsub.f32 %v2316_v63, %v2317_v5 }
 0x2bc   :  { %7252 = vst [vmem:[#allocation54_spill] sm:$0xff] %v6421_v7  ;;  %3404 = vst.msk [vmem:[#allocation2 + $0x60] sm:$0xff] %vm7253_vm1, %v6421_v7  ;;  %1766 = vperm.xlu0 %4616, %v6421_v7  }
 0x2bd   :  { %v6439_v60 = vpack.c.bf16 %v2324_v61, %v2317_v5  ;;  %v2325_v7 = vsub.f32 %v2323_v20, %v2324_v61  ;;  %v2319_v23 = vand.u32 4294901760, %v2318_v3  ;;  %vm7261_vm1 = vmmov %vm7223_vm0 }
 0x2bf   :  { %4405 = vmatprep.subr.bf16.mxu0 %v6439_v60  ;;  %v2326_v0 = vand.u32 4294901760, %v2325_v7 }
 0x2c1   :  { %v6450_v58 = vpack.c.bf16 %v2326_v0, %v2319_v23 }
 0x2c3   :  { %4309 = vmatprep.subr.bf16.mxu1 %v6450_v58 }
 0x2c5   :  { %v1637_v35 = vpop.xlane.xlu1 %1636 }
 0x2c6   :  { %v6437_v29 = vmax.f32 %v6428_v15, %v1637_v35 }
 0x2c8   :  { %7257 = vst [vmem:[#allocation56_spill] sm:$0xff] %v6437_v29  ;;  %3406 = vst.msk [vmem:[#allocation2 + $0x70] sm:$0xff] %vm7223_vm0, %v6437_v29  ;;  %1776 = vperm.xlu0 %4616, %v6437_v29  }
 0x2c9   :  { %v1707_v44 = vpop.permute.xlu1 %1706 }
 0x2ca   :  { %v1784_v35 = vsub.f32 %v7258_v8, %v1707_v44 }
 0x2cc   :  { %v1800_v61 = vmul.f32 1.442695, %v1784_v35  ;;  %v1639_v5 = vpop.xlane.xlu0 %1638 }
 0x2cd   :  { %v6453_v31 = vmax.f32 %v6448_v53, %v1639_v5  ;;  %v1717_v3 = vpop.permute.xlu1 %1716  ;;  %v6478_v53 = vpack.c.bf16 %v2323_v20, %v2316_v63  ;;  %v7268_v20 = vand.u32 4294901760, %v6228_v50 }
 0x2ce   :  { %4617 = vpow2.f32 %v1800_v61  ;;  %v1786_v7 = vsub.f32 %v5747_v47, %v1717_v3 }
 0x2cf   :  { %7260 = vst [vmem:[#allocation57_spill] sm:$0xff] %v6453_v31  ;;  %3407 = vst.msk [vmem:[#allocation2 + $0x78] sm:$0xff] %vm7261_vm1, %v6453_v31  ;;  %1781 = vperm.xlu1 %4615, %v6453_v31   ;;  %v2351_v63 = vsub.f32 %v6228_v50, %v7268_v20 }
 0x2d0   :  { %v1804_v0 = vmul.f32 1.442695, %v1786_v7  ;;  %vm7360_vm1 = vmmov %vm7223_vm0 }
 0x2d1   :  { %v1722_v44 = vpop.permute.xlu1 %1721 }
 0x2d2   :  { %v1787_v8 = vsub.f32 %v5793_v12, %v1722_v44  ;;  %4619 = vpow2.f32 %v1804_v0  ;;  %v7265_v0 = vand.u32 4294901760, %v6211_v30 }
 0x2d4   :  { %v1806_v15 = vmul.f32 1.442695, %v1787_v8  ;;  %v2330_v8 = vsub.f32 %v6211_v30, %v7265_v0 }
 0x2d6   :  { %4621 = vpow2.f32 %v1806_v15  ;;  %v7266_v15 = vand.u32 4294901760, %v6214_v42  ;;  %v2331_v30 = vand.u32 4294901760, %v2330_v8 }
 0x2d8   :  { %v4618_v23 = vpop.eup %4617 }
 0x2d9   :  { %v1832_v5 = vsel %vm5616_vm4, %v4618_v23, 0.0  ;;  %vm7286_vm4 = vnez %v7217_v2 }
 0x2da   :  { %v6465_v61 = vand.u32 4294901760, %v1832_v5 }
 0x2dc   :  { %7263 = vst [vmem:[#allocation36_spill] sm:$0xff] %v6465_v61  ;;  %v6468_v29 = vsub.f32 %v1832_v5, %v6465_v61  ;;  %v4620_v7 = vpop.eup %4619 }
 0x2dd   :  { %v1834_v23 = vsel %vm5721_vm6, %v4620_v7, 0.0 }
 0x2de   :  { %7264 = vst [vmem:[#allocation58_spill] sm:$0xff] %v6468_v29  ;;  %v2156_v31 = vand.u32 4294901760, %v6468_v29 }
 0x2e0   :  { %4140 = vmatprep.mubr.f32.mxu0 %v2156_v31  ;;  %v2157_v47 = vsub.f32 %v6468_v29, %v2156_v31  ;;  %v4622_v35 = vpop.eup %4621 }
 0x2e1   :  { %v1835_v19 = vsel %vm5780_vm9, %v4622_v35, 0.0  ;;  %v6495_v35 = vand.u32 4294901760, %v1834_v23  ;;  %vm7324_vm9 = vmmov %vm7223_vm0 }
 0x2e2   :  { %v2158_v3 = vand.u32 4294901760, %v2157_v47  ;;  %v2337_v47 = vsub.f32 %v6214_v42, %v7266_v15  ;;  %v2352_v15 = vand.u32 4294901760, %v2351_v63 }
 0x2e4   :  { %3972 = vmatprep.mubr.f32.mxu1 %v2158_v3  ;;  %v7267_v3 = vand.u32 4294901760, %v6225_v9  ;;  %v6492_v42 = vpack.c.bf16 %v2337_v47, %v2330_v8 }
 0x2e6   :  { %v2344_v7 = vsub.f32 %v6225_v9, %v7267_v3  ;;  %7269 = vst [vmem:[#allocation59_spill] sm:$0xff] %v6492_v42  ;;  %v7270_v9 = vand.u32 4294901760, %v6245_v56  ;;  %v6513_v42 = vsub.f32 %v1834_v23, %v6495_v35 }
 0x2e7   :  { %1880 = vadd.xlane.f32.xlu0 %v1832_v5 }
 0x2e8   :  { %v2345_v6 = vand.u32 4294901760, %v2344_v7  ;;  %7273 = vst [vmem:[#allocation61_spill] sm:$0xff] %v6513_v42 }
 0x2e9   :  { %v1712_v12 = vpop.permute.xlu0 %1711 }
 0x2ea   :  { %v1785_v44 = vsub.f32 %v5927_v11, %v1712_v12  ;;  %v2346_v29 = vsub.f32 %v2344_v7, %v2345_v6 }
 0x2eb   :  { %1884 = vadd.xlane.f32.xlu0 %v1834_v23  ;;  %v7274_v23 = vand.u32 4294901760, %v6273_v18 }
 0x2ec   :  { %v1802_v31 = vmul.f32 1.442695, %v1785_v44  ;;  %v2338_v44 = vand.u32 4294901760, %v2337_v47 }
 0x2ed   :  { %v1727_v5 = vpop.permute.xlu1 %1726 }
 0x2ee   :  { %4623 = vpow2.f32 %v1802_v31  ;;  %v1788_v11 = vsub.f32 %v5940_v55, %v1727_v5  ;;  %v2332_v31 = vsub.f32 %v2330_v8, %v2331_v30  ;;  %v6500_v5 = vsub.f32 %v6245_v56, %v7270_v9 }
 0x2ef   :  { %1886 = vadd.xlane.f32.xlu0 %v1835_v19  ;;  %v2339_v50 = vsub.f32 %v2337_v47, %v2338_v44  ;;  %v6515_v56 = vpack.c.bf16 %v2338_v44, %v2331_v30  ;;  %v2353_v47 = vsub.f32 %v2351_v63, %v2352_v15 }
 0x2f0   :  { %v1808_v12 = vmul.f32 1.442695, %v1788_v11  ;;  %v7271_v11 = vand.u32 4294901760, %v6248_v54  ;;  %v7282_v26 = vand.u32 4294901760, %v6500_v5 }
 0x2f1   :  { %v1732_v0 = vpop.permute.xlu1 %1731  ;;  %v2340_v61 = vand.u32 4294901760, %v2339_v50  ;;  %v2354_v43 = vand.u32 4294901760, %v2353_v47 }
 0x2f2   :  { %4625 = vpow2.f32 %v1808_v12  ;;  %v1789_v55 = vsub.f32 %v5836_v62, %v1732_v0  ;;  %v6505_v20 = vsub.f32 %v6248_v54, %v7271_v11  ;;  %v6507_v12 = vpack.c.bf16 %v2351_v63, %v2344_v7 }
 0x2f3   :  { %v6509_v62 = vand.u32 4294901760, %v1835_v19  ;;  %v2333_v11 = vand.u32 4294901760, %v2332_v31  ;;  %v6527_v7 = vsub.f32 %v6273_v18, %v7274_v23  ;;  %v2176_v31 = vand.u32 4294901760, %v6513_v42 }
 0x2f4   :  { %v1810_v3 = vmul.f32 1.442695, %v1789_v55  ;;  %7272 = vst [vmem:[#allocation60_spill] sm:$0xff] %v6507_v12  ;;  %v7130_v55 = vand.u32 4294901760, %v6500_v5  ;;  %v7129_v12 = vand.u32 4294901760, %v6505_v20  ;;  %v6531_v30 = vpack.c.bf16 %v6505_v20, %v6500_v5 }
 0x2f5   :  { %v1737_v0 = vpop.permute.xlu1 %1736  ;;  %v6520_v45 = vsub.f32 %v1835_v19, %v6509_v62  ;;  %v2347_v19 = vand.u32 4294901760, %v2346_v29  ;;  %v7275_v18 = vand.u32 4294901760, %v6276_v59  ;;  %v6552_v29 = vpack.c.bf16 %v2352_v15, %v2345_v6 }
 0x2f6   :  { %4627 = vpow2.f32 %v1810_v3  ;;  %v1790_v8 = vsub.f32 %v5958_v32, %v1737_v0  ;;  %v6540_v50 = vsub.f32 %v6500_v5, %v7130_v55  ;;  %v2367_v23 = vsub.f32 %v6505_v20, %v7129_v12 }
 0x2f7   :  { %v6545_v0 = vsub.f32 %v6276_v59, %v7275_v18  ;;  %v2373_v59 = vand.u32 4294901760, %v6527_v7  ;;  %v2177_v24 = vsub.f32 %v6513_v42, %v2176_v31  ;;  %v6569_v15 = vpack.c.bf16 %v2354_v43, %v2347_v19 }
 0x2f8   :  { %v4624_v9 = vpop.eup %4623  ;;  %v1812_v54 = vmul.f32 1.442695, %v1790_v8  ;;  %v7278_v55 = vand.u32 4294901760, %v6301_v38  ;;  %v7279_v19 = vand.u32 4294901760, %v6304_v37  ;;  %v2368_v42 = vand.u32 4294901760, %v2367_v23 }
 0x2f9   :  { %v1742_v3 = vpop.permute.xlu1 %1741  ;;  %v1833_v32 = vsel %vm5911_vm5, %v4624_v9, 0.0  ;;  %v6566_v6 = vpack.c.bf16 %v6545_v0, %v6527_v7  ;;  %vm7347_vm5 = vmmov %vm7223_vm0 }
 0x2fa   :  { %4629 = vpow2.f32 %v1812_v54  ;;  %v1791_v63 = vsub.f32 %v5888_v28, %v1742_v3  ;;  %1882 = vadd.xlane.f32.xlu1 %v1833_v32  ;;  %v6534_v44 = vand.u32 4294901760, %v1833_v32  ;;  %v6550_v54 = vpack.c.bf16 %v2340_v61, %v2333_v11 }
 0x2fb   :  { %v2186_v3 = vand.u32 4294901760, %v6520_v45  ;;  %7277 = vst [vmem:[#allocation63_spill] sm:$0xff] %v6566_v6  ;;  %v2361_v11 = vand.u32 4294901760, %v6540_v50  ;;  %v6580_v6 = vsub.f32 %v6301_v38, %v7278_v55  ;;  %v6585_v43 = vsub.f32 %v6304_v37, %v7279_v19 }
 0x2fc   :  { %v4626_v8 = vpop.eup %4625  ;;  %v1814_v9 = vmul.f32 1.442695, %v1791_v63  ;;  %v6548_v28 = vsub.f32 %v1833_v32, %v6534_v44  ;;  %v2380_v32 = vand.u32 4294901760, %v6545_v0 }
 0x2fd   :  { %v1836_v47 = vsel %vm5932_vm7, %v4626_v8, 0.0  ;;  %v2187_v37 = vsub.f32 %v6520_v45, %v2186_v3  ;;  %vm7349_vm7 = vmmov %vm7223_vm0 }
 0x2fe   :  { %7276 = vst [vmem:[#allocation62_spill] sm:$0xff] %v6548_v28  ;;  %4631 = vpow2.f32 %v1814_v9  ;;  %v6561_v63 = vand.u32 4294901760, %v1836_v47  ;;  %1888 = vadd.xlane.f32.xlu1 %v1836_v47  ;;  %v2166_v61 = vand.u32 4294901760, %v6548_v28  ;;  %v2381_v36 = vsub.f32 %v6545_v0, %v2380_v32 }
 0x300   :  { %v4628_v18 = vpop.eup %4627  ;;  %v6574_v8 = vsub.f32 %v1836_v47, %v6561_v63  ;;  %v1747_v9 = vpop.permute.xlu1 %1746  ;;  %4141 = vmatmul.mubr.f32.vlgmr.msra.gmra.mrb[0].mxu0 %v2166_v61  ;;  %v2167_v12 = vsub.f32 %v6548_v28, %v2166_v61  ;;  %v6592_v61 = vsub.f32 %v6527_v7, %v2373_v59 }
 0x301   :  { %v1792_v50 = vsub.f32 %v5998_v4, %v1747_v9  ;;  %4143 = vmatprep.mubr.f32.mxu0 %v2176_v31  ;;  %v1837_v47 = vsel %vm5824_vm11, %v4628_v18, 0.0  ;;  %4407 = vmatpush3.bf16.msra.mxu0 %v6439_v60  ;;  %v2178_v31 = vand.u32 4294901760, %v2177_v24  ;;  %v6602_v60 = vpack.c.bf16 %v6585_v43, %v6580_v6  ;;  %vm7332_vm11 = vmmov %vm7223_vm0 }
 0x302   :  { %1890 = vadd.xlane.f32.xlu0 %v1837_v47  ;;  %v6594_v38 = vand.u32 4294901760, %v1837_v47  ;;  %v2168_v55 = vand.u32 4294901760, %v2167_v12  ;;  %v2196_v28 = vand.u32 4294901760, %v6574_v8  ;;  %4409 = vmatprep.subr.bf16.mxu0 %v6515_v56  ;;  %v2387_v18 = vand.u32 4294901760, %v6580_v6 }
 0x303   :  { %v1816_v4 = vmul.f32 1.442695, %v1792_v50  ;;  %v2394_v9 = vand.u32 4294901760, %v6585_v43  ;;  %v7280_v24 = vand.u32 4294901760, %v6327_v27  ;;  %v7281_v50 = vand.u32 4294901760, %v6330_v13 }
 0x304   :  { %v4630_v7 = vpop.eup %4629  ;;  %v6605_v23 = vsub.f32 %v1837_v47, %v6594_v38  ;;  %3973 = vmatmul.mubr.f32.vlgmr.msra.gmra.mrb[0].mxu1 %v2168_v55  ;;  %4144 = vmatmul.mubr.f32.gmra.mrb[2].mxu0 %v2186_v3  ;;  %v2197_v12 = vsub.f32 %v6574_v8, %v2196_v28  ;;  %v2188_v55 = vand.u32 4294901760, %v2187_v37 }
 0x305   :  { %4633 = vpow2.f32 %v1816_v4  ;;  %3975 = vmatprep.mubr.f32.mxu1 %v2178_v31  ;;  %4146 = vmatprep.mubr.f32.mxu0 %v2196_v28  ;;  %v1838_v0 = vsel %vm5948_vm8, %v4630_v7, 0.0  ;;  %v6615_v19 = vsub.f32 %v6327_v27, %v7280_v24  ;;  %v6620_v3 = vsub.f32 %v6330_v13, %v7281_v50  ;;  %vm7351_vm8 = vmmov %vm7223_vm0 }
 0x306   :  { %v6622_v47 = vand.u32 4294901760, %v1838_v0  ;;  %1892 = vadd.xlane.f32.xlu1 %v1838_v0  ;;  %v2206_v4 = vand.u32 4294901760, %v6605_v23  ;;  %v2198_v28 = vand.u32 4294901760, %v2197_v12  ;;  %4311 = vmatpush3.bf16.msra.mxu1 %v6450_v58  ;;  %v7283_v27 = vand.u32 4294901760, %v6505_v20 }
 0x307   :  { %4411 = vmatpush3.bf16.msra.mxu0 %v6515_v56  ;;  %4313 = vmatprep.subr.bf16.mxu1 %v6550_v54  ;;  %v4320_v13 = vpack.c.bf16 %v2368_v42, %v2361_v11  ;;  %v6632_v7 = vpack.c.bf16 %v2380_v32, %v2373_v59  ;;  %v6640_v56 = vpack.c.bf16 %v6620_v3, %v6615_v19  ;;  %v2375_v42 = vand.u32 4294901760, %v6592_v61 }
 0x308   :  { %v4416_v31 = vpack.c.bf16 %v7283_v27, %v7282_v26  ;;  %v4632_v24 = vpop.eup %4631  ;;  %v6635_v37 = vsub.f32 %v1838_v0, %v6622_v47  ;;  %3976 = vmatmul.mubr.f32.gmra.mrb[2].mxu1 %v2188_v55  ;;  %4147 = vmatmul.mubr.f32.gmra.mrb[4].mxu0 %v2206_v4  ;;  %v2207_v58 = vsub.f32 %v6605_v23, %v2206_v4  ;;  %v2382_v20 = vand.u32 4294901760, %v2381_v36 }
 0x309   :  { %3978 = vmatprep.mubr.f32.mxu1 %v2198_v28  ;;  %v1839_v5 = vsel %vm5875_vm13, %v4632_v24, 0.0  ;;  %4413 = vmatprep.subr.bf16.mxu0 %v6552_v29  ;;  %v2388_v59 = vsub.f32 %v6580_v6, %v2387_v18  ;;  %v2395_v50 = vsub.f32 %v6585_v43, %v2394_v9  ;;  %v7284_v61 = vand.u32 4294901760, %v6346_v25  ;;  %vm7338_vm13 = vmmov %vm7223_vm0 }
 0x30a   :  { %1894 = vadd.xlane.f32.xlu0 %v1839_v5  ;;  %v6647_v11 = vand.u32 4294901760, %v1839_v5  ;;  %v1752_v32 = vpop.permute.xlu1 %1751  ;;  %v2208_v12 = vand.u32 4294901760, %v2207_v58  ;;  %v2216_v0 = vand.u32 4294901760, %v6635_v37  ;;  %4315 = vmatpush3.bf16.msra.mxu1 %v6550_v54  ;;  %v7285_v36 = vand.u32 4294901760, %v6349_v34 }
 0x30b   :  { %v1793_v21 = vsub.f32 %v6017_v16, %v1752_v32  ;;  %4415 = vmatpush3.bf16.msra.mxu0 %v6552_v29  ;;  %4317 = vmatprep.subr.bf16.mxu1 %v6569_v15  ;;  %v6658_v6 = vsub.f32 %v6346_v25, %v7284_v61  ;;  %v2401_v29 = vand.u32 4294901760, %v6615_v19  ;;  %v2408_v43 = vand.u32 4294901760, %v6620_v3 }
 0x30c   :  { %v6663_v55 = vsub.f32 %v6349_v34, %v7285_v36  ;;  %v6666_v54 = vsub.f32 %v1839_v5, %v6647_v11  ;;  %3979 = vmatmul.mubr.f32.gmra.mrb[4].mxu1 %v2208_v12  ;;  %4149 = vmatprep.mubr.f32.mxu0 %v2216_v0  ;;  %v2217_v16 = vsub.f32 %v6635_v37, %v2216_v0  ;;  %v2389_v58 = vand.u32 4294901760, %v2388_v59 }
 0x30d   :  { %v1818_v4 = vmul.f32 1.442695, %v1793_v21  ;;  %4417 = vmatprep.subr.bf16.mxu0 %v4416_v31  ;;  %v4324_v25 = vpack.c.bf16 %v2382_v20, %v2375_v42  ;;  %v4424_v28 = vpack.c.bf16 %v2394_v9, %v2387_v18  ;;  %v2396_v5 = vand.u32 4294901760, %v2395_v50 }
 0x30e   :  { %v6673_v26 = vpack.c.bf16 %v6663_v55, %v6658_v6  ;;  %v1762_v34 = vpop.permute.xlu1 %1761  ;;  %v2218_v27 = vand.u32 4294901760, %v2217_v16  ;;  %v2226_v24 = vand.u32 4294901760, %v6666_v54  ;;  %4319 = vmatpush3.bf16.msra.mxu1 %v6569_v15  ;;  %v2415_v18 = vand.u32 4294901760, %v6658_v6 }
 0x30f   :  { %v4634_v32 = vpop.eup %4633  ;;  %4635 = vpow2.f32 %v1818_v4  ;;  %v1795_v12 = vsub.f32 %v6030_v14, %v1762_v34  ;;  %4419 = vmatpush3.bf16.msra.mxu0 %v4416_v31  ;;  %4321 = vmatprep.subr.bf16.mxu1 %v4320_v13  ;;  %v2422_v9 = vand.u32 4294901760, %v6663_v55  ;;  %v2402_v15 = vsub.f32 %v6615_v19, %v2401_v29 }
 0x310   :  { %3981 = vmatprep.mubr.f32.mxu1 %v2218_v27  ;;  %4150 = vmatmul.mubr.f32.gmra.mrb[6].mxu0 %v2226_v24  ;;  %v1840_v42 = vsel %vm5987_vm14, %v4634_v32, 0.0  ;;  %v2227_v20 = vsub.f32 %v6666_v54, %v2226_v24  ;;  %v2409_v59 = vsub.f32 %v6620_v3, %v2408_v43  ;;  %v4428_v61 = vpack.c.bf16 %v2408_v43, %v2401_v29  ;;  %vm7354_vm14 = vmmov %vm7223_vm0 }
 0x311   :  { %v1822_v0 = vmul.f32 1.442695, %v1795_v12  ;;  %v6685_v50 = vand.u32 4294901760, %v1840_v42  ;;  %1896 = vadd.xlane.f32.xlu1 %v1840_v42  ;;  %v1757_v14 = vpop.permute.xlu0 %1756  ;;  %4421 = vmatprep.subr.bf16.mxu0 %v6632_v7  ;;  %v2416_v19 = vsub.f32 %v6658_v6, %v2415_v18  ;;  %v2423_v3 = vsub.f32 %v6663_v55, %v2422_v9 }
 0x312   :  { %v1794_v31 = vsub.f32 %v6041_v51, %v1757_v14  ;;  %v2228_v21 = vand.u32 4294901760, %v2227_v20  ;;  %4323 = vmatpush3.bf16.msra.mxu1 %v4320_v13  ;;  %v4328_v16 = vpack.c.bf16 %v2396_v5, %v2389_v58  ;;  %v2403_v4 = vand.u32 4294901760, %v2402_v15 }
 0x313   :  { %4637 = vpow2.f32 %v1822_v0  ;;  %v6690_v41 = vsub.f32 %v1840_v42, %v6685_v50  ;;  %4423 = vmatpush3.bf16.msra.mxu0 %v6632_v7  ;;  %4325 = vmatprep.subr.bf16.mxu1 %v4324_v25  ;;  %v2410_v51 = vand.u32 4294901760, %v2409_v59  ;;  %v2417_v7 = vand.u32 4294901760, %v2416_v19 }
 0x314   :  { %v1820_v36 = vmul.f32 1.442695, %v1794_v31  ;;  %3982 = vmatmul.mubr.f32.gmra.mrb[6].mxu1 %v2228_v21  ;;  %4425 = vmatprep.subr.bf16.mxu0 %v4424_v28  ;;  %v2424_v43 = vand.u32 4294901760, %v2423_v3  ;;  %v4432_v27 = vpack.c.bf16 %v2422_v9, %v2415_v18 }
 0x315   :  { %v2236_v13 = vand.u32 4294901760, %v6690_v41  ;;  %v4332_v6 = vpack.c.bf16 %v2410_v51, %v2403_v4 }
 0x316   :  { %4639 = vpow2.f32 %v1820_v36  ;;  %4327 = vmatpush3.bf16.msra.mxu1 %v4324_v25  ;;  %v4336_v25 = vpack.c.bf16 %v2424_v43, %v2417_v7 }
 0x317   :  { %4152 = vmatprep.mubr.f32.mxu0 %v2236_v13  ;;  %v2237_v29 = vsub.f32 %v6690_v41, %v2236_v13  ;;  %4427 = vmatpush3.bf16.msra.mxu0 %v4424_v28 }
 0x318   :  { %4329 = vmatprep.subr.bf16.mxu1 %v4328_v16  ;;  %4429 = vmatprep.subr.bf16.mxu0 %v4428_v61 }
 0x319   :  { %v4636_v55 = vpop.eup %4635  ;;  %v2238_v34 = vand.u32 4294901760, %v2237_v29 }
 0x31a   :  { %v1841_v24 = vsel %vm6008_vm3, %v4636_v55, 0.0  ;;  %4331 = vmatpush3.bf16.msra.mxu1 %v4328_v16  ;;  %vm7355_vm3 = vmmov %vm7223_vm0 }
 0x31b   :  { %1898 = vadd.xlane.f32.xlu0 %v1841_v24  ;;  %v6699_v58 = vand.u32 4294901760, %v1841_v24  ;;  %3984 = vmatprep.mubr.f32.mxu1 %v2238_v34 }
 0x31c   :  { %4431 = vmatpush3.bf16.msra.mxu0 %v4428_v61  ;;  %4333 = vmatprep.subr.bf16.mxu1 %v4332_v6 }
 0x31d   :  { %v4638_v28 = vpop.eup %4637  ;;  %v6702_v5 = vsub.f32 %v1841_v24, %v6699_v58  ;;  %4433 = vmatprep.subr.bf16.mxu0 %v4432_v27 }
 0x31e   :  { %v1843_v32 = vsel %vm6023_vm10, %v4638_v28, 0.0  ;;  %4335 = vmatpush3.bf16.msra.mxu1 %v4332_v6  ;;  %vm7356_vm10 = vmmov %vm7223_vm0 }
 0x31f   :  { %1902 = vadd.xlane.f32.xlu0 %v1843_v32  ;;  %v6706_v49 = vand.u32 4294901760, %v1843_v32  ;;  %v2246_v12 = vand.u32 4294901760, %v6702_v5  ;;  %4337 = vmatprep.subr.bf16.mxu1 %v4336_v25 }
 0x320   :  { %v4640_v18 = vpop.eup %4639  ;;  %4435 = vmatpush3.bf16.msra.mxu0 %v4432_v27 }
 0x321   :  { %v6710_v9 = vsub.f32 %v1843_v32, %v6706_v49  ;;  %4153 = vmatmul.mubr.f32.gmra.mrb[8].mxu0 %v2246_v12  ;;  %v1842_v42 = vsel %vm6034_vm12, %v4640_v18, 0.0  ;;  %v2247_v20 = vsub.f32 %v6702_v5, %v2246_v12  ;;  %4437 = vmatprep.subr.bf16.mxu0 %v6197_v1  ;;  %vm7357_vm12 = vmmov %vm7223_vm0 }
 0x322   :  { %1900 = vadd.xlane.f32.xlu1 %v1842_v42  ;;  %v6716_v48 = vand.u32 4294901760, %v1842_v42  ;;  %4339 = vmatpush3.bf16.msra.mxu1 %v4336_v25 }
 0x323   :  { %v2248_v15 = vand.u32 4294901760, %v2247_v20  ;;  %v2266_v59 = vand.u32 4294901760, %v6710_v9  ;;  %4341 = vmatprep.subr.bf16.mxu1 %v6478_v53 }
 0x324   :  { %v6721_v0 = vsub.f32 %v1842_v42, %v6716_v48 }
 0x325   :  { %3985 = vmatmul.mubr.f32.gmra.mrb[8].mxu1 %v2248_v15  ;;  %v2267_v14 = vsub.f32 %v6710_v9, %v2266_v59  ;;  %v1656_v15 = vsub.f32 %v6044_v10, %v6049_v39  ;;  %v7290_v39 = vld [vmem:[#allocation31_spill] sm:$0xff] }
 0x326   :  { %v2256_v46 = vand.u32 4294901760, %v6721_v0  ;;  %vm7291_vm6 = vnez %v7290_v39  ;;  %v7308_v39 = vld [vmem:[#allocation19_spill] sm:$0xff] }
 0x327   :  { %v2268_v61 = vand.u32 4294901760, %v2267_v14 }
 0x328   :  { %4155 = vmatprep.mubr.f32.mxu0 %v2256_v46  ;;  %v2257_v31 = vsub.f32 %v6721_v0, %v2256_v46  ;;  %v1672_v46 = vmul.f32 1.442695, %v1656_v15  ;;  %v7302_v15 = vld [vmem:[#allocation25_spill] sm:$0xff] }
 0x329   :  { %4156 = vmatmul.mubr.f32.gmra.mrb[10].mxu0 %v2266_v59 }
 0x32a   :  { %v2258_v21 = vand.u32 4294901760, %v2257_v31 }
 0x32c   :  { %3987 = vmatprep.mubr.f32.mxu1 %v2258_v21 }
 0x32d   :  { %3988 = vmatmul.mubr.f32.gmra.mrb[10].mxu1 %v2268_v61  ;;  %v7287_v61 = vld [vmem:[#allocation38_spill] sm:$0xff] }
 0x338   :  { %v1772_v19 = vpop.permute.xlu1 %1771 }
 0x339   :  { %v1797_v3 = vsub.f32 %v6113_v40, %v1772_v19  ;;  %v7288_v19 = vld [vmem:[#allocation20_spill] sm:$0xff] }
 0x33b   :  { %v1826_v36 = vmul.f32 1.442695, %v1797_v3  ;;  %v1767_v16 = vpop.permute.xlu0 %1766  ;;  %v7289_v3 = vsub.f32 %v7287_v61, %v7288_v19  ;;  %v7305_v61 = vld [vmem:[#allocation34_spill] sm:$0xff] }
 0x33c   :  { %v1796_v4 = vsub.f32 %v6128_v52, %v1767_v16  ;;  %v7306_v19 = vld [vmem:[#allocation30_spill] sm:$0xff] }
 0x33d   :  { %4641 = vpow2.f32 %v1826_v36  ;;  %v1676_v10 = vmul.f32 1.442695, %v7289_v3  ;;  %v7307_v3 = vsub.f32 %v7305_v61, %v7306_v19 }
 0x33e   :  { %v1824_v51 = vmul.f32 1.442695, %v1796_v4 }
 0x340   :  { %4643 = vpow2.f32 %v1824_v51 }
 0x347   :  { %v4642_v13 = vpop.eup %4641  ;;  %v1777_v29 = vpop.permute.xlu0 %1776 }
 0x348   :  { %v1798_v7 = vsub.f32 %v6158_v17, %v1777_v29  ;;  %v1845_v43 = vsel %vm6103_vm2, %v4642_v13, 0.0  ;;  %v7292_v13 = vld [vmem:[#allocation28_spill] sm:$0xff]  ;;  %vm7358_vm2 = vmmov %vm7223_vm0 }
 0x349   :  { %1906 = vadd.xlane.f32.xlu0 %v1845_v43  ;;  %v6731_v6 = vand.u32 4294901760, %v1845_v43  ;;  %v7293_v29 = vld [vmem:[#allocation32_spill] sm:$0xff] }
 0x34a   :  { %v4644_v55 = vpop.eup %4643  ;;  %v1828_v34 = vmul.f32 1.442695, %v1798_v7  ;;  %v7294_v7 = vsub.f32 %v7292_v13, %v7293_v29  ;;  %v7312_v29 = vld [vmem:[#allocation59_spill] sm:$0xff] }
 0x34b   :  { %v6734_v40 = vsub.f32 %v1845_v43, %v6731_v6  ;;  %v1844_v52 = vsel %vm6115_vm15, %v4644_v55, 0.0  ;;  %vm7359_vm15 = vmmov %vm7223_vm0 }
 0x34c   :  { %4645 = vpow2.f32 %v1828_v34  ;;  %1904 = vadd.xlane.f32.xlu1 %v1844_v52  ;;  %v6738_v27 = vand.u32 4294901760, %v1844_v52  ;;  %v1678_v43 = vmul.f32 1.442695, %v7294_v7  ;;  %v1848_v7 = vld [vmem:[#allocation3] sm:$0xff] }
 0x34d   :  { %v2286_v17 = vand.u32 4294901760, %v6734_v40 }
 0x34e   :  { %v6742_v57 = vsub.f32 %v1844_v52, %v6738_v27  ;;  %v1782_v24 = vpop.permute.xlu1 %1781  ;;  %v7295_v52 = vld [vmem:[#allocation23_spill] sm:$0xff] }
 0x34f   :  { %v1799_v25 = vsub.f32 %v6173_v33, %v1782_v24  ;;  %v2287_v12 = vsub.f32 %v6734_v40, %v2286_v17 }
 0x350   :  { %v2276_v28 = vand.u32 4294901760, %v6742_v57 }
 0x351   :  { %v1830_v32 = vmul.f32 1.442695, %v1799_v25  ;;  %v2288_v42 = vand.u32 4294901760, %v2287_v12  ;;  %v7300_v12 = vld [vmem:[#allocation33_spill] sm:$0xff] }
 0x352   :  { %4158 = vmatprep.mubr.f32.mxu0 %v2276_v28  ;;  %v2277_v22 = vsub.f32 %v6742_v57, %v2276_v28  ;;  %v7298_v28 = vld [vmem:[#allocation36_spill] sm:$0xff] }
 0x353   :  { %4647 = vpow2.f32 %v1830_v32  ;;  %4159 = vmatmul.mubr.f32.gmra.mrb[12].mxu0 %v2286_v17  ;;  %v7296_v17 = vld [vmem:[#allocation21_spill] sm:$0xff]  ;;  %v7299_v32 = vld [vmem:[#allocation22_spill] sm:$0xff] }
 0x354   :  { %v2278_v18 = vand.u32 4294901760, %v2277_v22  ;;  %4649 = vpow2.f32 %v1672_v46  ;;  %v7297_v24 = vsub.f32 %v7295_v52, %v7296_v17  ;;  %v7301_v22 = vsub.f32 %v7299_v32, %v7300_v12  ;;  %v7316_v52 = vld [vmem:[#allocation35_spill] sm:$0xff]  ;;  %v1850_v32 = vld [vmem:[#allocation3 + $0x10] sm:$0xff] }
 0x355   :  { %4651 = vpow2.f32 %v1676_v10  ;;  %v1686_v10 = vmul.f32 1.442695, %v7307_v3 }
 0x356   :  { %v4646_v20 = vpop.eup %4645  ;;  %3990 = vmatprep.mubr.f32.mxu1 %v2278_v18  ;;  %4653 = vpow2.f32 %v1678_v43  ;;  %v1674_v25 = vmul.f32 1.442695, %v7297_v24  ;;  %v1682_v18 = vmul.f32 1.442695, %v7301_v22  ;;  %v7313_v43 = vld [vmem:[#allocation45_spill] sm:$0xff]  ;;  %v7317_v22 = vld [vmem:[#allocation43_spill] sm:$0xff] }
 0x357   :  { %3991 = vmatmul.mubr.f32.gmra.mrb[12].mxu1 %v2288_v42  ;;  %v1846_v33 = vsel %vm7286_vm4, %v4646_v20, 0.0  ;;  %vm7361_vm4 = vmmov %vm7223_vm0 }
 0x358   :  { %1908 = vadd.xlane.f32.xlu1 %v1846_v33  ;;  %v6752_v59 = vand.u32 4294901760, %v1846_v33  ;;  %4655 = vpow2.f32 %v1674_v25 }
 0x359   :  { %4657 = vpow2.f32 %v1682_v18  ;;  %v7318_v18 = vld [vmem:[#allocation44_spill] sm:$0xff] }
 0x35a   :  { %v6755_v14 = vsub.f32 %v1846_v33, %v6752_v59  ;;  %v7303_v33 = vld [vmem:[#allocation39_spill] sm:$0xff] }
 0x35b   :  { %v7304_v46 = vsub.f32 %v7302_v15, %v7303_v33  ;;  %v7320_v33 = vld [vmem:[#allocation60_spill] sm:$0xff] }
 0x35c   :  { %v2296_v31 = vand.u32 4294901760, %v6755_v14 }
 0x35d   :  { %v4648_v21 = vpop.eup %4647 }
 0x35e   :  { %4161 = vmatprep.mubr.f32.mxu0 %v2296_v31  ;;  %v1847_v2 = vsel %vm7291_vm6, %v4648_v21, 0.0  ;;  %v2297_v36 = vsub.f32 %v6755_v14, %v2296_v31  ;;  %v4650_v20 = vpop.eup %4649  ;;  %v1680_v31 = vmul.f32 1.442695, %v7304_v46  ;;  %vm7362_vm6 = vmmov %vm7223_vm0 }
 0x35f   :  { %1910 = vadd.xlane.f32.xlu0 %v1847_v2  ;;  %v6764_v16 = vand.u32 4294901760, %v1847_v2  ;;  %v4652_v21 = vpop.eup %4651  ;;  %v1864_v17 = vmul.f32 %v4650_v20, %v1848_v7  ;;  %v7327_v7 = vld [vmem:[#allocation50_spill] sm:$0xff] }
 0x360   :  { %v2298_v4 = vand.u32 4294901760, %v2297_v36  ;;  %4659 = vpow2.f32 %v1680_v31  ;;  %v7310_v36 = vld [vmem:[#allocation29_spill] sm:$0xff]  ;;  %v7322_v31 = vld [vmem:[#allocation48_spill] sm:$0xff]  ;;  %v1866_v3 = vmul.f32 %v4652_v21, %v1850_v32  ;;  %v7333_v32 = vld [vmem:[#allocation27_spill] sm:$0xff] }
 0x361   :  { %v6767_v51 = vsub.f32 %v1847_v2, %v6764_v16  ;;  %4661 = vpow2.f32 %v1686_v10  ;;  %v7309_v2 = vld [vmem:[#allocation26_spill] sm:$0xff]  ;;  %v7325_v10 = vld [vmem:[#allocation24_spill] sm:$0xff] }
 0x362   :  { %3993 = vmatprep.mubr.f32.mxu1 %v2298_v4  ;;  %v7311_v4 = vsub.f32 %v7309_v2, %v7310_v36  ;;  %v1851_v2 = vld [vmem:[#allocation3 + $0x18] sm:$0xff] }
 0x363   :  { %v2306_v55 = vand.u32 4294901760, %v6767_v51 }
 0x364   :  { %v1684_v13 = vmul.f32 1.442695, %v7311_v4 }
 0x365   :  { %4162 = vmatmul.mubr.f32.gmra.mrb[14].mxu0 %v2306_v55  ;;  %v2307_v34 = vsub.f32 %v6767_v51, %v2306_v55 }
 0x366   :  { %4196 = vmatprep.mubr.f32.mxu0 %v7298_v28  ;;  %4663 = vpow2.f32 %v1684_v13 }
 0x367   :  { %v2308_v42 = vand.u32 4294901760, %v2307_v34 }
 0x369   :  { %1963 = vperm.xlu1 %4615, %v4650_v20   ;;  %3994 = vmatmul.mubr.f32.gmra.mrb[14].mxu1 %v2308_v42  ;;  %v7319_v42 = vsub.f32 %v7317_v22, %v7318_v18  ;;  %v7321_v20 = vld [vmem:[#allocation47_spill] sm:$0xff] }
 0x36a   :  { %4197 = vmatmul.mubr.f32.vlgmr.msra.gmra.mrb[0].mxu0 %v6534_v44  ;;  %4028 = vmatprep.mubr.f32.mxu1 %v7298_v28  ;;  %v7323_v61 = vsub.f32 %v7321_v20, %v7322_v31  ;;  %v7339_v20 = vld [vmem:[#allocation37_spill] sm:$0xff] }
 0x36b   :  { %4199 = vmatprep.mubr.f32.mxu0 %v6495_v35  ;;  %4439 = vmatpush3.bf16.msra.mxu0 %v6197_v1  ;;  %v4654_v1 = vpop.eup %4653  ;;  %v1688_v15 = vmul.f32 1.442695, %v7319_v42  ;;  %v7340_v31 = vld [vmem:[#allocation57_spill] sm:$0xff] }
 0x36c   :  { %4441 = vmatprep.subr.bf16.mxu0 %v7308_v39  ;;  %v6810_v24 = vpop.eup %4655  ;;  %v1694_v19 = vmul.f32 1.442695, %v7323_v61  ;;  %v7341_v61 = vsub.f32 %v7339_v20, %v7340_v31  ;;  %v7350_v20 = vld [vmem:[#allocation58_spill] sm:$0xff] }
 0x36d   :  { %1973 = vperm.xlu1 %4615, %v4652_v21   ;;  %4029 = vmatmul.mubr.f32.vlgmr.msra.gmra.mrb[0].mxu1 %v6534_v44  ;;  %v6814_v12 = vpop.eup %4657  ;;  %v7352_v31 = vld [vmem:[#allocation62_spill] sm:$0xff] }
 0x36e   :  { %4343 = vmatpush3.bf16.msra.mxu1 %v6478_v53  ;;  %4200 = vmatmul.mubr.f32.gmra.mrb[2].mxu0 %v6509_v62  ;;  %v7314_v53 = vld [vmem:[#allocation46_spill] sm:$0xff]  ;;  %v6831_v36 = vpop.eup %4659 }
 0x36f   :  { %4031 = vmatprep.mubr.f32.mxu1 %v6495_v35  ;;  %4202 = vmatprep.mubr.f32.mxu0 %v6561_v63  ;;  %v7315_v55 = vsub.f32 %v7313_v43, %v7314_v53  ;;  %v6835_v13 = vpop.eup %4661  ;;  %v7329_v53 = vld [vmem:[#allocation51_spill] sm:$0xff] }
 0x370   :  { %4443 = vmatpush3.bf16.msra.mxu0 %v7308_v39  ;;  %4345 = vmatprep.subr.bf16.mxu1 %v7312_v29  ;;  %v6852_v18 = vpop.eup %4663 }
 0x371   :  { %v1690_v34 = vmul.f32 1.442695, %v7315_v55  ;;  %1978 = vperm.xlu1 %4615, %v4654_v1   ;;  %4032 = vmatmul.mubr.f32.gmra.mrb[2].mxu1 %v6509_v62  ;;  %v7330_v55 = vld [vmem:[#allocation52_spill] sm:$0xff] }
 0x372   :  { %4347 = vmatpush3.bf16.msra.mxu1 %v7312_v29  ;;  %4203 = vmatmul.mubr.f32.gmra.mrb[4].mxu0 %v6594_v38  ;;  %v7326_v29 = vld [vmem:[#allocation49_spill] sm:$0xff] }
 0x373   :  { %4445 = vmatprep.subr.bf16.mxu0 %v7316_v52  ;;  %4034 = vmatprep.mubr.f32.mxu1 %v6561_v63  ;;  %4665 = vpow2.f32 %v1690_v34  ;;  %v7328_v21 = vsub.f32 %v7326_v29, %v7327_v7  ;;  %v7331_v34 = vsub.f32 %v7329_v53, %v7330_v55  ;;  %v1849_v7 = vld [vmem:[#allocation3 + $0x8] sm:$0xff]  ;;  %v7346_v53 = vld [vmem:[#allocation41_spill] sm:$0xff] }
 0x374   :  { %4205 = vmatprep.mubr.f32.mxu0 %v6622_v47  ;;  %4447 = vmatpush3.bf16.msra.mxu0 %v7316_v52  ;;  %v1881_v25 = vpop.xlane.xlu0 %1880  ;;  %4667 = vpow2.f32 %v1688_v15 }
 0x375   :  { %4349 = vmatprep.subr.bf16.mxu1 %v7320_v33  ;;  %v1912_v46 = vadd.f32 %v1881_v25, %v1864_v17  ;;  %1968 = vperm.xlu0 %4616, %v6810_v24   ;;  %4669 = vpow2.f32 %v1694_v19  ;;  %v1692_v43 = vmul.f32 1.442695, %v7328_v21  ;;  %v1698_v52 = vmul.f32 1.442695, %v7331_v34  ;;  %v1852_v34 = vld [vmem:[#allocation3 + $0x20] sm:$0xff] }
 0x376   :  { %1988 = vperm.xlu1 %4615, %v6814_v12   ;;  %4035 = vmatmul.mubr.f32.gmra.mrb[4].mxu1 %v6594_v38  ;;  %v1867_v17 = vmul.f32 %v4654_v1, %v1851_v2  ;;  %v7334_v1 = vld [vmem:[#allocation53_spill] sm:$0xff]  ;;  %v1702_v19 = vmul.f32 1.442695, %v7341_v61  ;;  %v7344_v2 = vld [vmem:[#allocation56_spill] sm:$0xff] }
 0x377   :  { %1929 = vst.msk [vmem:[#allocation3] sm:$0xff] %vm7324_vm9, %v1912_v46  ;;  %4351 = vmatpush3.bf16.msra.mxu1 %v7320_v33  ;;  %4206 = vmatmul.mubr.f32.gmra.mrb[6].mxu0 %v6647_v11  ;;  %4671 = vpow2.f32 %v1692_v43  ;;  %v7337_v46 = vld [vmem:[#allocation63_spill] sm:$0xff]  ;;  %v1865_v43 = vmul.f32 %v6810_v24, %v1849_v7  ;;  %vm7363_vm9 = vcmask 64512  }
 0x378   :  { %4449 = vmatprep.subr.bf16.mxu0 %v7325_v10  ;;  %4037 = vmatprep.mubr.f32.mxu1 %v6622_v47  ;;  %v1885_v39 = vpop.xlane.xlu0 %1884  ;;  %4673 = vpow2.f32 %v1698_v52 }
 0x379   :  { %4208 = vmatprep.mubr.f32.mxu0 %v6685_v50  ;;  %4451 = vmatpush3.bf16.msra.mxu0 %v7325_v10  ;;  %v1914_v4 = vadd.f32 %v1885_v39, %v1866_v3  ;;  %v7342_v3 = vld [vmem:[#allocation40_spill] sm:$0xff]  ;;  %v7343_v39 = vld [vmem:[#allocation55_spill] sm:$0xff] }
 0x37a   :  { %4353 = vmatprep.subr.bf16.mxu1 %v6531_v30  ;;  %1983 = vperm.xlu0 %4616, %v6831_v36  }
 0x37b   :  { %1931 = vst.msk [vmem:[#allocation3 + $0x10] sm:$0xff] %vm7332_vm11, %v1914_v4  ;;  %1998 = vperm.xlu1 %4615, %v6835_v13   ;;  %4038 = vmatmul.mubr.f32.gmra.mrb[6].mxu1 %v6647_v11  ;;  %v7345_v4 = vsub.f32 %v7343_v39, %v7344_v2  ;;  %vm7364_vm11 = vmmov %vm7363_vm9 }
 0x37c   :  { %4355 = vmatpush3.bf16.msra.mxu1 %v6531_v30  ;;  %4209 = vmatmul.mubr.f32.gmra.mrb[8].mxu0 %v6699_v58  ;;  %v1887_v25 = vpop.xlane.xlu0 %1886  ;;  %v7335_v30 = vld [vmem:[#allocation54_spill] sm:$0xff] }
 0x37d   :  { %4453 = vmatprep.subr.bf16.mxu0 %v7333_v32  ;;  %4040 = vmatprep.mubr.f32.mxu1 %v6685_v50  ;;  %v1915_v22 = vadd.f32 %v1887_v25, %v1867_v17  ;;  %v6856_v42 = vpop.eup %4665  ;;  %v7336_v15 = vsub.f32 %v7334_v1, %v7335_v30  ;;  %v1700_v29 = vmul.f32 1.442695, %v7345_v4 }
 0x37e   :  { %4211 = vmatprep.mubr.f32.mxu0 %v6716_v48  ;;  %4455 = vmatpush3.bf16.msra.mxu0 %v7333_v32  ;;  %v6873_v10 = vpop.eup %4667  ;;  %v1853_v32 = vld [vmem:[#allocation3 + $0x28] sm:$0xff] }
 0x37f   :  { %v1696_v33 = vmul.f32 1.442695, %v7336_v15  ;;  %4357 = vmatprep.subr.bf16.mxu1 %v7337_v46  ;;  %1932 = vst.msk [vmem:[#allocation3 + $0x18] sm:$0xff] %vm7338_vm13, %v1915_v22  ;;  %1993 = vperm.xlu0 %4616, %v6852_v18   ;;  %v6880_v21 = vpop.eup %4669  ;;  %v7348_v22 = vld [vmem:[#allocation42_spill] sm:$0xff]  ;;  %vm7365_vm13 = vmmov %vm7363_vm9 }
 0x380   :  { %2008 = vperm.xlu1 %4615, %v6856_v42   ;;  %4041 = vmatmul.mubr.f32.gmra.mrb[8].mxu1 %v6699_v58 }
 0x381   :  { %4359 = vmatpush3.bf16.msra.mxu1 %v7337_v46  ;;  %4212 = vmatmul.mubr.f32.gmra.mrb[10].mxu0 %v6706_v49  ;;  %4675 = vpow2.f32 %v1696_v33  ;;  %v6891_v52 = vpop.eup %4671  ;;  %v1854_v33 = vld [vmem:[#allocation3 + $0x30] sm:$0xff] }
 0x382   :  { %4457 = vmatprep.subr.bf16.mxu0 %v7342_v3  ;;  %4043 = vmatprep.mubr.f32.mxu1 %v6716_v48  ;;  %4677 = vpow2.f32 %v1702_v19  ;;  %v6895_v25 = vpop.eup %4673  ;;  %v1855_v19 = vld [vmem:[#allocation3 + $0x38] sm:$0xff] }
 0x383   :  { %4214 = vmatprep.mubr.f32.mxu0 %v6738_v27  ;;  %4459 = vmatpush3.bf16.msra.mxu0 %v7342_v3  ;;  %4679 = vpow2.f32 %v1700_v29 }
 0x384   :  { %4361 = vmatprep.subr.bf16.mxu1 %v6602_v60  ;;  %2003 = vperm.xlu0 %4616, %v6873_v10  }
 0x385   :  { %2018 = vperm.xlu1 %4615, %v6880_v21   ;;  %4044 = vmatmul.mubr.f32.gmra.mrb[10].mxu1 %v6706_v49 }
 0x386   :  { %4363 = vmatpush3.bf16.msra.mxu1 %v6602_v60  ;;  %4215 = vmatmul.mubr.f32.gmra.mrb[12].mxu0 %v6731_v6  ;;  %v1868_v60 = vmul.f32 %v6831_v36, %v1852_v34 }
 0x387   :  { %4461 = vmatprep.subr.bf16.mxu0 %v7346_v53  ;;  %4046 = vmatprep.mubr.f32.mxu1 %v6738_v27  ;;  %v1883_v55 = vpop.xlane.xlu1 %1882 }
 0x388   :  { %4217 = vmatprep.mubr.f32.mxu0 %v6752_v59  ;;  %4463 = vmatpush3.bf16.msra.mxu0 %v7346_v53  ;;  %v1913_v17 = vadd.f32 %v1883_v55, %v1865_v43 }
 0x389   :  { %4365 = vmatprep.subr.bf16.mxu1 %v6640_v56  ;;  %2013 = vperm.xlu0 %4616, %v6891_v52  }
 0x38a   :  { %2028 = vperm.xlu1 %4615, %v6895_v25   ;;  %4047 = vmatmul.mubr.f32.gmra.mrb[12].mxu1 %v6731_v6  ;;  %1930 = vst.msk [vmem:[#allocation3 + $0x8] sm:$0xff] %vm7347_vm5, %v1913_v17  ;;  %vm7366_vm5 = vmmov %vm7363_vm9 }
 0x38b   :  { %4367 = vmatpush3.bf16.msra.mxu1 %v6640_v56  ;;  %4218 = vmatmul.mubr.f32.gmra.mrb[14].mxu0 %v6764_v16  ;;  %v1889_v24 = vpop.xlane.xlu1 %1888  ;;  %v6907_v30 = vpop.eup %4675  ;;  %v1869_v56 = vmul.f32 %v6814_v12, %v1853_v32  ;;  %v1870_v12 = vmul.f32 %v6852_v18, %v1854_v33 }
 0x38c   :  { %4465 = vmatprep.subr.bf16.mxu0 %v7348_v22  ;;  %4049 = vmatprep.mubr.f32.mxu1 %v6752_v59  ;;  %v1916_v1 = vadd.f32 %v1889_v24, %v1868_v60  ;;  %v6911_v15 = vpop.eup %4677 }
 0x38d   :  { %4467 = vmatpush3.bf16.msra.mxu0 %v7348_v22  ;;  %4252 = vmatprep.mubr.f32.mxu0 %v7298_v28  ;;  %v6921_v46 = vpop.eup %4679 }
 0x38e   :  { %4369 = vmatprep.subr.bf16.mxu1 %v6673_v26  ;;  %2023 = vperm.xlu0 %4616, %v6907_v30   ;;  %1933 = vst.msk [vmem:[#allocation3 + $0x20] sm:$0xff] %vm7349_vm7, %v1916_v1  ;;  %vm7367_vm7 = vmmov %vm7366_vm5 }
 0x38f   :  { %2038 = vperm.xlu1 %4615, %v6911_v15   ;;  %4050 = vmatmul.mubr.f32.gmra.mrb[14].mxu1 %v6764_v16  ;;  %v1891_v36 = vpop.xlane.xlu0 %1890 }
 0x390   :  { %4371 = vmatpush3.bf16.msra.mxu1 %v6673_v26  ;;  %4253 = vmatmul.mubr.f32.vlgmr.msra.gmra.mrb[0].mxu0 %v6534_v44  ;;  %v1917_v28 = vadd.f32 %v1891_v36, %v1869_v56  ;;  %v7353_v44 = vld [vmem:[#allocation61_spill] sm:$0xff] }
 0x391   :  { %4084 = vmatprep.mubr.f32.mxu1 %v7350_v20  ;;  %4255 = vmatprep.mubr.f32.mxu0 %v6495_v35  ;;  %v1871_v35 = vmul.f32 %v6835_v13, %v1855_v19  ;;  %v1948_v56 = vld [vmem:[#allocation4 + $0x18] sm:$0xff] }
 0x392   :  { %2033 = vperm.xlu0 %4616, %v6921_v46   ;;  %1934 = vst.msk [vmem:[#allocation3 + $0x28] sm:$0xff] %vm7351_vm8, %v1917_v28  ;;  %vm7368_vm8 = vmmov %vm7366_vm5 }
 0x393   :  { %4085 = vmatmul.mubr.f32.vlgmr.msra.gmra.mrb[0].mxu1 %v7352_v31  ;;  %v1893_v61 = vpop.xlane.xlu1 %1892 }
 0x394   :  { %4256 = vmatmul.mubr.f32.gmra.mrb[2].mxu0 %v6509_v62  ;;  %4087 = vmatprep.mubr.f32.mxu1 %v7353_v44  ;;  %v1918_v26 = vadd.f32 %v1893_v61, %v1870_v12  ;;  %v1856_v62 = vld [vmem:[#allocation3 + $0x40] sm:$0xff] }
 0x395   :  { %4258 = vmatprep.mubr.f32.mxu0 %v6561_v63 }
 0x396   :  { %1935 = vst.msk [vmem:[#allocation3 + $0x30] sm:$0xff] %vm7354_vm14, %v1918_v26  ;;  %vm7369_vm14 = vmmov %vm7366_vm5 }
 0x397   :  { %4088 = vmatmul.mubr.f32.gmra.mrb[2].mxu1 %v6520_v45  ;;  %v1895_v3 = vpop.xlane.xlu0 %1894  ;;  %v1872_v45 = vmul.f32 %v6873_v10, %v1856_v62  ;;  %v1863_v10 = vld [vmem:[#allocation3 + $0x78] sm:$0xff] }
 0x398   :  { %4259 = vmatmul.mubr.f32.gmra.mrb[4].mxu0 %v6594_v38  ;;  %4090 = vmatprep.mubr.f32.mxu1 %v6574_v8  ;;  %v1919_v18 = vadd.f32 %v1895_v3, %v1871_v35  ;;  %v1857_v38 = vld [vmem:[#allocation3 + $0x48] sm:$0xff]  ;;  %v1879_v39 = vmul.f32 %v6911_v15, %v1863_v10 }
 0x399   :  { %4261 = vmatprep.mubr.f32.mxu0 %v6622_v47  ;;  %v1950_v3 = vld [vmem:[#allocation4 + $0x28] sm:$0xff] }
 0x39a   :  { %1936 = vst.msk [vmem:[#allocation3 + $0x38] sm:$0xff] %vm7355_vm3, %v1919_v18  ;;  %vm7370_vm3 = vmmov %vm7366_vm5 }
 0x39b   :  { %4091 = vmatmul.mubr.f32.gmra.mrb[4].mxu1 %v6605_v23  ;;  %v1873_v23 = vmul.f32 %v6856_v42, %v1857_v38 }
 0x39c   :  { %4262 = vmatmul.mubr.f32.gmra.mrb[6].mxu0 %v6647_v11  ;;  %4093 = vmatprep.mubr.f32.mxu1 %v6635_v37  ;;  %v1859_v37 = vld [vmem:[#allocation3 + $0x58] sm:$0xff] }
 0x39d   :  { %4264 = vmatprep.mubr.f32.mxu0 %v6685_v50  ;;  %v1858_v50 = vld [vmem:[#allocation3 + $0x50] sm:$0xff] }
 0x39e   :  { %v1897_v63 = vpop.xlane.xlu1 %1896 }
 0x39f   :  { %4094 = vmatmul.mubr.f32.gmra.mrb[6].mxu1 %v6666_v54  ;;  %v1920_v8 = vadd.f32 %v1897_v63, %v1872_v45  ;;  %v1875_v54 = vmul.f32 %v6880_v21, %v1859_v37  ;;  %v1949_v63 = vld [vmem:[#allocation4 + $0x20] sm:$0xff] }
 0x3a0   :  { %4265 = vmatmul.mubr.f32.gmra.mrb[8].mxu0 %v6699_v58  ;;  %4096 = vmatprep.mubr.f32.mxu1 %v6690_v41 }
 0x3a1   :  { %4267 = vmatprep.mubr.f32.mxu0 %v6716_v48  ;;  %1937 = vst.msk [vmem:[#allocation3 + $0x40] sm:$0xff] %vm7356_vm10, %v1920_v8  ;;  %v1861_v48 = vld [vmem:[#allocation3 + $0x68] sm:$0xff]  ;;  %vm7371_vm10 = vmmov %vm7370_vm3 }
 0x3a3   :  { %4097 = vmatmul.mubr.f32.gmra.mrb[8].mxu1 %v6702_v5  ;;  %v1874_v5 = vmul.f32 %v6891_v52, %v1858_v50  ;;  %v1946_v52 = vld [vmem:[#allocation4 + $0x8] sm:$0xff] }
 0x3a4   :  { %4268 = vmatmul.mubr.f32.gmra.mrb[10].mxu0 %v6706_v49  ;;  %4099 = vmatprep.mubr.f32.mxu1 %v6721_v0  ;;  %v1877_v0 = vmul.f32 %v6895_v25, %v1861_v48  ;;  %v1945_v25 = vld [vmem:[#allocation4] sm:$0xff] }
 0x3a5   :  { %4270 = vmatprep.mubr.f32.mxu0 %v6738_v27 }
 0x3a7   :  { %4100 = vmatmul.mubr.f32.gmra.mrb[10].mxu1 %v6710_v9 }
 0x3a8   :  { %4271 = vmatmul.mubr.f32.gmra.mrb[12].mxu0 %v6731_v6  ;;  %4102 = vmatprep.mubr.f32.mxu1 %v6742_v57  ;;  %v1899_v47 = vpop.xlane.xlu0 %1898  ;;  %v1860_v6 = vld [vmem:[#allocation3 + $0x60] sm:$0xff] }
 0x3a9   :  { %4273 = vmatprep.mubr.f32.mxu0 %v6752_v59  ;;  %v1921_v11 = vadd.f32 %v1899_v47, %v1873_v23  ;;  %v1876_v57 = vmul.f32 %v6907_v30, %v1860_v6 }
 0x3ab   :  { %4103 = vmatmul.mubr.f32.gmra.mrb[12].mxu1 %v6734_v40  ;;  %1938 = vst.msk [vmem:[#allocation3 + $0x48] sm:$0xff] %vm7357_vm12, %v1921_v11  ;;  %vm7372_vm12 = vmmov %vm7370_vm3 }
 0x3ac   :  { %4274 = vmatmul.mubr.f32.gmra.mrb[14].mxu0 %v6764_v16  ;;  %4105 = vmatprep.mubr.f32.mxu1 %v6755_v14  ;;  %v1903_v41 = vpop.xlane.xlu0 %1902  ;;  %v1862_v16 = vld [vmem:[#allocation3 + $0x70] sm:$0xff] }
 0x3ad   :  { %v1923_v58 = vadd.f32 %v1903_v41, %v1875_v54 }
 0x3af   :  { %4106 = vmatmul.mubr.f32.gmra.mrb[14].mxu1 %v6767_v51  ;;  %1940 = vst.msk [vmem:[#allocation3 + $0x58] sm:$0xff] %vm7358_vm2, %v1923_v58  ;;  %v1901_v49 = vpop.xlane.xlu1 %1900  ;;  %v1878_v51 = vmul.f32 %v6921_v46, %v1862_v16  ;;  %v1947_v46 = vld [vmem:[#allocation4 + $0x10] sm:$0xff]  ;;  %v1952_v58 = vld [vmem:[#allocation4 + $0x38] sm:$0xff]  ;;  %vm7373_vm2 = vmmov %vm7370_vm3 }
 0x3b0   :  { %v1922_v9 = vadd.f32 %v1901_v49, %v1874_v5 }
 0x3b2   :  { %1939 = vst.msk [vmem:[#allocation3 + $0x50] sm:$0xff] %vm7359_vm15, %v1922_v9  ;;  %v1951_v9 = vld [vmem:[#allocation4 + $0x30] sm:$0xff]  ;;  %vm7374_vm15 = vmmov %vm7373_vm2 }
 0x3d6   :  { %v1907_v40 = vpop.xlane.xlu0 %1906 }
 0x3d7   :  { %v1925_v27 = vadd.f32 %v1907_v40, %v1877_v0 }
 0x3d9   :  { %1942 = vst.msk [vmem:[#allocation3 + $0x68] sm:$0xff] %vm7223_vm0, %v1925_v27  ;;  %v1905_v59 = vpop.xlane.xlu1 %1904  ;;  %vm7375_vm0 = vmmov %vm7373_vm2 }
 0x3da   :  { %v1924_v14 = vadd.f32 %v1905_v59, %v1876_v57 }
 0x3dc   :  { %1941 = vst.msk [vmem:[#allocation3 + $0x60] sm:$0xff] %vm7360_vm1, %v1924_v14  ;;  %vm7376_vm1 = vmmov %vm7375_vm0 }
 0x3e5   :  { %v1909_v13 = vpop.xlane.xlu1 %1908 }
 0x3e6   :  { %v1926_v42 = vadd.f32 %v1909_v13, %v1878_v51  ;;  %v1954_v51 = vld [vmem:[#allocation4 + $0x48] sm:$0xff] }
 0x3e8   :  { %1943 = vst.msk [vmem:[#allocation3 + $0x70] sm:$0xff] %vm7361_vm4, %v1926_v42  ;;  %vm7377_vm4 = vmmov %vm7375_vm0 }
 0x3e9   :  { %v1964_v29 = vpop.permute.xlu1 %1963 }
 0x3ea   :  { %v2041_v15 = vmul.f32 %v1964_v29, %v1945_v25  ;;  %v1955_v25 = vld [vmem:[#allocation4 + $0x50] sm:$0xff] }
 0x3ec   :  { %v1911_v2 = vpop.xlane.xlu0 %1910 }
 0x3ed   :  { %v1927_v4 = vadd.f32 %v1911_v2, %v1879_v39  ;;  %v1974_v7 = vpop.permute.xlu1 %1973  ;;  %v1953_v39 = vld [vmem:[#allocation4 + $0x40] sm:$0xff] }
 0x3ee   :  { %v2043_v35 = vmul.f32 %v1974_v7, %v1947_v46 }
 0x3ef   :  { %1944 = vst.msk [vmem:[#allocation3 + $0x78] sm:$0xff] %vm7362_vm6, %v1927_v4  ;;  %vm7378_vm6 = vmmov %vm7375_vm0 }
 0x3f1   :  { %v1979_v21 = vpop.permute.xlu1 %1978 }
 0x3f2   :  { %v2044_v61 = vmul.f32 %v1979_v21, %v1948_v56 }
 0x3f4   :  { %v1969_v43 = vpop.permute.xlu0 %1968 }
 0x3f5   :  { %v1989_v53 = vpop.permute.xlu1 %1988  ;;  %v2042_v32 = vmul.f32 %v1969_v43, %v1946_v52 }
 0x3f6   :  { %v2046_v37 = vmul.f32 %v1989_v53, %v1950_v3 }
 0x3f9   :  { %v1984_v55 = vpop.permute.xlu0 %1983 }
 0x3fa   :  { %v1999_v60 = vpop.permute.xlu1 %1998  ;;  %v2045_v41 = vmul.f32 %v1984_v55, %v1949_v63 }
 0x3fb   :  { %v2048_v27 = vmul.f32 %v1999_v60, %v1952_v58 }
 0x3fe   :  { %v1994_v36 = vpop.permute.xlu0 %1993 }
 0x3ff   :  { %v2009_v18 = vpop.permute.xlu1 %2008  ;;  %v2047_v16 = vmul.f32 %v1994_v36, %v1951_v9 }
 0x400   :  { %v2050_v7 = vmul.f32 %v2009_v18, %v1954_v51 }
 0x403   :  { %v2004_v38 = vpop.permute.xlu0 %2003 }
 0x404   :  { %v2019_v0 = vpop.permute.xlu1 %2018  ;;  %v2049_v55 = vmul.f32 %v2004_v38, %v1953_v39  ;;  %v1959_v38 = vld [vmem:[#allocation4 + $0x70] sm:$0xff] }
 0x408   :  { %v2014_v13 = vpop.permute.xlu0 %2013 }
 0x409   :  { %v2029_v60 = vpop.permute.xlu1 %2028 }
 0x463   :  { %v4254_v34 = vpop.f32.mrb[0].mxu0 }
 0x464   :  { %v3265_v17 = vpop.f32.mrb[1].mxu0 }
 0x466   :  { %v4086_v24 = vpop.f32.mrb[0].mxu1 }
 0x467   :  { %v4468_v22 = vadd.f32 %v4254_v34, %v4086_v24  ;;  %v4257_v1 = vpop.f32.mrb[2].mxu0  ;;  %v2655_v30 = vpop.f32.mrb[1].mxu1  ;;  %v1956_v34 = vld [vmem:[#allocation4 + $0x58] sm:$0xff] }
 0x468   :  { %v4469_v33 = vadd.f32 %v3265_v17, %v2655_v30  ;;  %v3277_v28 = vpop.f32.mrb[3].mxu0  ;;  %v2052_v30 = vmul.f32 %v2019_v0, %v1956_v34 }
 0x469   :  { %v3360_v20 = vadd.f32 %v4468_v22, %v2042_v32  ;;  %v2024_v32 = vpop.permute.xlu0 %2023 }
 0x46a   :  { %v3359_v12 = vadd.f32 %v4469_v33, %v2041_v15  ;;  %v4089_v31 = vpop.f32.mrb[2].mxu1  ;;  %v2051_v33 = vmul.f32 %v2014_v13, %v1955_v25 }
 0x46b   :  { %3377 = vst.msk [vmem:[#allocation4 + $0x8] sm:$0xff] %vm7363_vm9, %v3360_v20  ;;  %v4470_v19 = vadd.f32 %v4257_v1, %v4089_v31  ;;  %v4260_v44 = vpop.f32.mrb[4].mxu0  ;;  %v2669_v26 = vpop.f32.mrb[3].mxu1 }
 0x46c   :  { %3376 = vst.msk [vmem:[#allocation4] sm:$0xff] %vm7364_vm11, %v3359_v12  ;;  %v4471_v62 = vadd.f32 %v3277_v28, %v2669_v26  ;;  %v3289_v45 = vpop.f32.mrb[5].mxu0  ;;  %v1958_v28 = vld [vmem:[#allocation4 + $0x68] sm:$0xff]  ;;  %v1957_v12 = vld [vmem:[#allocation4 + $0x60] sm:$0xff] }
 0x46d   :  { %v3362_v8 = vadd.f32 %v4470_v19, %v2044_v61  ;;  %v2053_v18 = vmul.f32 %v2024_v32, %v1957_v12 }
 0x46e   :  { %v3361_v23 = vadd.f32 %v4471_v62, %v2043_v35  ;;  %v4092_v47 = vpop.f32.mrb[4].mxu1  ;;  %v1960_v62 = vld [vmem:[#allocation4 + $0x78] sm:$0xff] }
 0x46f   :  { %3379 = vst.msk [vmem:[#allocation4 + $0x18] sm:$0xff] %vm7365_vm13, %v3362_v8  ;;  %v4472_v11 = vadd.f32 %v4260_v44, %v4092_v47  ;;  %v4263_v54 = vpop.f32.mrb[6].mxu0  ;;  %v2683_v50 = vpop.f32.mrb[5].mxu1  ;;  %v2054_v44 = vmul.f32 %v2029_v60, %v1958_v28 }
 0x470   :  { %3378 = vst.msk [vmem:[#allocation4 + $0x10] sm:$0xff] %vm7366_vm5, %v3361_v23  ;;  %v4473_v5 = vadd.f32 %v3289_v45, %v2683_v50  ;;  %v3301_v49 = vpop.f32.mrb[7].mxu0  ;;  %v2039_v45 = vpop.permute.xlu1 %2038 }
 0x471   :  { %v3364_v48 = vadd.f32 %v4472_v11, %v2046_v37  ;;  %v2034_v23 = vpop.permute.xlu0 %2033 }
 0x472   :  { %v3363_v6 = vadd.f32 %v4473_v5, %v2045_v41  ;;  %v4095_v40 = vpop.f32.mrb[6].mxu1  ;;  %v2055_v58 = vmul.f32 %v2034_v23, %v1959_v38 }
 0x473   :  { %3381 = vst.msk [vmem:[#allocation4 + $0x28] sm:$0xff] %vm7367_vm7, %v3364_v48  ;;  %v4474_v57 = vadd.f32 %v4263_v54, %v4095_v40  ;;  %v4266_v59 = vpop.f32.mrb[8].mxu0  ;;  %v2697_v14 = vpop.f32.mrb[7].mxu1  ;;  %v2056_v54 = vmul.f32 %v2039_v45, %v1960_v62 }
 0x474   :  { %3380 = vst.msk [vmem:[#allocation4 + $0x20] sm:$0xff] %vm7368_vm8, %v3363_v6  ;;  %v4475_v42 = vadd.f32 %v3301_v49, %v2697_v14  ;;  %v3313_v10 = vpop.f32.mrb[9].mxu0 }
 0x475   :  { %v3366_v2 = vadd.f32 %v4474_v57, %v2048_v27 }
 0x476   :  { %v3365_v4 = vadd.f32 %v4475_v42, %v2047_v16  ;;  %v4098_v29 = vpop.f32.mrb[8].mxu1 }
 0x477   :  { %3383 = vst.msk [vmem:[#allocation4 + $0x38] sm:$0xff] %vm7369_vm14, %v3366_v2  ;;  %v4476_v21 = vadd.f32 %v4266_v59, %v4098_v29  ;;  %v4269_v43 = vpop.f32.mrb[10].mxu0  ;;  %v2711_v53 = vpop.f32.mrb[9].mxu1 }
 0x478   :  { %3382 = vst.msk [vmem:[#allocation4 + $0x30] sm:$0xff] %vm7370_vm3, %v3365_v4  ;;  %v4477_v52 = vadd.f32 %v3313_v10, %v2711_v53  ;;  %v3325_v17 = vpop.f32.mrb[11].mxu0 }
 0x479   :  { %v3368_v24 = vadd.f32 %v4476_v21, %v2050_v7 }
 0x47a   :  { %v3367_v22 = vadd.f32 %v4477_v52, %v2049_v55  ;;  %v4101_v1 = vpop.f32.mrb[10].mxu1 }
 0x47b   :  { %3385 = vst.msk [vmem:[#allocation4 + $0x48] sm:$0xff] %vm7371_vm10, %v3368_v24  ;;  %v4478_v15 = vadd.f32 %v4269_v43, %v4101_v1  ;;  %v4272_v56 = vpop.f32.mrb[12].mxu0  ;;  %v2725_v36 = vpop.f32.mrb[11].mxu1 }
 0x47c   :  { %3384 = vst.msk [vmem:[#allocation4 + $0x40] sm:$0xff] %vm7372_vm12, %v3367_v22  ;;  %v4479_v46 = vadd.f32 %v3325_v17, %v2725_v36  ;;  %v3337_v20 = vpop.f32.mrb[13].mxu0 }
 0x47d   :  { %v3370_v31 = vadd.f32 %v4478_v15, %v2052_v30 }
 0x47e   :  { %v3369_v61 = vadd.f32 %v4479_v46, %v2051_v33  ;;  %v4104_v19 = vpop.f32.mrb[12].mxu1 }
 0x47f   :  { %3387 = vst.msk [vmem:[#allocation4 + $0x58] sm:$0xff] %vm7373_vm2, %v3370_v31  ;;  %v4480_v26 = vadd.f32 %v4272_v56, %v4104_v19  ;;  %v4275_v35 = vpop.f32.mrb[14].mxu0  ;;  %v2739_v3 = vpop.f32.mrb[13].mxu1 }
 0x480   :  { %3386 = vst.msk [vmem:[#allocation4 + $0x50] sm:$0xff] %vm7374_vm15, %v3369_v61  ;;  %v4481_v63 = vadd.f32 %v3337_v20, %v2739_v3  ;;  %v3349_v8 = vpop.f32.mrb[15].mxu0 }
 0x481   :  { %v3372_v47 = vadd.f32 %v4480_v26, %v2054_v44 }
 0x482   :  { %v3371_v37 = vadd.f32 %v4481_v63, %v2053_v18  ;;  %v4107_v11 = vpop.f32.mrb[14].mxu1 }
 0x483   :  { %3389 = vst.msk [vmem:[#allocation4 + $0x68] sm:$0xff] %vm7375_vm0, %v3372_v47  ;;  %v4482_v50 = vadd.f32 %v4275_v35, %v4107_v11  ;;  %v2753_v41 = vpop.f32.mrb[15].mxu1 }
 0x484   :  { %3388 = vst.msk [vmem:[#allocation4 + $0x60] sm:$0xff] %vm7376_vm1, %v3371_v37  ;;  %v4483_v5 = vadd.f32 %v3349_v8, %v2753_v41 }
 0x485   :  { %v3374_v49 = vadd.f32 %v4482_v50, %v2056_v54 }
 0x486   :  { %v3373_v9 = vadd.f32 %v4483_v5, %v2055_v58 }
 0x487   :  { %3391 = vst.msk [vmem:[#allocation4 + $0x78] sm:$0xff] %vm7377_vm4, %v3374_v49 }
 0x488   :  { %3390 = vst.msk [vmem:[#allocation4 + $0x70] sm:$0xff] %vm7378_vm6, %v3373_v9 }
 0x489 PF:  { %v3429_v48 = vld [vmem:[#allocation3 + $0x10] sm:$0xff]  ;;  %v3427_v0 = vld [vmem:[#allocation3] sm:$0xff]  ;;  %v4801_v6 = vmov 0   ;;  %v3430_v40 = vld [vmem:[#allocation3 + $0x18] sm:$0xff]  ;;  %s3587_s2 = sld [smem:[#allocation12]]  ;;  %s3733_s13 = sld [smem:[#allocation12 + $0x1]] }
 0x48a   :  { %4687 = vset.pattern.permute.xlu1 %v4801_v6  ;;  %4686 = vset.pattern.permute.xlu0 %v4801_v6  ;;  %v3428_v27 = vld [vmem:[#allocation3 + $0x8] sm:$0xff]  ;;  %v3431_v59 = vld [vmem:[#allocation3 + $0x20] sm:$0xff]  ;;  %v3434_v14 = vld [vmem:[#allocation3 + $0x38] sm:$0xff]  ;;  %s3735_s20 = sld [smem:[#allocation12 + $0x2]]  ;;  %s3737_s22 = sld [smem:[#allocation12 + $0x3]] }
 0x48b   :  { %3455 = vperm.xlu1 %4687, %v3429_v48   ;;  %3445 = vperm.xlu0 %4686, %v3427_v0   ;;  %v3432_v57 = vld [vmem:[#allocation3 + $0x28] sm:$0xff]  ;;  %v3433_v16 = vld [vmem:[#allocation3 + $0x30] sm:$0xff]  ;;  %v3435_v13 = vld [vmem:[#allocation3 + $0x40] sm:$0xff]  ;;  %s3739_s7 = sld [smem:[#allocation12 + $0x4]]  ;;  %s3741_s1 = sld [smem:[#allocation12 + $0x5]] }
 0x48c   :  { %v3436_v51 = vld [vmem:[#allocation3 + $0x48] sm:$0xff]  ;;  %v3438_v42 = vld [vmem:[#allocation3 + $0x58] sm:$0xff]  ;;  %v3437_v10 = vld [vmem:[#allocation3 + $0x50] sm:$0xff]  ;;  %s6991_s26 = sld [smem:[#allocation14 + $0x1]]  ;;  %s6993_s27 = sld [smem:[#allocation14 + $0x2]] }
 0x48d   :  { %v3440_v39 = vld [vmem:[#allocation3 + $0x68] sm:$0xff]  ;;  %v3439_v2 = vld [vmem:[#allocation3 + $0x60] sm:$0xff]  ;;  %v3442_v4 = vld [vmem:[#allocation3 + $0x78] sm:$0xff]  ;;  %s6995_s28 = sld [smem:[#allocation12 + $0x6]]  ;;  %s6997_s29 = sld [smem:[#allocation12 + $0x7]] }
 0x48e   :  { %v3441_v29 = vld [vmem:[#allocation3 + $0x70] sm:$0xff]  ;;  %v3411_v53 = vld [vmem:[#allocation4] sm:$0xff]  ;;  %v3412_v25 = vld [vmem:[#allocation4 + $0x8] sm:$0xff]  ;;  %s6999_s11 = sld [smem:[#allocation14]]  ;;  %s7001_s30 = sld [smem:[#allocation14 + $0x3]] }
 0x48f   :  { %3460 = vperm.xlu1 %4687, %v3430_v40   ;;  %3450 = vperm.xlu0 %4686, %v3428_v27   ;;  %v3413_v32 = vld [vmem:[#allocation4 + $0x10] sm:$0xff]  ;;  %v3414_v36 = vld [vmem:[#allocation4 + $0x18] sm:$0xff]  ;;  %v3415_v20 = vld [vmem:[#allocation4 + $0x20] sm:$0xff]  ;;  %s7003_s9 = sld [smem:[#allocation14 + $0x4]]  ;;  %s7007_s3 = sld [smem:[#allocation14 + $0x5]] }
 0x490   :  { %v3416_v19 = vld [vmem:[#allocation4 + $0x28] sm:$0xff]  ;;  %v3417_v3 = vld [vmem:[#allocation4 + $0x30] sm:$0xff]  ;;  %v3418_v63 = vld [vmem:[#allocation4 + $0x38] sm:$0xff]  ;;  %s7010_s8 = sld [smem:[#allocation14 + $0x6]]  ;;  %s3746_s17 = sld [smem:[#allocation14 + $0x7]] }
 0x491   :  { %v3419_v47 = vld [vmem:[#allocation4 + $0x40] sm:$0xff]  ;;  %v3420_v50 = vld [vmem:[#allocation4 + $0x48] sm:$0xff]  ;;  %v3421_v49 = vld [vmem:[#allocation4 + $0x50] sm:$0xff]  ;;  %s3672_s14 = sld [smem:[#allocation8]]  ;;  %s4802_s15 = smov [#allocation15]  }
 0x492   :  { %v3422_v6 = vld [vmem:[#allocation4 + $0x58] sm:$0xff]  ;;  %s3688_s16 = sshll.u32 %s4802_s15, 4  ;;  %s3689_s16 = int_to_ptr.vmem [resolvable:$true] %s3688_s16 }
 0x493   :  { %3470 = vperm.xlu1 %4687, %v3432_v57   ;;  %3465 = vperm.xlu0 %4686, %v3431_v59   ;;  %v3423_v59 = vld [vmem:[#allocation4 + $0x60] sm:$0xff]  ;;  %s4760_s18 = scalar_lea.vmem %s3689_s16, 16  ;;  %s4764_s10 = scalar_lea.vmem %s3689_s16, 32 }
 0x494   :  { %p4761_p4 = scmp.ne.s32.totalorder %s3689_s16, %s4760_s18  ;;  %p4765_p5 = scmp.lt.s32.totalorder %s3689_s16, %s3689_s16 }
 0x495   :  { %p4766_p6 = scmp.lt.s32.totalorder %s4764_s10, %s4760_s18 }
 0x497   :  { %3480 = vperm.xlu1 %4687, %v3434_v14   ;;  %3475 = vperm.xlu0 %4686, %v3433_v16   ;;  %p4767_p7 = por %p4766_p6, %p4765_p5 }
 0x499   :  { %p4768_p8 = pnand %p4767_p7, %p4761_p4 }
 0x49b   :  { %3490 = vperm.xlu1 %4687, %v3436_v51   ;;  %3485 = vperm.xlu0 %4686, %v3435_v13   ;;  %v3424_v51 = vld [vmem:[#allocation4 + $0x68] sm:$0xff] }
 0x49f   :  { %3500 = vperm.xlu1 %4687, %v3438_v42   ;;  %3495 = vperm.xlu0 %4686, %v3437_v10   ;;  %v3425_v10 = vld [vmem:[#allocation4 + $0x70] sm:$0xff] }
 0x4a3   :  { %3510 = vperm.xlu1 %4687, %v3440_v39   ;;  %3505 = vperm.xlu0 %4686, %v3439_v2  }
 0x4a7   :  { %3520 = vperm.xlu1 %4687, %v3442_v4   ;;  %3515 = vperm.xlu0 %4686, %v3441_v29   ;;  %v3426_v4 = vld [vmem:[#allocation4 + $0x78] sm:$0xff] }
 0x50a   :  { %v3446_v7 = vpop.permute.xlu0 %3445  ;;  %v3456_v21 = vpop.permute.xlu1 %3455 }
 0x50b   :  { %4688 = vrcp.f32 %v3446_v7  ;;  %v3588_v7 = vstv %s3587_s2 }
 0x50c   :  { %4690 = vrcp.f32 %v3456_v21  ;;  %v3596_v21 = vstv %s3733_s13 }
 0x50e   :  { %v3451_v43 = vpop.permute.xlu0 %3450  ;;  %v3461_v55 = vpop.permute.xlu1 %3460 }
 0x50f   :  { %4692 = vrcp.f32 %v3451_v43  ;;  %v3607_v43 = vstv %s3735_s20 }
 0x510   :  { %4694 = vrcp.f32 %v3461_v55  ;;  %v3629_v55 = vstv %s3739_s7 }
 0x512   :  { %v3466_v52 = vpop.permute.xlu0 %3465  ;;  %v3471_v22 = vpop.permute.xlu1 %3470 }
 0x513   :  { %4696 = vrcp.f32 %v3466_v52  ;;  %v3600_v52 = vstv %s6991_s26 }
 0x514   :  { %4698 = vrcp.f32 %v3471_v22 }
 0x515   :  { %v4689_v34 = vpop.eup %4688 }
 0x516   :  { %v3524_v17 = vmul.f32 %v4689_v34, %v3411_v53  ;;  %v4691_v60 = vpop.eup %4690  ;;  %v3476_v15 = vpop.permute.xlu0 %3475  ;;  %v3618_v53 = vstv %s3737_s22  ;;  %v3640_v34 = vstv %s3741_s1 }
 0x517   :  { %v3528_v30 = vmul.f32 %v4691_v60, %v3413_v32  ;;  %4700 = vrcp.f32 %v3476_v15  ;;  %v3481_v33 = vpop.permute.xlu1 %3480 }
 0x518   :  { %3555 = vxpose.xlu0.b32.start [1/16] (narrow) %v3524_v17, 8  ;;  %4702 = vrcp.f32 %v3481_v33  ;;  %v3611_v17 = vstv %s6993_s27 }
 0x519   :  { %v4693_v24 = vpop.eup %4692 }
 0x51a   :  { %v3526_v1 = vmul.f32 %v4693_v24, %v3412_v25  ;;  %v4695_v56 = vpop.eup %4694  ;;  %v3486_v12 = vpop.permute.xlu0 %3485 }
 0x51b   :  { %v3530_v28 = vmul.f32 %v4695_v56, %v3414_v36  ;;  %4704 = vrcp.f32 %v3486_v12  ;;  %v3491_v44 = vpop.permute.xlu1 %3490  ;;  %v3662_v56 = vstv %s6997_s29  ;;  %v3622_v12 = vstv %s7001_s30 }
 0x51c   :  { %3556 = vxpose.xlu0.b32.cont [2/16] (narrow) %v3526_v1, 8  ;;  %4706 = vrcp.f32 %v3491_v44  ;;  %v3651_v1 = vstv %s6995_s28 }
 0x51d   :  { %v4697_v46 = vpop.eup %4696 }
 0x51e   :  { %v3532_v31 = vmul.f32 %v4697_v46, %v3415_v20  ;;  %v4699_v61 = vpop.eup %4698  ;;  %v3496_v18 = vpop.permute.xlu0 %3495  ;;  %v3592_v20 = vstv %s6999_s11 }
 0x51f   :  { %v3534_v26 = vmul.f32 %v4699_v61, %v3416_v19  ;;  %4708 = vrcp.f32 %v3496_v18  ;;  %v3501_v8 = vpop.permute.xlu1 %3500 }
 0x520   :  { %3557 = vxpose.xlu0.b32.cont [3/16] (narrow) %v3528_v30, 8  ;;  %4710 = vrcp.f32 %v3501_v8 }
 0x521   :  { %v4701_v35 = vpop.eup %4700 }
 0x522   :  { %v3536_v62 = vmul.f32 %v4701_v35, %v3417_v3  ;;  %v4703_v45 = vpop.eup %4702  ;;  %v3506_v37 = vpop.permute.xlu0 %3505 }
 0x523   :  { %v3538_v38 = vmul.f32 %v4703_v45, %v3418_v63  ;;  %4712 = vrcp.f32 %v3506_v37  ;;  %v3511_v41 = vpop.permute.xlu1 %3510  ;;  %v3644_v63 = vstv %s7007_s3  ;;  %v3655_v37 = vstv %s7010_s8 }
 0x524   :  { %3558 = vxpose.xlu0.b32.cont [4/16] (narrow) %v3530_v28, 8  ;;  %4714 = vrcp.f32 %v3511_v41 }
 0x525   :  { %v4705_v23 = vpop.eup %4704 }
 0x526   :  { %v3540_v11 = vmul.f32 %v4705_v23, %v3419_v47  ;;  %v4707_v54 = vpop.eup %4706  ;;  %v3516_v9 = vpop.permute.xlu0 %3515 }
 0x527   :  { %v3542_v58 = vmul.f32 %v4707_v54, %v3420_v50  ;;  %4716 = vrcp.f32 %v3516_v9  ;;  %v3521_v40 = vpop.permute.xlu1 %3520 }
 0x528   :  { %3559 = vxpose.xlu0.b32.cont [5/16] (narrow) %v3532_v31, 8  ;;  %4718 = vrcp.f32 %v3521_v40 }
 0x529   :  { %v4709_v5 = vpop.eup %4708 }
 0x52a   :  { %v3544_v48 = vmul.f32 %v4709_v5, %v3421_v49  ;;  %v4711_v0 = vpop.eup %4710 }
 0x52b   :  { %v3546_v27 = vmul.f32 %v4711_v0, %v3422_v6 }
 0x52c   :  { %3560 = vxpose.xlu0.b32.cont [6/16] (narrow) %v3534_v26, 8  ;;  %v3633_v26 = vstv %s7003_s9 }
 0x52d   :  { %v4713_v57 = vpop.eup %4712 }
 0x52e   :  { %v3548_v14 = vmul.f32 %v4713_v57, %v3423_v59  ;;  %v4715_v16 = vpop.eup %4714 }
 0x52f   :  { %v3550_v13 = vmul.f32 %v4715_v16, %v3424_v51 }
 0x530   :  { %3561 = vxpose.xlu0.b32.cont [7/16] (narrow) %v3536_v62, 8 }
 0x531   :  { %v4717_v42 = vpop.eup %4716 }
 0x532   :  { %v3552_v39 = vmul.f32 %v4717_v42, %v3425_v10  ;;  %v4719_v2 = vpop.eup %4718 }
 0x533   :  { %v3554_v29 = vmul.f32 %v4719_v2, %v3426_v4 }
 0x534   :  { %3562 = vxpose.xlu0.b32.cont [8/16] (narrow) %v3538_v38, 8 }
 0x538   :  { %3563 = vxpose.xlu0.b32.cont [9/16] (narrow) %v3540_v11, 8 }
 0x53c   :  { %3564 = vxpose.xlu0.b32.cont [10/16] (narrow) %v3542_v58, 8  ;;  %v3666_v58 = vstv %s3746_s17 }
 0x540   :  { %3565 = vxpose.xlu0.b32.cont [11/16] (narrow) %v3544_v48, 8 }
 0x544   :  { %3566 = vxpose.xlu0.b32.cont [12/16] (narrow) %v3546_v27, 8 }
 0x548   :  { %3567 = vxpose.xlu0.b32.cont [13/16] (narrow) %v3548_v14, 8  ;;  %v3673_v14 = vstv %s3672_s14 }
 0x54c   :  { %3568 = vxpose.xlu0.b32.cont [14/16] (narrow) %v3550_v13, 8 }
 0x550   :  { %3569 = vxpose.xlu0.b32.cont [15/16] (narrow) %v3552_v39, 8 }
 0x554   :  { %3570 = vxpose.xlu0.b32.end [16/16] (narrow) %v3554_v29, 8 }
 0x598   :  { %v3571_v25 = vpop.trf.xlu0 }
 0x599   :  { %v3589_v60 = vadd.f32 %v3588_v7, %v3571_v25  ;;  %v3597_v24 = vadd.f32 %v3596_v21, %v3571_v25  ;;  %v3608_v32 = vadd.f32 %v3607_v43, %v3571_v25  ;;  %v3619_v22 = vadd.f32 %v3618_v53, %v3571_v25 }
 0x59a   :  { %v3630_v30 = vadd.f32 %v3629_v55, %v3571_v25  ;;  %v3641_v15 = vadd.f32 %v3640_v34, %v3571_v25  ;;  %v3652_v44 = vadd.f32 %v3651_v1, %v3571_v25  ;;  %v3663_v35 = vadd.f32 %v3662_v56, %v3571_v25 }
 0x59b   :  { %v3590_v36 = vmax.f32 %v3589_v60, 0.0  ;;  %v3598_v33 = vmax.f32 %v3597_v24, 0.0  ;;  %v3609_v28 = vmax.f32 %v3608_v32, 0.0  ;;  %v3620_v46 = vmax.f32 %v3619_v22, 0.0 }
 0x59c   :  { %v3631_v19 = vmax.f32 %v3630_v30, 0.0  ;;  %v3642_v45 = vmax.f32 %v3641_v15, 0.0  ;;  %v3653_v47 = vmax.f32 %v3652_v44, 0.0  ;;  %v3664_v41 = vmax.f32 %v3663_v35, 0.0 }
 0x59d   :  { %v3601_v31 = vmul.f32 %v3600_v52, %v3598_v33  ;;  %v3612_v61 = vmul.f32 %v3611_v17, %v3609_v28  ;;  %v3593_v3 = vmul.f32 %v3592_v20, %v3590_v36  ;;  %v3623_v62 = vmul.f32 %v3622_v12, %v3620_v46 }
 0x59e   :  { %v3634_v23 = vmul.f32 %v3633_v26, %v3631_v19  ;;  %v3645_v50 = vmul.f32 %v3644_v63, %v3642_v45  ;;  %v3656_v9 = vmul.f32 %v3655_v37, %v3653_v47  ;;  %v3667_v6 = vmul.f32 %v3666_v58, %v3664_v41 }
 0x59f   :  { %v3603_v18 = vrot.slane %v3601_v31, 1  ;;  %v3614_v38 = vrot.slane %v3612_v61, 2  ;;  %v3625_v11 = vrot.slane %v3623_v62, 3 }
 0x5a0   :  { %v3636_v49 = vrot.slane %v3634_v23, 4  ;;  %v3647_v0 = vrot.slane %v3645_v50, 5  ;;  %v3658_v27 = vrot.slane %v3656_v9, 6  ;;  %v3669_v59 = vrot.slane %v3667_v6, 7 }
 0x5a1   :  { %v3605_v8 = vadd.f32 %v3603_v18, %v3593_v3 }
 0x5a3   :  { %v3616_v54 = vadd.f32 %v3614_v38, %v3605_v8 }
 0x5a5   :  { %v3627_v5 = vadd.f32 %v3625_v11, %v3616_v54 }
 0x5a7   :  { %v3638_v48 = vadd.f32 %v3636_v49, %v3627_v5 }
 0x5a9   :  { %v3649_v40 = vadd.f32 %v3647_v0, %v3638_v48 }
 0x5ab   :  { %v3660_v57 = vadd.f32 %v3658_v27, %v3649_v40 }
 0x5ad   :  { %v3671_v16 = vadd.f32 %v3669_v59, %v3660_v57 }
 0x5af   :  { %v3674_v51 = vadd.f32 %v3673_v14, %v3671_v16 }
 0x5b1   :  { %v3747_v13 = vmul.f32 -1.442695, %v3674_v51 }
 0x5b3   :  { %4720 = vpow2.f32 %v3747_v13 }
 0x5bd   :  { %v4721_v42 = vpop.eup %4720 }
 0x5be   :  { %v3678_v10 = vadd.f32 1.0, %v4721_v42 }
 0x5c0   :  { %4722 = vrcp.f32 %v3678_v10 }
 0x5ca   :  { %v4723_v39 = vpop.eup %4722 }
 0x5cb   :  { %3681 = vst [vmem:[#allocation15] sm:$0x1] %v4723_v39 }
 0x5cc   :  { %4771 = shalt.err (!%p4768_p8)
}
 0x5cd   :  { %s4772_s23 = scalar_lea.hbm %s7042_s12, 16 }
 0x5ce   :  { %p4773_p9 = scmp.ne.s32.totalorder %s7042_s12, %s4772_s23  ;;  %p4776_p10 = scmp.lt.u32.totalorder %s4772_s23, %s7042_s12 }
 0x5d0   :  { %p4778_p11 = pnand %p4776_p10, %p4773_p9 }
 0x5d2   :  { %4781 = shalt.err (!%p4778_p11)
}
 0x5d3   :  { %3691 = dma.vmem_to_hbm [thread:$0]  %s3689_s16, 16, %s7042_s12, [#allocation10]  }
 0x5d4   :  { %4786 = dma.done.wait [#allocation10], 16  }
 0x5d5   :  { %4787 = vsyncadd [#allocation10], 4294967280 }
 0x5d6   :  { %3695 = vsyncpa [#allocation10], 1 }
 0x5d7   :  { %3696 = vsyncpa [#allocation11], 1 }
 0x5d8   :  { %3697 = vsyncpa [#allocation13], 1 }

</bundles_post_ra>
